<compile_context>
chip_gen: v7x
topology: tpu7x:2x2x1
jax: 0.10.0
libtpu: 0.0.40
codegen_flags: <defaults>
</compile_context>

<pallas_src>
import functools

import jax
import jax.numpy as jnp
from jax import lax
from jax.experimental import pallas as pl
from jax.experimental.pallas import tpu as pltpu


def _embed_gather_kernel(L, BN, ids_ref, table_hbm, out_ref, row_buf, sems):
    """One grid step gathers BN prompts (classes) worth of embedding rows.

    ids_ref   : (N_pad*L,) int32 token ids, scalar-prefetched into SMEM (1-D)
    table_hbm : (V, D) embedding table, left in HBM (memory_space=pl.ANY)
    out_ref   : (BN, L, D) VMEM output block for this step's classes
    row_buf   : (2, BN, L, D) VMEM double buffer the row-DMAs land in
    sems      : (2,) DMA semaphores, one per buffer slot
    """
    o = pl.program_id(0)            # outer ("parallel") axis -> cores
    i = pl.program_id(1)            # inner ("arbitrary") axis -> pipeline
    inner_n = pl.num_programs(1)
    step = o * inner_n + i          # global class-block index
    slot = i % 2
    rows = BN * L

    unroll_l = True if L <= 16 else 8
    unroll_b = True if BN <= 4 else False
    unroll_w = True if rows <= 32 else 8

    def issue(s, dst_slot):
        """Issue all BN*L row gathers for class-block `s` into buffer `dst_slot`."""
        base = s * rows

        def body_b(b, carry):
            row0 = base + b * L

            def body_j(j, carry_j):
                tok = ids_ref[row0 + j]                  # scalar read from SMEM
                pltpu.make_async_copy(
                    table_hbm.at[pl.ds(tok, 1), :],      # (1, D) row in HBM
                    row_buf.at[dst_slot, b, pl.ds(j, 1), :],
                    sems.at[dst_slot],
                ).start()
                return carry_j

            lax.fori_loop(0, L, body_j, 0, unroll=unroll_l)
            return carry

        lax.fori_loop(0, BN, body_b, 0, unroll=unroll_b)

    # 1) Prime this core's pipeline on its first inner step.
    @pl.when(i == 0)
    def _():
        issue(step, slot)

    # 2) Prefetch the NEXT step's rows BEFORE waiting on this step's.
    #    (All SMEM id reads happen before any .wait(), keeping sst->sld
    #     forwarding intact and the descriptor stream flowing.)
    @pl.when(i + 1 < inner_n)
    def _():
        issue(step + 1, 1 - slot)

    # 3) Wait for this step's BN*L row copies (placeholder descriptor: wait
    #    only consumes the semaphore and the (1, D) transfer size, which is
    #    identical for every copy issued above).
    def wait_body(idx, carry):
        pltpu.make_async_copy(
            table_hbm.at[pl.ds(0, 1), :],
            row_buf.at[slot, 0, pl.ds(0, 1), :],
            sems.at[slot],
        ).wait()
        return carry

    lax.fori_loop(0, rows, wait_body, 0, unroll=unroll_w)

    # 4) Single lane-dense, full-block store of the assembled (BN, L, D) slab.
    out_ref[...] = row_buf[slot]


def teacher_prompt_embedding_pallas(token_ids, table, block_classes=None):
    """Pallas embedding gather: out[n, l, :] = table[token_ids[n, l], :]."""
    N, L = token_ids.shape
    V, D = table.shape

    if block_classes is None:
        # Batch classes per step; prefer >= 4 steps so cross-step prefetch and
        # (on a 2-TC chip) both cores are engaged. VMEM is not the constraint
        # here (even BN=32, L=77, D=512 fp32 double-buffered is ~10 MiB).
        block_classes = min(16, N)
        while block_classes > 1 and pl.cdiv(N, block_classes) < 4:
            block_classes //= 2
    BN = max(1, min(block_classes, N))

    n_steps = pl.cdiv(N, BN)
    N_pad = n_steps * BN
    # Split the step axis across TensorCores when it divides evenly
    # (outer axis is "parallel", inner axis carries the pipeline state).
    outer = 2 if (n_steps % 2 == 0 and n_steps >= 2) else 1
    inner = n_steps // outer

    # Clamp ids on the host: OOB ids would otherwise drive an OOB HBM DMA.
    # (PyTorch nn.Embedding would raise instead of remapping.)
    ids = jnp.clip(token_ids.astype(jnp.int32), 0, V - 1)
    if N_pad != N:
        ids = jnp.pad(ids, ((0, N_pad - N), (0, 0)))
    ids_flat = ids.reshape(-1)      # 1-D int32 -> compact SMEM footprint
    # TODO(synk): for very large class counts (N*L > ~100k ids) chunk N across
    # multiple pallas_calls to keep the scalar-prefetch SMEM buffer small.

    kernel = functools.partial(_embed_gather_kernel, L, BN)
    out = pl.pallas_call(
        kernel,
        out_shape=jax.ShapeDtypeStruct((N_pad, L, D), table.dtype),
        grid_spec=pltpu.PrefetchScalarGridSpec(
            num_scalar_prefetch=1,                 # token ids -> SMEM
            grid=(outer, inner),
            in_specs=[
                # Embedding table stays in HBM; rows are gathered by DMA.
                pl.BlockSpec(memory_space=pl.ANY),
            ],
            out_specs=pl.BlockSpec(
                (BN, L, D),
                lambda o, i, ids, inner=inner: (o * inner + i, 0, 0)),
            scratch_shapes=[
                pltpu.VMEM((2, BN, L, D), table.dtype),  # double-buffered rows
                pltpu.SemaphoreType.DMA((2,)),           # one sem per slot
            ],
        ),
        compiler_params=pltpu.CompilerParams(
            dimension_semantics=("parallel", "arbitrary")),
    )(ids_flat, table)
    return out[:N] if N_pad != N else out


def teacher_prompt_embedding(token_ids, table, use_pallas=None, block_classes=None):
    """Dispatch: plain XLA gather for tiny problems, Pallas DMA-gather otherwise."""
    if use_pallas is None:
        # Below ~a few hundred KiB of output the fixed pallas_call overhead
        # dwarfs the gather; let XLA handle it.
        use_pallas = token_ids.size * table.shape[-1] >= (1 << 16)
    if not use_pallas:
        return table[jnp.clip(token_ids.astype(jnp.int32), 0, table.shape[0] - 1)]
    return teacher_prompt_embedding_pallas(token_ids, table, block_classes=block_classes)


class TeacherPromptJAX:
    """JAX/Pallas analogue of TeacherPrompt.

    Tokenization / prompt-template formatting (clip.tokenize) is host-side
    string processing with no Pallas equivalent; we use integer token ids of
    the same shape instead.
    """

    def __init__(self, token_ids, token_embedding_table, use_pallas=None,
                 block_classes=None):
        # TODO(synk): clip.tokenize / prompt-template string formatting is host-side
        # string processing; represented here by precomputed integer token ids.
        embedding = teacher_prompt_embedding(
            token_ids, token_embedding_table,
            use_pallas=use_pallas, block_classes=block_classes)
        self.embedding = embedding                    # buffer `embedding`
        self.token_prefix = embedding[:, :1, :]       # buffer `token_prefix`
        self.tokenized_prompts = token_ids

    def forward(self):
        return self.embedding

    __call__ = forward


if __name__ == "__main__":
    # Small, lane-friendly synthetic shapes (D a multiple of 128):
    # N classes, context length L, embed dim D, vocab V.
    N, L, D, V = 8, 8, 256, 512

    key = jax.random.PRNGKey(0)
    k_table, k_ids, k_ids2 = jax.random.split(key, 3)

    # Deterministic "token_embedding" weight (like nn.Embedding init, scaled).
    table = jax.random.normal(k_table, (V, D), dtype=jnp.float32) * 0.02
    # Deterministic synthetic tokenized prompts (stand-in for clip.tokenize).
    token_ids = jax.random.randint(k_ids, (N, L), 0, V, dtype=jnp.int32)

    # Force the Pallas path; block_classes=2 -> 4 steps = outer 2 x inner 2,
    # exercising both the megacore split and the cross-step prefetch.
    module = TeacherPromptJAX(token_ids, table, use_pallas=True, block_classes=2)
    out = module()                       # forward() -> embedding
    out = jax.block_until_ready(out)

    # Reference check against plain-JAX gather.
    ref = table[token_ids]               # (N, L, D)
    assert out.shape == (N, L, D)
    assert out.dtype == jnp.float32
    assert jnp.allclose(out, ref)
    assert jnp.allclose(module.token_prefix, ref[:, :1, :])

    # Non-divisible class count: exercises padding + odd (serial) step count.
    token_ids2 = jax.random.randint(k_ids2, (5, L), 0, V, dtype=jnp.int32)
    out2 = jax.block_until_ready(
        teacher_prompt_embedding_pallas(token_ids2, table, block_classes=2))
    assert out2.shape == (5, L, D)
    assert jnp.allclose(out2, table[token_ids2])

    # Also sanity-check the small-shape (non-Pallas) dispatch path.
    out_small = teacher_prompt_embedding(token_ids, table, use_pallas=False)
    assert jnp.allclose(out_small, ref)

    print("KERNEL_OK")
</pallas_src>

<mosaic_0001>
module attributes {stable_mosaic.version = 11 : i64} {
  func.func @_embed_gather_kernel(%arg0: i32, %arg1: i32, %arg2: memref<64xi32, #tpu.memory_space<smem>>, %arg3: memref<512x256xf32, #tpu.memory_space<any>>, %arg4: memref<2x8x256xf32, #tpu.memory_space<vmem>>, %arg5: memref<2x2x8x256xf32, #tpu.memory_space<vmem>>, %arg6: memref<2x!tpu.dma_semaphore, #tpu.memory_space<semaphore_mem>>) attributes {dimension_semantics = [#tpu.dimension_semantics<parallel>, #tpu.dimension_semantics<arbitrary>], iteration_bounds = array<i64: 2, 2>, scalar_prefetch = 1 : i64, scratch_operands = 2 : i64, tpu.core_type = #tpu.core_type<tc>, window_params = [{}, {transform_indices = @transform_1, window_bounds = array<i64: 2, 8, 256>}]} {
    %c2_i32 = arith.constant 2 : i32
    %0 = arith.muli %arg0, %c2_i32 : i32
    %1 = arith.addi %0, %arg1 : i32
    %c2_i32_0 = arith.constant 2 : i32
    %c0_i32 = arith.constant 0 : i32
    %2 = arith.cmpi eq, %c2_i32_0, %c0_i32 : i32
    %c1_i32 = arith.constant 1 : i32
    %3 = arith.select %2, %c1_i32, %c2_i32_0 : i32
    %4 = arith.remsi %arg1, %3 : i32
    %c0_i32_1 = arith.constant 0 : i32
    %5 = arith.cmpi ne, %4, %c0_i32_1 : i32
    %c0_i32_2 = arith.constant 0 : i32
    %6 = arith.cmpi slt, %4, %c0_i32_2 : i32
    %c0_i32_3 = arith.constant 0 : i32
    %7 = arith.cmpi slt, %3, %c0_i32_3 : i32
    %8 = arith.xori %6, %7 : i1
    %9 = arith.andi %8, %5 : i1
    %10 = arith.addi %4, %3 : i32
    %11 = arith.select %9, %10, %4 : i32
    %c0_i32_4 = arith.constant 0 : i32
    %12 = arith.cmpi eq, %arg1, %c0_i32_4 : i32
    %13 = arith.extui %12 : i1 to i32
    %c0_i32_5 = arith.constant 0 : i32
    %14 = arith.cmpi ne, %13, %c0_i32_5 : i32
    scf.if %14 {
      %c16_i32 = arith.constant 16 : i32
      %103 = arith.muli %1, %c16_i32 : i32
      %c0_i32_97 = arith.constant 0 : i32
      %c8_i32_98 = arith.constant 8 : i32
      %104 = arith.muli %c0_i32_97, %c8_i32_98 : i32
      %105 = arith.addi %103, %104 : i32
      %c0_i32_99 = arith.constant 0 : i32
      %106 = arith.addi %105, %c0_i32_99 : i32
      %107 = arith.index_cast %106 : i32 to index
      %108 = memref.load %arg2[%107] : memref<64xi32, #tpu.memory_space<smem>>
      %c0_i32_100 = arith.constant 0 : i32
      %109 = tpu.memref_slice %arg3[%108, %c0_i32_100] : memref<512x256xf32, #tpu.memory_space<any>> -> memref<1x256xf32, #tpu.memory_space<any>>
      %c0_i32_101 = arith.constant 0 : i32
      %110 = tpu.memref_slice %arg5[%11, %c0_i32_97, %c0_i32_99, %c0_i32_101] : memref<2x2x8x256xf32, #tpu.memory_space<vmem>> -> memref<1x1x1x256xf32, #tpu.memory_space<vmem>>
      %111 = tpu.memref_squeeze %110 : memref<1x1x1x256xf32, #tpu.memory_space<vmem>> -> memref<1x256xf32, #tpu.memory_space<vmem>>
      %112 = tpu.memref_slice %arg6[%11] : memref<2x!tpu.dma_semaphore, #tpu.memory_space<semaphore_mem>> -> memref<1x!tpu.dma_semaphore, #tpu.memory_space<semaphore_mem>>
      %113 = tpu.memref_squeeze %112 : memref<1x!tpu.dma_semaphore, #tpu.memory_space<semaphore_mem>> -> memref<!tpu.dma_semaphore, #tpu.memory_space<semaphore_mem>>
      tpu.enqueue_dma source(%109 : memref<1x256xf32, #tpu.memory_space<any>>) target(%111 : memref<1x256xf32, #tpu.memory_space<vmem>>) target_semaphore(%113 : memref<!tpu.dma_semaphore, #tpu.memory_space<semaphore_mem>>)
      %c1_i32_102 = arith.constant 1 : i32
      %114 = arith.addi %105, %c1_i32_102 : i32
      %115 = arith.index_cast %114 : i32 to index
      %116 = memref.load %arg2[%115] : memref<64xi32, #tpu.memory_space<smem>>
      %c0_i32_103 = arith.constant 0 : i32
      %117 = tpu.memref_slice %arg3[%116, %c0_i32_103] : memref<512x256xf32, #tpu.memory_space<any>> -> memref<1x256xf32, #tpu.memory_space<any>>
      %c0_i32_104 = arith.constant 0 : i32
      %118 = tpu.memref_slice %arg5[%11, %c0_i32_97, %c1_i32_102, %c0_i32_104] : memref<2x2x8x256xf32, #tpu.memory_space<vmem>> -> memref<1x1x1x256xf32, #tpu.memory_space<vmem>>
      %119 = tpu.memref_squeeze %118 : memref<1x1x1x256xf32, #tpu.memory_space<vmem>> -> memref<1x256xf32, #tpu.memory_space<vmem>>
      %120 = tpu.memref_slice %arg6[%11] : memref<2x!tpu.dma_semaphore, #tpu.memory_space<semaphore_mem>> -> memref<1x!tpu.dma_semaphore, #tpu.memory_space<semaphore_mem>>
      %121 = tpu.memref_squeeze %120 : memref<1x!tpu.dma_semaphore, #tpu.memory_space<semaphore_mem>> -> memref<!tpu.dma_semaphore, #tpu.memory_space<semaphore_mem>>
      tpu.enqueue_dma source(%117 : memref<1x256xf32, #tpu.memory_space<any>>) target(%119 : memref<1x256xf32, #tpu.memory_space<vmem>>) target_semaphore(%121 : memref<!tpu.dma_semaphore, #tpu.memory_space<semaphore_mem>>)
      %c2_i32_105 = arith.constant 2 : i32
      %122 = arith.addi %105, %c2_i32_105 : i32
      %123 = arith.index_cast %122 : i32 to index
      %124 = memref.load %arg2[%123] : memref<64xi32, #tpu.memory_space<smem>>
      %c0_i32_106 = arith.constant 0 : i32
      %125 = tpu.memref_slice %arg3[%124, %c0_i32_106] : memref<512x256xf32, #tpu.memory_space<any>> -> memref<1x256xf32, #tpu.memory_space<any>>
      %c0_i32_107 = arith.constant 0 : i32
      %126 = tpu.memref_slice %arg5[%11, %c0_i32_97, %c2_i32_105, %c0_i32_107] : memref<2x2x8x256xf32, #tpu.memory_space<vmem>> -> memref<1x1x1x256xf32, #tpu.memory_space<vmem>>
      %127 = tpu.memref_squeeze %126 : memref<1x1x1x256xf32, #tpu.memory_space<vmem>> -> memref<1x256xf32, #tpu.memory_space<vmem>>
      %128 = tpu.memref_slice %arg6[%11] : memref<2x!tpu.dma_semaphore, #tpu.memory_space<semaphore_mem>> -> memref<1x!tpu.dma_semaphore, #tpu.memory_space<semaphore_mem>>
      %129 = tpu.memref_squeeze %128 : memref<1x!tpu.dma_semaphore, #tpu.memory_space<semaphore_mem>> -> memref<!tpu.dma_semaphore, #tpu.memory_space<semaphore_mem>>
      tpu.enqueue_dma source(%125 : memref<1x256xf32, #tpu.memory_space<any>>) target(%127 : memref<1x256xf32, #tpu.memory_space<vmem>>) target_semaphore(%129 : memref<!tpu.dma_semaphore, #tpu.memory_space<semaphore_mem>>)
      %c3_i32_108 = arith.constant 3 : i32
      %130 = arith.addi %105, %c3_i32_108 : i32
      %131 = arith.index_cast %130 : i32 to index
      %132 = memref.load %arg2[%131] : memref<64xi32, #tpu.memory_space<smem>>
      %c0_i32_109 = arith.constant 0 : i32
      %133 = tpu.memref_slice %arg3[%132, %c0_i32_109] : memref<512x256xf32, #tpu.memory_space<any>> -> memref<1x256xf32, #tpu.memory_space<any>>
      %c0_i32_110 = arith.constant 0 : i32
      %134 = tpu.memref_slice %arg5[%11, %c0_i32_97, %c3_i32_108, %c0_i32_110] : memref<2x2x8x256xf32, #tpu.memory_space<vmem>> -> memref<1x1x1x256xf32, #tpu.memory_space<vmem>>
      %135 = tpu.memref_squeeze %134 : memref<1x1x1x256xf32, #tpu.memory_space<vmem>> -> memref<1x256xf32, #tpu.memory_space<vmem>>
      %136 = tpu.memref_slice %arg6[%11] : memref<2x!tpu.dma_semaphore, #tpu.memory_space<semaphore_mem>> -> memref<1x!tpu.dma_semaphore, #tpu.memory_space<semaphore_mem>>
      %137 = tpu.memref_squeeze %136 : memref<1x!tpu.dma_semaphore, #tpu.memory_space<semaphore_mem>> -> memref<!tpu.dma_semaphore, #tpu.memory_space<semaphore_mem>>
      tpu.enqueue_dma source(%133 : memref<1x256xf32, #tpu.memory_space<any>>) target(%135 : memref<1x256xf32, #tpu.memory_space<vmem>>) target_semaphore(%137 : memref<!tpu.dma_semaphore, #tpu.memory_space<semaphore_mem>>)
      %c4_i32_111 = arith.constant 4 : i32
      %138 = arith.addi %105, %c4_i32_111 : i32
      %139 = arith.index_cast %138 : i32 to index
      %140 = memref.load %arg2[%139] : memref<64xi32, #tpu.memory_space<smem>>
      %c0_i32_112 = arith.constant 0 : i32
      %141 = tpu.memref_slice %arg3[%140, %c0_i32_112] : memref<512x256xf32, #tpu.memory_space<any>> -> memref<1x256xf32, #tpu.memory_space<any>>
      %c0_i32_113 = arith.constant 0 : i32
      %142 = tpu.memref_slice %arg5[%11, %c0_i32_97, %c4_i32_111, %c0_i32_113] : memref<2x2x8x256xf32, #tpu.memory_space<vmem>> -> memref<1x1x1x256xf32, #tpu.memory_space<vmem>>
      %143 = tpu.memref_squeeze %142 : memref<1x1x1x256xf32, #tpu.memory_space<vmem>> -> memref<1x256xf32, #tpu.memory_space<vmem>>
      %144 = tpu.memref_slice %arg6[%11] : memref<2x!tpu.dma_semaphore, #tpu.memory_space<semaphore_mem>> -> memref<1x!tpu.dma_semaphore, #tpu.memory_space<semaphore_mem>>
      %145 = tpu.memref_squeeze %144 : memref<1x!tpu.dma_semaphore, #tpu.memory_space<semaphore_mem>> -> memref<!tpu.dma_semaphore, #tpu.memory_space<semaphore_mem>>
      tpu.enqueue_dma source(%141 : memref<1x256xf32, #tpu.memory_space<any>>) target(%143 : memref<1x256xf32, #tpu.memory_space<vmem>>) target_semaphore(%145 : memref<!tpu.dma_semaphore, #tpu.memory_space<semaphore_mem>>)
      %c5_i32_114 = arith.constant 5 : i32
      %146 = arith.addi %105, %c5_i32_114 : i32
      %147 = arith.index_cast %146 : i32 to index
      %148 = memref.load %arg2[%147] : memref<64xi32, #tpu.memory_space<smem>>
      %c0_i32_115 = arith.constant 0 : i32
      %149 = tpu.memref_slice %arg3[%148, %c0_i32_115] : memref<512x256xf32, #tpu.memory_space<any>> -> memref<1x256xf32, #tpu.memory_space<any>>
      %c0_i32_116 = arith.constant 0 : i32
      %150 = tpu.memref_slice %arg5[%11, %c0_i32_97, %c5_i32_114, %c0_i32_116] : memref<2x2x8x256xf32, #tpu.memory_space<vmem>> -> memref<1x1x1x256xf32, #tpu.memory_space<vmem>>
      %151 = tpu.memref_squeeze %150 : memref<1x1x1x256xf32, #tpu.memory_space<vmem>> -> memref<1x256xf32, #tpu.memory_space<vmem>>
      %152 = tpu.memref_slice %arg6[%11] : memref<2x!tpu.dma_semaphore, #tpu.memory_space<semaphore_mem>> -> memref<1x!tpu.dma_semaphore, #tpu.memory_space<semaphore_mem>>
      %153 = tpu.memref_squeeze %152 : memref<1x!tpu.dma_semaphore, #tpu.memory_space<semaphore_mem>> -> memref<!tpu.dma_semaphore, #tpu.memory_space<semaphore_mem>>
      tpu.enqueue_dma source(%149 : memref<1x256xf32, #tpu.memory_space<any>>) target(%151 : memref<1x256xf32, #tpu.memory_space<vmem>>) target_semaphore(%153 : memref<!tpu.dma_semaphore, #tpu.memory_space<semaphore_mem>>)
      %c6_i32_117 = arith.constant 6 : i32
      %154 = arith.addi %105, %c6_i32_117 : i32
      %155 = arith.index_cast %154 : i32 to index
      %156 = memref.load %arg2[%155] : memref<64xi32, #tpu.memory_space<smem>>
      %c0_i32_118 = arith.constant 0 : i32
      %157 = tpu.memref_slice %arg3[%156, %c0_i32_118] : memref<512x256xf32, #tpu.memory_space<any>> -> memref<1x256xf32, #tpu.memory_space<any>>
      %c0_i32_119 = arith.constant 0 : i32
      %158 = tpu.memref_slice %arg5[%11, %c0_i32_97, %c6_i32_117, %c0_i32_119] : memref<2x2x8x256xf32, #tpu.memory_space<vmem>> -> memref<1x1x1x256xf32, #tpu.memory_space<vmem>>
      %159 = tpu.memref_squeeze %158 : memref<1x1x1x256xf32, #tpu.memory_space<vmem>> -> memref<1x256xf32, #tpu.memory_space<vmem>>
      %160 = tpu.memref_slice %arg6[%11] : memref<2x!tpu.dma_semaphore, #tpu.memory_space<semaphore_mem>> -> memref<1x!tpu.dma_semaphore, #tpu.memory_space<semaphore_mem>>
      %161 = tpu.memref_squeeze %160 : memref<1x!tpu.dma_semaphore, #tpu.memory_space<semaphore_mem>> -> memref<!tpu.dma_semaphore, #tpu.memory_space<semaphore_mem>>
      tpu.enqueue_dma source(%157 : memref<1x256xf32, #tpu.memory_space<any>>) target(%159 : memref<1x256xf32, #tpu.memory_space<vmem>>) target_semaphore(%161 : memref<!tpu.dma_semaphore, #tpu.memory_space<semaphore_mem>>)
      %c7_i32_120 = arith.constant 7 : i32
      %162 = arith.addi %105, %c7_i32_120 : i32
      %163 = arith.index_cast %162 : i32 to index
      %164 = memref.load %arg2[%163] : memref<64xi32, #tpu.memory_space<smem>>
      %c0_i32_121 = arith.constant 0 : i32
      %165 = tpu.memref_slice %arg3[%164, %c0_i32_121] : memref<512x256xf32, #tpu.memory_space<any>> -> memref<1x256xf32, #tpu.memory_space<any>>
      %c0_i32_122 = arith.constant 0 : i32
      %166 = tpu.memref_slice %arg5[%11, %c0_i32_97, %c7_i32_120, %c0_i32_122] : memref<2x2x8x256xf32, #tpu.memory_space<vmem>> -> memref<1x1x1x256xf32, #tpu.memory_space<vmem>>
      %167 = tpu.memref_squeeze %166 : memref<1x1x1x256xf32, #tpu.memory_space<vmem>> -> memref<1x256xf32, #tpu.memory_space<vmem>>
      %168 = tpu.memref_slice %arg6[%11] : memref<2x!tpu.dma_semaphore, #tpu.memory_space<semaphore_mem>> -> memref<1x!tpu.dma_semaphore, #tpu.memory_space<semaphore_mem>>
      %169 = tpu.memref_squeeze %168 : memref<1x!tpu.dma_semaphore, #tpu.memory_space<semaphore_mem>> -> memref<!tpu.dma_semaphore, #tpu.memory_space<semaphore_mem>>
      tpu.enqueue_dma source(%165 : memref<1x256xf32, #tpu.memory_space<any>>) target(%167 : memref<1x256xf32, #tpu.memory_space<vmem>>) target_semaphore(%169 : memref<!tpu.dma_semaphore, #tpu.memory_space<semaphore_mem>>)
      %c8_i32_123 = arith.constant 8 : i32
      %c1_i32_124 = arith.constant 1 : i32
      %c8_i32_125 = arith.constant 8 : i32
      %170 = arith.muli %c1_i32_124, %c8_i32_125 : i32
      %171 = arith.addi %103, %170 : i32
      %c0_i32_126 = arith.constant 0 : i32
      %172 = arith.addi %171, %c0_i32_126 : i32
      %173 = arith.index_cast %172 : i32 to index
      %174 = memref.load %arg2[%173] : memref<64xi32, #tpu.memory_space<smem>>
      %c0_i32_127 = arith.constant 0 : i32
      %175 = tpu.memref_slice %arg3[%174, %c0_i32_127] : memref<512x256xf32, #tpu.memory_space<any>> -> memref<1x256xf32, #tpu.memory_space<any>>
      %c0_i32_128 = arith.constant 0 : i32
      %176 = tpu.memref_slice %arg5[%11, %c1_i32_124, %c0_i32_126, %c0_i32_128] : memref<2x2x8x256xf32, #tpu.memory_space<vmem>> -> memref<1x1x1x256xf32, #tpu.memory_space<vmem>>
      %177 = tpu.memref_squeeze %176 : memref<1x1x1x256xf32, #tpu.memory_space<vmem>> -> memref<1x256xf32, #tpu.memory_space<vmem>>
      %178 = tpu.memref_slice %arg6[%11] : memref<2x!tpu.dma_semaphore, #tpu.memory_space<semaphore_mem>> -> memref<1x!tpu.dma_semaphore, #tpu.memory_space<semaphore_mem>>
      %179 = tpu.memref_squeeze %178 : memref<1x!tpu.dma_semaphore, #tpu.memory_space<semaphore_mem>> -> memref<!tpu.dma_semaphore, #tpu.memory_space<semaphore_mem>>
      tpu.enqueue_dma source(%175 : memref<1x256xf32, #tpu.memory_space<any>>) target(%177 : memref<1x256xf32, #tpu.memory_space<vmem>>) target_semaphore(%179 : memref<!tpu.dma_semaphore, #tpu.memory_space<semaphore_mem>>)
      %c1_i32_129 = arith.constant 1 : i32
      %180 = arith.addi %171, %c1_i32_129 : i32
      %181 = arith.index_cast %180 : i32 to index
      %182 = memref.load %arg2[%181] : memref<64xi32, #tpu.memory_space<smem>>
      %c0_i32_130 = arith.constant 0 : i32
      %183 = tpu.memref_slice %arg3[%182, %c0_i32_130] : memref<512x256xf32, #tpu.memory_space<any>> -> memref<1x256xf32, #tpu.memory_space<any>>
      %c0_i32_131 = arith.constant 0 : i32
      %184 = tpu.memref_slice %arg5[%11, %c1_i32_124, %c1_i32_129, %c0_i32_131] : memref<2x2x8x256xf32, #tpu.memory_space<vmem>> -> memref<1x1x1x256xf32, #tpu.memory_space<vmem>>
      %185 = tpu.memref_squeeze %184 : memref<1x1x1x256xf32, #tpu.memory_space<vmem>> -> memref<1x256xf32, #tpu.memory_space<vmem>>
      %186 = tpu.memref_slice %arg6[%11] : memref<2x!tpu.dma_semaphore, #tpu.memory_space<semaphore_mem>> -> memref<1x!tpu.dma_semaphore, #tpu.memory_space<semaphore_mem>>
      %187 = tpu.memref_squeeze %186 : memref<1x!tpu.dma_semaphore, #tpu.memory_space<semaphore_mem>> -> memref<!tpu.dma_semaphore, #tpu.memory_space<semaphore_mem>>
      tpu.enqueue_dma source(%183 : memref<1x256xf32, #tpu.memory_space<any>>) target(%185 : memref<1x256xf32, #tpu.memory_space<vmem>>) target_semaphore(%187 : memref<!tpu.dma_semaphore, #tpu.memory_space<semaphore_mem>>)
      %c2_i32_132 = arith.constant 2 : i32
      %188 = arith.addi %171, %c2_i32_132 : i32
      %189 = arith.index_cast %188 : i32 to index
      %190 = memref.load %arg2[%189] : memref<64xi32, #tpu.memory_space<smem>>
      %c0_i32_133 = arith.constant 0 : i32
      %191 = tpu.memref_slice %arg3[%190, %c0_i32_133] : memref<512x256xf32, #tpu.memory_space<any>> -> memref<1x256xf32, #tpu.memory_space<any>>
      %c0_i32_134 = arith.constant 0 : i32
      %192 = tpu.memref_slice %arg5[%11, %c1_i32_124, %c2_i32_132, %c0_i32_134] : memref<2x2x8x256xf32, #tpu.memory_space<vmem>> -> memref<1x1x1x256xf32, #tpu.memory_space<vmem>>
      %193 = tpu.memref_squeeze %192 : memref<1x1x1x256xf32, #tpu.memory_space<vmem>> -> memref<1x256xf32, #tpu.memory_space<vmem>>
      %194 = tpu.memref_slice %arg6[%11] : memref<2x!tpu.dma_semaphore, #tpu.memory_space<semaphore_mem>> -> memref<1x!tpu.dma_semaphore, #tpu.memory_space<semaphore_mem>>
      %195 = tpu.memref_squeeze %194 : memref<1x!tpu.dma_semaphore, #tpu.memory_space<semaphore_mem>> -> memref<!tpu.dma_semaphore, #tpu.memory_space<semaphore_mem>>
      tpu.enqueue_dma source(%191 : memref<1x256xf32, #tpu.memory_space<any>>) target(%193 : memref<1x256xf32, #tpu.memory_space<vmem>>) target_semaphore(%195 : memref<!tpu.dma_semaphore, #tpu.memory_space<semaphore_mem>>)
      %c3_i32_135 = arith.constant 3 : i32
      %196 = arith.addi %171, %c3_i32_135 : i32
      %197 = arith.index_cast %196 : i32 to index
      %198 = memref.load %arg2[%197] : memref<64xi32, #tpu.memory_space<smem>>
      %c0_i32_136 = arith.constant 0 : i32
      %199 = tpu.memref_slice %arg3[%198, %c0_i32_136] : memref<512x256xf32, #tpu.memory_space<any>> -> memref<1x256xf32, #tpu.memory_space<any>>
      %c0_i32_137 = arith.constant 0 : i32
      %200 = tpu.memref_slice %arg5[%11, %c1_i32_124, %c3_i32_135, %c0_i32_137] : memref<2x2x8x256xf32, #tpu.memory_space<vmem>> -> memref<1x1x1x256xf32, #tpu.memory_space<vmem>>
      %201 = tpu.memref_squeeze %200 : memref<1x1x1x256xf32, #tpu.memory_space<vmem>> -> memref<1x256xf32, #tpu.memory_space<vmem>>
      %202 = tpu.memref_slice %arg6[%11] : memref<2x!tpu.dma_semaphore, #tpu.memory_space<semaphore_mem>> -> memref<1x!tpu.dma_semaphore, #tpu.memory_space<semaphore_mem>>
      %203 = tpu.memref_squeeze %202 : memref<1x!tpu.dma_semaphore, #tpu.memory_space<semaphore_mem>> -> memref<!tpu.dma_semaphore, #tpu.memory_space<semaphore_mem>>
      tpu.enqueue_dma source(%199 : memref<1x256xf32, #tpu.memory_space<any>>) target(%201 : memref<1x256xf32, #tpu.memory_space<vmem>>) target_semaphore(%203 : memref<!tpu.dma_semaphore, #tpu.memory_space<semaphore_mem>>)
      %c4_i32_138 = arith.constant 4 : i32
      %204 = arith.addi %171, %c4_i32_138 : i32
      %205 = arith.index_cast %204 : i32 to index
      %206 = memref.load %arg2[%205] : memref<64xi32, #tpu.memory_space<smem>>
      %c0_i32_139 = arith.constant 0 : i32
      %207 = tpu.memref_slice %arg3[%206, %c0_i32_139] : memref<512x256xf32, #tpu.memory_space<any>> -> memref<1x256xf32, #tpu.memory_space<any>>
      %c0_i32_140 = arith.constant 0 : i32
      %208 = tpu.memref_slice %arg5[%11, %c1_i32_124, %c4_i32_138, %c0_i32_140] : memref<2x2x8x256xf32, #tpu.memory_space<vmem>> -> memref<1x1x1x256xf32, #tpu.memory_space<vmem>>
      %209 = tpu.memref_squeeze %208 : memref<1x1x1x256xf32, #tpu.memory_space<vmem>> -> memref<1x256xf32, #tpu.memory_space<vmem>>
      %210 = tpu.memref_slice %arg6[%11] : memref<2x!tpu.dma_semaphore, #tpu.memory_space<semaphore_mem>> -> memref<1x!tpu.dma_semaphore, #tpu.memory_space<semaphore_mem>>
      %211 = tpu.memref_squeeze %210 : memref<1x!tpu.dma_semaphore, #tpu.memory_space<semaphore_mem>> -> memref<!tpu.dma_semaphore, #tpu.memory_space<semaphore_mem>>
      tpu.enqueue_dma source(%207 : memref<1x256xf32, #tpu.memory_space<any>>) target(%209 : memref<1x256xf32, #tpu.memory_space<vmem>>) target_semaphore(%211 : memref<!tpu.dma_semaphore, #tpu.memory_space<semaphore_mem>>)
      %c5_i32_141 = arith.constant 5 : i32
      %212 = arith.addi %171, %c5_i32_141 : i32
      %213 = arith.index_cast %212 : i32 to index
      %214 = memref.load %arg2[%213] : memref<64xi32, #tpu.memory_space<smem>>
      %c0_i32_142 = arith.constant 0 : i32
      %215 = tpu.memref_slice %arg3[%214, %c0_i32_142] : memref<512x256xf32, #tpu.memory_space<any>> -> memref<1x256xf32, #tpu.memory_space<any>>
      %c0_i32_143 = arith.constant 0 : i32
      %216 = tpu.memref_slice %arg5[%11, %c1_i32_124, %c5_i32_141, %c0_i32_143] : memref<2x2x8x256xf32, #tpu.memory_space<vmem>> -> memref<1x1x1x256xf32, #tpu.memory_space<vmem>>
      %217 = tpu.memref_squeeze %216 : memref<1x1x1x256xf32, #tpu.memory_space<vmem>> -> memref<1x256xf32, #tpu.memory_space<vmem>>
      %218 = tpu.memref_slice %arg6[%11] : memref<2x!tpu.dma_semaphore, #tpu.memory_space<semaphore_mem>> -> memref<1x!tpu.dma_semaphore, #tpu.memory_space<semaphore_mem>>
      %219 = tpu.memref_squeeze %218 : memref<1x!tpu.dma_semaphore, #tpu.memory_space<semaphore_mem>> -> memref<!tpu.dma_semaphore, #tpu.memory_space<semaphore_mem>>
      tpu.enqueue_dma source(%215 : memref<1x256xf32, #tpu.memory_space<any>>) target(%217 : memref<1x256xf32, #tpu.memory_space<vmem>>) target_semaphore(%219 : memref<!tpu.dma_semaphore, #tpu.memory_space<semaphore_mem>>)
      %c6_i32_144 = arith.constant 6 : i32
      %220 = arith.addi %171, %c6_i32_144 : i32
      %221 = arith.index_cast %220 : i32 to index
      %222 = memref.load %arg2[%221] : memref<64xi32, #tpu.memory_space<smem>>
      %c0_i32_145 = arith.constant 0 : i32
      %223 = tpu.memref_slice %arg3[%222, %c0_i32_145] : memref<512x256xf32, #tpu.memory_space<any>> -> memref<1x256xf32, #tpu.memory_space<any>>
      %c0_i32_146 = arith.constant 0 : i32
      %224 = tpu.memref_slice %arg5[%11, %c1_i32_124, %c6_i32_144, %c0_i32_146] : memref<2x2x8x256xf32, #tpu.memory_space<vmem>> -> memref<1x1x1x256xf32, #tpu.memory_space<vmem>>
      %225 = tpu.memref_squeeze %224 : memref<1x1x1x256xf32, #tpu.memory_space<vmem>> -> memref<1x256xf32, #tpu.memory_space<vmem>>
      %226 = tpu.memref_slice %arg6[%11] : memref<2x!tpu.dma_semaphore, #tpu.memory_space<semaphore_mem>> -> memref<1x!tpu.dma_semaphore, #tpu.memory_space<semaphore_mem>>
      %227 = tpu.memref_squeeze %226 : memref<1x!tpu.dma_semaphore, #tpu.memory_space<semaphore_mem>> -> memref<!tpu.dma_semaphore, #tpu.memory_space<semaphore_mem>>
      tpu.enqueue_dma source(%223 : memref<1x256xf32, #tpu.memory_space<any>>) target(%225 : memref<1x256xf32, #tpu.memory_space<vmem>>) target_semaphore(%227 : memref<!tpu.dma_semaphore, #tpu.memory_space<semaphore_mem>>)
      %c7_i32_147 = arith.constant 7 : i32
      %228 = arith.addi %171, %c7_i32_147 : i32
      %229 = arith.index_cast %228 : i32 to index
      %230 = memref.load %arg2[%229] : memref<64xi32, #tpu.memory_space<smem>>
      %c0_i32_148 = arith.constant 0 : i32
      %231 = tpu.memref_slice %arg3[%230, %c0_i32_148] : memref<512x256xf32, #tpu.memory_space<any>> -> memref<1x256xf32, #tpu.memory_space<any>>
      %c0_i32_149 = arith.constant 0 : i32
      %232 = tpu.memref_slice %arg5[%11, %c1_i32_124, %c7_i32_147, %c0_i32_149] : memref<2x2x8x256xf32, #tpu.memory_space<vmem>> -> memref<1x1x1x256xf32, #tpu.memory_space<vmem>>
      %233 = tpu.memref_squeeze %232 : memref<1x1x1x256xf32, #tpu.memory_space<vmem>> -> memref<1x256xf32, #tpu.memory_space<vmem>>
      %234 = tpu.memref_slice %arg6[%11] : memref<2x!tpu.dma_semaphore, #tpu.memory_space<semaphore_mem>> -> memref<1x!tpu.dma_semaphore, #tpu.memory_space<semaphore_mem>>
      %235 = tpu.memref_squeeze %234 : memref<1x!tpu.dma_semaphore, #tpu.memory_space<semaphore_mem>> -> memref<!tpu.dma_semaphore, #tpu.memory_space<semaphore_mem>>
      tpu.enqueue_dma source(%231 : memref<1x256xf32, #tpu.memory_space<any>>) target(%233 : memref<1x256xf32, #tpu.memory_space<vmem>>) target_semaphore(%235 : memref<!tpu.dma_semaphore, #tpu.memory_space<semaphore_mem>>)
      %c8_i32_150 = arith.constant 8 : i32
      %c2_i32_151 = arith.constant 2 : i32
    } else {
    }
    %c1_i32_6 = arith.constant 1 : i32
    %15 = arith.addi %arg1, %c1_i32_6 : i32
    %c2_i32_7 = arith.constant 2 : i32
    %16 = arith.cmpi slt, %15, %c2_i32_7 : i32
    %17 = arith.extui %16 : i1 to i32
    %c0_i32_8 = arith.constant 0 : i32
    %18 = arith.cmpi ne, %17, %c0_i32_8 : i32
    scf.if %18 {
      %c1_i32_97 = arith.constant 1 : i32
      %103 = arith.addi %1, %c1_i32_97 : i32
      %c1_i32_98 = arith.constant 1 : i32
      %104 = arith.subi %c1_i32_98, %11 : i32
      %c16_i32 = arith.constant 16 : i32
      %105 = arith.muli %103, %c16_i32 : i32
      %c0_i32_99 = arith.constant 0 : i32
      %c8_i32_100 = arith.constant 8 : i32
      %106 = arith.muli %c0_i32_99, %c8_i32_100 : i32
      %107 = arith.addi %105, %106 : i32
      %c0_i32_101 = arith.constant 0 : i32
      %108 = arith.addi %107, %c0_i32_101 : i32
      %109 = arith.index_cast %108 : i32 to index
      %110 = memref.load %arg2[%109] : memref<64xi32, #tpu.memory_space<smem>>
      %c0_i32_102 = arith.constant 0 : i32
      %111 = tpu.memref_slice %arg3[%110, %c0_i32_102] : memref<512x256xf32, #tpu.memory_space<any>> -> memref<1x256xf32, #tpu.memory_space<any>>
      %c0_i32_103 = arith.constant 0 : i32
      %112 = tpu.memref_slice %arg5[%104, %c0_i32_99, %c0_i32_101, %c0_i32_103] : memref<2x2x8x256xf32, #tpu.memory_space<vmem>> -> memref<1x1x1x256xf32, #tpu.memory_space<vmem>>
      %113 = tpu.memref_squeeze %112 : memref<1x1x1x256xf32, #tpu.memory_space<vmem>> -> memref<1x256xf32, #tpu.memory_space<vmem>>
      %114 = tpu.memref_slice %arg6[%104] : memref<2x!tpu.dma_semaphore, #tpu.memory_space<semaphore_mem>> -> memref<1x!tpu.dma_semaphore, #tpu.memory_space<semaphore_mem>>
      %115 = tpu.memref_squeeze %114 : memref<1x!tpu.dma_semaphore, #tpu.memory_space<semaphore_mem>> -> memref<!tpu.dma_semaphore, #tpu.memory_space<semaphore_mem>>
      tpu.enqueue_dma source(%111 : memref<1x256xf32, #tpu.memory_space<any>>) target(%113 : memref<1x256xf32, #tpu.memory_space<vmem>>) target_semaphore(%115 : memref<!tpu.dma_semaphore, #tpu.memory_space<semaphore_mem>>)
      %c1_i32_104 = arith.constant 1 : i32
      %116 = arith.addi %107, %c1_i32_104 : i32
      %117 = arith.index_cast %116 : i32 to index
      %118 = memref.load %arg2[%117] : memref<64xi32, #tpu.memory_space<smem>>
      %c0_i32_105 = arith.constant 0 : i32
      %119 = tpu.memref_slice %arg3[%118, %c0_i32_105] : memref<512x256xf32, #tpu.memory_space<any>> -> memref<1x256xf32, #tpu.memory_space<any>>
      %c0_i32_106 = arith.constant 0 : i32
      %120 = tpu.memref_slice %arg5[%104, %c0_i32_99, %c1_i32_104, %c0_i32_106] : memref<2x2x8x256xf32, #tpu.memory_space<vmem>> -> memref<1x1x1x256xf32, #tpu.memory_space<vmem>>
      %121 = tpu.memref_squeeze %120 : memref<1x1x1x256xf32, #tpu.memory_space<vmem>> -> memref<1x256xf32, #tpu.memory_space<vmem>>
      %122 = tpu.memref_slice %arg6[%104] : memref<2x!tpu.dma_semaphore, #tpu.memory_space<semaphore_mem>> -> memref<1x!tpu.dma_semaphore, #tpu.memory_space<semaphore_mem>>
      %123 = tpu.memref_squeeze %122 : memref<1x!tpu.dma_semaphore, #tpu.memory_space<semaphore_mem>> -> memref<!tpu.dma_semaphore, #tpu.memory_space<semaphore_mem>>
      tpu.enqueue_dma source(%119 : memref<1x256xf32, #tpu.memory_space<any>>) target(%121 : memref<1x256xf32, #tpu.memory_space<vmem>>) target_semaphore(%123 : memref<!tpu.dma_semaphore, #tpu.memory_space<semaphore_mem>>)
      %c2_i32_107 = arith.constant 2 : i32
      %124 = arith.addi %107, %c2_i32_107 : i32
      %125 = arith.index_cast %124 : i32 to index
      %126 = memref.load %arg2[%125] : memref<64xi32, #tpu.memory_space<smem>>
      %c0_i32_108 = arith.constant 0 : i32
      %127 = tpu.memref_slice %arg3[%126, %c0_i32_108] : memref<512x256xf32, #tpu.memory_space<any>> -> memref<1x256xf32, #tpu.memory_space<any>>
      %c0_i32_109 = arith.constant 0 : i32
      %128 = tpu.memref_slice %arg5[%104, %c0_i32_99, %c2_i32_107, %c0_i32_109] : memref<2x2x8x256xf32, #tpu.memory_space<vmem>> -> memref<1x1x1x256xf32, #tpu.memory_space<vmem>>
      %129 = tpu.memref_squeeze %128 : memref<1x1x1x256xf32, #tpu.memory_space<vmem>> -> memref<1x256xf32, #tpu.memory_space<vmem>>
      %130 = tpu.memref_slice %arg6[%104] : memref<2x!tpu.dma_semaphore, #tpu.memory_space<semaphore_mem>> -> memref<1x!tpu.dma_semaphore, #tpu.memory_space<semaphore_mem>>
      %131 = tpu.memref_squeeze %130 : memref<1x!tpu.dma_semaphore, #tpu.memory_space<semaphore_mem>> -> memref<!tpu.dma_semaphore, #tpu.memory_space<semaphore_mem>>
      tpu.enqueue_dma source(%127 : memref<1x256xf32, #tpu.memory_space<any>>) target(%129 : memref<1x256xf32, #tpu.memory_space<vmem>>) target_semaphore(%131 : memref<!tpu.dma_semaphore, #tpu.memory_space<semaphore_mem>>)
      %c3_i32_110 = arith.constant 3 : i32
      %132 = arith.addi %107, %c3_i32_110 : i32
      %133 = arith.index_cast %132 : i32 to index
      %134 = memref.load %arg2[%133] : memref<64xi32, #tpu.memory_space<smem>>
      %c0_i32_111 = arith.constant 0 : i32
      %135 = tpu.memref_slice %arg3[%134, %c0_i32_111] : memref<512x256xf32, #tpu.memory_space<any>> -> memref<1x256xf32, #tpu.memory_space<any>>
      %c0_i32_112 = arith.constant 0 : i32
      %136 = tpu.memref_slice %arg5[%104, %c0_i32_99, %c3_i32_110, %c0_i32_112] : memref<2x2x8x256xf32, #tpu.memory_space<vmem>> -> memref<1x1x1x256xf32, #tpu.memory_space<vmem>>
      %137 = tpu.memref_squeeze %136 : memref<1x1x1x256xf32, #tpu.memory_space<vmem>> -> memref<1x256xf32, #tpu.memory_space<vmem>>
      %138 = tpu.memref_slice %arg6[%104] : memref<2x!tpu.dma_semaphore, #tpu.memory_space<semaphore_mem>> -> memref<1x!tpu.dma_semaphore, #tpu.memory_space<semaphore_mem>>
      %139 = tpu.memref_squeeze %138 : memref<1x!tpu.dma_semaphore, #tpu.memory_space<semaphore_mem>> -> memref<!tpu.dma_semaphore, #tpu.memory_space<semaphore_mem>>
      tpu.enqueue_dma source(%135 : memref<1x256xf32, #tpu.memory_space<any>>) target(%137 : memref<1x256xf32, #tpu.memory_space<vmem>>) target_semaphore(%139 : memref<!tpu.dma_semaphore, #tpu.memory_space<semaphore_mem>>)
      %c4_i32_113 = arith.constant 4 : i32
      %140 = arith.addi %107, %c4_i32_113 : i32
      %141 = arith.index_cast %140 : i32 to index
      %142 = memref.load %arg2[%141] : memref<64xi32, #tpu.memory_space<smem>>
      %c0_i32_114 = arith.constant 0 : i32
      %143 = tpu.memref_slice %arg3[%142, %c0_i32_114] : memref<512x256xf32, #tpu.memory_space<any>> -> memref<1x256xf32, #tpu.memory_space<any>>
      %c0_i32_115 = arith.constant 0 : i32
      %144 = tpu.memref_slice %arg5[%104, %c0_i32_99, %c4_i32_113, %c0_i32_115] : memref<2x2x8x256xf32, #tpu.memory_space<vmem>> -> memref<1x1x1x256xf32, #tpu.memory_space<vmem>>
      %145 = tpu.memref_squeeze %144 : memref<1x1x1x256xf32, #tpu.memory_space<vmem>> -> memref<1x256xf32, #tpu.memory_space<vmem>>
      %146 = tpu.memref_slice %arg6[%104] : memref<2x!tpu.dma_semaphore, #tpu.memory_space<semaphore_mem>> -> memref<1x!tpu.dma_semaphore, #tpu.memory_space<semaphore_mem>>
      %147 = tpu.memref_squeeze %146 : memref<1x!tpu.dma_semaphore, #tpu.memory_space<semaphore_mem>> -> memref<!tpu.dma_semaphore, #tpu.memory_space<semaphore_mem>>
      tpu.enqueue_dma source(%143 : memref<1x256xf32, #tpu.memory_space<any>>) target(%145 : memref<1x256xf32, #tpu.memory_space<vmem>>) target_semaphore(%147 : memref<!tpu.dma_semaphore, #tpu.memory_space<semaphore_mem>>)
      %c5_i32_116 = arith.constant 5 : i32
      %148 = arith.addi %107, %c5_i32_116 : i32
      %149 = arith.index_cast %148 : i32 to index
      %150 = memref.load %arg2[%149] : memref<64xi32, #tpu.memory_space<smem>>
      %c0_i32_117 = arith.constant 0 : i32
      %151 = tpu.memref_slice %arg3[%150, %c0_i32_117] : memref<512x256xf32, #tpu.memory_space<any>> -> memref<1x256xf32, #tpu.memory_space<any>>
      %c0_i32_118 = arith.constant 0 : i32
      %152 = tpu.memref_slice %arg5[%104, %c0_i32_99, %c5_i32_116, %c0_i32_118] : memref<2x2x8x256xf32, #tpu.memory_space<vmem>> -> memref<1x1x1x256xf32, #tpu.memory_space<vmem>>
      %153 = tpu.memref_squeeze %152 : memref<1x1x1x256xf32, #tpu.memory_space<vmem>> -> memref<1x256xf32, #tpu.memory_space<vmem>>
      %154 = tpu.memref_slice %arg6[%104] : memref<2x!tpu.dma_semaphore, #tpu.memory_space<semaphore_mem>> -> memref<1x!tpu.dma_semaphore, #tpu.memory_space<semaphore_mem>>
      %155 = tpu.memref_squeeze %154 : memref<1x!tpu.dma_semaphore, #tpu.memory_space<semaphore_mem>> -> memref<!tpu.dma_semaphore, #tpu.memory_space<semaphore_mem>>
      tpu.enqueue_dma source(%151 : memref<1x256xf32, #tpu.memory_space<any>>) target(%153 : memref<1x256xf32, #tpu.memory_space<vmem>>) target_semaphore(%155 : memref<!tpu.dma_semaphore, #tpu.memory_space<semaphore_mem>>)
      %c6_i32_119 = arith.constant 6 : i32
      %156 = arith.addi %107, %c6_i32_119 : i32
      %157 = arith.index_cast %156 : i32 to index
      %158 = memref.load %arg2[%157] : memref<64xi32, #tpu.memory_space<smem>>
      %c0_i32_120 = arith.constant 0 : i32
      %159 = tpu.memref_slice %arg3[%158, %c0_i32_120] : memref<512x256xf32, #tpu.memory_space<any>> -> memref<1x256xf32, #tpu.memory_space<any>>
      %c0_i32_121 = arith.constant 0 : i32
      %160 = tpu.memref_slice %arg5[%104, %c0_i32_99, %c6_i32_119, %c0_i32_121] : memref<2x2x8x256xf32, #tpu.memory_space<vmem>> -> memref<1x1x1x256xf32, #tpu.memory_space<vmem>>
      %161 = tpu.memref_squeeze %160 : memref<1x1x1x256xf32, #tpu.memory_space<vmem>> -> memref<1x256xf32, #tpu.memory_space<vmem>>
      %162 = tpu.memref_slice %arg6[%104] : memref<2x!tpu.dma_semaphore, #tpu.memory_space<semaphore_mem>> -> memref<1x!tpu.dma_semaphore, #tpu.memory_space<semaphore_mem>>
      %163 = tpu.memref_squeeze %162 : memref<1x!tpu.dma_semaphore, #tpu.memory_space<semaphore_mem>> -> memref<!tpu.dma_semaphore, #tpu.memory_space<semaphore_mem>>
      tpu.enqueue_dma source(%159 : memref<1x256xf32, #tpu.memory_space<any>>) target(%161 : memref<1x256xf32, #tpu.memory_space<vmem>>) target_semaphore(%163 : memref<!tpu.dma_semaphore, #tpu.memory_space<semaphore_mem>>)
      %c7_i32_122 = arith.constant 7 : i32
      %164 = arith.addi %107, %c7_i32_122 : i32
      %165 = arith.index_cast %164 : i32 to index
      %166 = memref.load %arg2[%165] : memref<64xi32, #tpu.memory_space<smem>>
      %c0_i32_123 = arith.constant 0 : i32
      %167 = tpu.memref_slice %arg3[%166, %c0_i32_123] : memref<512x256xf32, #tpu.memory_space<any>> -> memref<1x256xf32, #tpu.memory_space<any>>
      %c0_i32_124 = arith.constant 0 : i32
      %168 = tpu.memref_slice %arg5[%104, %c0_i32_99, %c7_i32_122, %c0_i32_124] : memref<2x2x8x256xf32, #tpu.memory_space<vmem>> -> memref<1x1x1x256xf32, #tpu.memory_space<vmem>>
      %169 = tpu.memref_squeeze %168 : memref<1x1x1x256xf32, #tpu.memory_space<vmem>> -> memref<1x256xf32, #tpu.memory_space<vmem>>
      %170 = tpu.memref_slice %arg6[%104] : memref<2x!tpu.dma_semaphore, #tpu.memory_space<semaphore_mem>> -> memref<1x!tpu.dma_semaphore, #tpu.memory_space<semaphore_mem>>
      %171 = tpu.memref_squeeze %170 : memref<1x!tpu.dma_semaphore, #tpu.memory_space<semaphore_mem>> -> memref<!tpu.dma_semaphore, #tpu.memory_space<semaphore_mem>>
      tpu.enqueue_dma source(%167 : memref<1x256xf32, #tpu.memory_space<any>>) target(%169 : memref<1x256xf32, #tpu.memory_space<vmem>>) target_semaphore(%171 : memref<!tpu.dma_semaphore, #tpu.memory_space<semaphore_mem>>)
      %c8_i32_125 = arith.constant 8 : i32
      %c1_i32_126 = arith.constant 1 : i32
      %c8_i32_127 = arith.constant 8 : i32
      %172 = arith.muli %c1_i32_126, %c8_i32_127 : i32
      %173 = arith.addi %105, %172 : i32
      %c0_i32_128 = arith.constant 0 : i32
      %174 = arith.addi %173, %c0_i32_128 : i32
      %175 = arith.index_cast %174 : i32 to index
      %176 = memref.load %arg2[%175] : memref<64xi32, #tpu.memory_space<smem>>
      %c0_i32_129 = arith.constant 0 : i32
      %177 = tpu.memref_slice %arg3[%176, %c0_i32_129] : memref<512x256xf32, #tpu.memory_space<any>> -> memref<1x256xf32, #tpu.memory_space<any>>
      %c0_i32_130 = arith.constant 0 : i32
      %178 = tpu.memref_slice %arg5[%104, %c1_i32_126, %c0_i32_128, %c0_i32_130] : memref<2x2x8x256xf32, #tpu.memory_space<vmem>> -> memref<1x1x1x256xf32, #tpu.memory_space<vmem>>
      %179 = tpu.memref_squeeze %178 : memref<1x1x1x256xf32, #tpu.memory_space<vmem>> -> memref<1x256xf32, #tpu.memory_space<vmem>>
      %180 = tpu.memref_slice %arg6[%104] : memref<2x!tpu.dma_semaphore, #tpu.memory_space<semaphore_mem>> -> memref<1x!tpu.dma_semaphore, #tpu.memory_space<semaphore_mem>>
      %181 = tpu.memref_squeeze %180 : memref<1x!tpu.dma_semaphore, #tpu.memory_space<semaphore_mem>> -> memref<!tpu.dma_semaphore, #tpu.memory_space<semaphore_mem>>
      tpu.enqueue_dma source(%177 : memref<1x256xf32, #tpu.memory_space<any>>) target(%179 : memref<1x256xf32, #tpu.memory_space<vmem>>) target_semaphore(%181 : memref<!tpu.dma_semaphore, #tpu.memory_space<semaphore_mem>>)
      %c1_i32_131 = arith.constant 1 : i32
      %182 = arith.addi %173, %c1_i32_131 : i32
      %183 = arith.index_cast %182 : i32 to index
      %184 = memref.load %arg2[%183] : memref<64xi32, #tpu.memory_space<smem>>
      %c0_i32_132 = arith.constant 0 : i32
      %185 = tpu.memref_slice %arg3[%184, %c0_i32_132] : memref<512x256xf32, #tpu.memory_space<any>> -> memref<1x256xf32, #tpu.memory_space<any>>
      %c0_i32_133 = arith.constant 0 : i32
      %186 = tpu.memref_slice %arg5[%104, %c1_i32_126, %c1_i32_131, %c0_i32_133] : memref<2x2x8x256xf32, #tpu.memory_space<vmem>> -> memref<1x1x1x256xf32, #tpu.memory_space<vmem>>
      %187 = tpu.memref_squeeze %186 : memref<1x1x1x256xf32, #tpu.memory_space<vmem>> -> memref<1x256xf32, #tpu.memory_space<vmem>>
      %188 = tpu.memref_slice %arg6[%104] : memref<2x!tpu.dma_semaphore, #tpu.memory_space<semaphore_mem>> -> memref<1x!tpu.dma_semaphore, #tpu.memory_space<semaphore_mem>>
      %189 = tpu.memref_squeeze %188 : memref<1x!tpu.dma_semaphore, #tpu.memory_space<semaphore_mem>> -> memref<!tpu.dma_semaphore, #tpu.memory_space<semaphore_mem>>
      tpu.enqueue_dma source(%185 : memref<1x256xf32, #tpu.memory_space<any>>) target(%187 : memref<1x256xf32, #tpu.memory_space<vmem>>) target_semaphore(%189 : memref<!tpu.dma_semaphore, #tpu.memory_space<semaphore_mem>>)
      %c2_i32_134 = arith.constant 2 : i32
      %190 = arith.addi %173, %c2_i32_134 : i32
      %191 = arith.index_cast %190 : i32 to index
      %192 = memref.load %arg2[%191] : memref<64xi32, #tpu.memory_space<smem>>
      %c0_i32_135 = arith.constant 0 : i32
      %193 = tpu.memref_slice %arg3[%192, %c0_i32_135] : memref<512x256xf32, #tpu.memory_space<any>> -> memref<1x256xf32, #tpu.memory_space<any>>
      %c0_i32_136 = arith.constant 0 : i32
      %194 = tpu.memref_slice %arg5[%104, %c1_i32_126, %c2_i32_134, %c0_i32_136] : memref<2x2x8x256xf32, #tpu.memory_space<vmem>> -> memref<1x1x1x256xf32, #tpu.memory_space<vmem>>
      %195 = tpu.memref_squeeze %194 : memref<1x1x1x256xf32, #tpu.memory_space<vmem>> -> memref<1x256xf32, #tpu.memory_space<vmem>>
      %196 = tpu.memref_slice %arg6[%104] : memref<2x!tpu.dma_semaphore, #tpu.memory_space<semaphore_mem>> -> memref<1x!tpu.dma_semaphore, #tpu.memory_space<semaphore_mem>>
      %197 = tpu.memref_squeeze %196 : memref<1x!tpu.dma_semaphore, #tpu.memory_space<semaphore_mem>> -> memref<!tpu.dma_semaphore, #tpu.memory_space<semaphore_mem>>
      tpu.enqueue_dma source(%193 : memref<1x256xf32, #tpu.memory_space<any>>) target(%195 : memref<1x256xf32, #tpu.memory_space<vmem>>) target_semaphore(%197 : memref<!tpu.dma_semaphore, #tpu.memory_space<semaphore_mem>>)
      %c3_i32_137 = arith.constant 3 : i32
      %198 = arith.addi %173, %c3_i32_137 : i32
      %199 = arith.index_cast %198 : i32 to index
      %200 = memref.load %arg2[%199] : memref<64xi32, #tpu.memory_space<smem>>
      %c0_i32_138 = arith.constant 0 : i32
      %201 = tpu.memref_slice %arg3[%200, %c0_i32_138] : memref<512x256xf32, #tpu.memory_space<any>> -> memref<1x256xf32, #tpu.memory_space<any>>
      %c0_i32_139 = arith.constant 0 : i32
      %202 = tpu.memref_slice %arg5[%104, %c1_i32_126, %c3_i32_137, %c0_i32_139] : memref<2x2x8x256xf32, #tpu.memory_space<vmem>> -> memref<1x1x1x256xf32, #tpu.memory_space<vmem>>
      %203 = tpu.memref_squeeze %202 : memref<1x1x1x256xf32, #tpu.memory_space<vmem>> -> memref<1x256xf32, #tpu.memory_space<vmem>>
      %204 = tpu.memref_slice %arg6[%104] : memref<2x!tpu.dma_semaphore, #tpu.memory_space<semaphore_mem>> -> memref<1x!tpu.dma_semaphore, #tpu.memory_space<semaphore_mem>>
      %205 = tpu.memref_squeeze %204 : memref<1x!tpu.dma_semaphore, #tpu.memory_space<semaphore_mem>> -> memref<!tpu.dma_semaphore, #tpu.memory_space<semaphore_mem>>
      tpu.enqueue_dma source(%201 : memref<1x256xf32, #tpu.memory_space<any>>) target(%203 : memref<1x256xf32, #tpu.memory_space<vmem>>) target_semaphore(%205 : memref<!tpu.dma_semaphore, #tpu.memory_space<semaphore_mem>>)
      %c4_i32_140 = arith.constant 4 : i32
      %206 = arith.addi %173, %c4_i32_140 : i32
      %207 = arith.index_cast %206 : i32 to index
      %208 = memref.load %arg2[%207] : memref<64xi32, #tpu.memory_space<smem>>
      %c0_i32_141 = arith.constant 0 : i32
      %209 = tpu.memref_slice %arg3[%208, %c0_i32_141] : memref<512x256xf32, #tpu.memory_space<any>> -> memref<1x256xf32, #tpu.memory_space<any>>
      %c0_i32_142 = arith.constant 0 : i32
      %210 = tpu.memref_slice %arg5[%104, %c1_i32_126, %c4_i32_140, %c0_i32_142] : memref<2x2x8x256xf32, #tpu.memory_space<vmem>> -> memref<1x1x1x256xf32, #tpu.memory_space<vmem>>
      %211 = tpu.memref_squeeze %210 : memref<1x1x1x256xf32, #tpu.memory_space<vmem>> -> memref<1x256xf32, #tpu.memory_space<vmem>>
      %212 = tpu.memref_slice %arg6[%104] : memref<2x!tpu.dma_semaphore, #tpu.memory_space<semaphore_mem>> -> memref<1x!tpu.dma_semaphore, #tpu.memory_space<semaphore_mem>>
      %213 = tpu.memref_squeeze %212 : memref<1x!tpu.dma_semaphore, #tpu.memory_space<semaphore_mem>> -> memref<!tpu.dma_semaphore, #tpu.memory_space<semaphore_mem>>
      tpu.enqueue_dma source(%209 : memref<1x256xf32, #tpu.memory_space<any>>) target(%211 : memref<1x256xf32, #tpu.memory_space<vmem>>) target_semaphore(%213 : memref<!tpu.dma_semaphore, #tpu.memory_space<semaphore_mem>>)
      %c5_i32_143 = arith.constant 5 : i32
      %214 = arith.addi %173, %c5_i32_143 : i32
      %215 = arith.index_cast %214 : i32 to index
      %216 = memref.load %arg2[%215] : memref<64xi32, #tpu.memory_space<smem>>
      %c0_i32_144 = arith.constant 0 : i32
      %217 = tpu.memref_slice %arg3[%216, %c0_i32_144] : memref<512x256xf32, #tpu.memory_space<any>> -> memref<1x256xf32, #tpu.memory_space<any>>
      %c0_i32_145 = arith.constant 0 : i32
      %218 = tpu.memref_slice %arg5[%104, %c1_i32_126, %c5_i32_143, %c0_i32_145] : memref<2x2x8x256xf32, #tpu.memory_space<vmem>> -> memref<1x1x1x256xf32, #tpu.memory_space<vmem>>
      %219 = tpu.memref_squeeze %218 : memref<1x1x1x256xf32, #tpu.memory_space<vmem>> -> memref<1x256xf32, #tpu.memory_space<vmem>>
      %220 = tpu.memref_slice %arg6[%104] : memref<2x!tpu.dma_semaphore, #tpu.memory_space<semaphore_mem>> -> memref<1x!tpu.dma_semaphore, #tpu.memory_space<semaphore_mem>>
      %221 = tpu.memref_squeeze %220 : memref<1x!tpu.dma_semaphore, #tpu.memory_space<semaphore_mem>> -> memref<!tpu.dma_semaphore, #tpu.memory_space<semaphore_mem>>
      tpu.enqueue_dma source(%217 : memref<1x256xf32, #tpu.memory_space<any>>) target(%219 : memref<1x256xf32, #tpu.memory_space<vmem>>) target_semaphore(%221 : memref<!tpu.dma_semaphore, #tpu.memory_space<semaphore_mem>>)
      %c6_i32_146 = arith.constant 6 : i32
      %222 = arith.addi %173, %c6_i32_146 : i32
      %223 = arith.index_cast %222 : i32 to index
      %224 = memref.load %arg2[%223] : memref<64xi32, #tpu.memory_space<smem>>
      %c0_i32_147 = arith.constant 0 : i32
      %225 = tpu.memref_slice %arg3[%224, %c0_i32_147] : memref<512x256xf32, #tpu.memory_space<any>> -> memref<1x256xf32, #tpu.memory_space<any>>
      %c0_i32_148 = arith.constant 0 : i32
      %226 = tpu.memref_slice %arg5[%104, %c1_i32_126, %c6_i32_146, %c0_i32_148] : memref<2x2x8x256xf32, #tpu.memory_space<vmem>> -> memref<1x1x1x256xf32, #tpu.memory_space<vmem>>
      %227 = tpu.memref_squeeze %226 : memref<1x1x1x256xf32, #tpu.memory_space<vmem>> -> memref<1x256xf32, #tpu.memory_space<vmem>>
      %228 = tpu.memref_slice %arg6[%104] : memref<2x!tpu.dma_semaphore, #tpu.memory_space<semaphore_mem>> -> memref<1x!tpu.dma_semaphore, #tpu.memory_space<semaphore_mem>>
      %229 = tpu.memref_squeeze %228 : memref<1x!tpu.dma_semaphore, #tpu.memory_space<semaphore_mem>> -> memref<!tpu.dma_semaphore, #tpu.memory_space<semaphore_mem>>
      tpu.enqueue_dma source(%225 : memref<1x256xf32, #tpu.memory_space<any>>) target(%227 : memref<1x256xf32, #tpu.memory_space<vmem>>) target_semaphore(%229 : memref<!tpu.dma_semaphore, #tpu.memory_space<semaphore_mem>>)
      %c7_i32_149 = arith.constant 7 : i32
      %230 = arith.addi %173, %c7_i32_149 : i32
      %231 = arith.index_cast %230 : i32 to index
      %232 = memref.load %arg2[%231] : memref<64xi32, #tpu.memory_space<smem>>
      %c0_i32_150 = arith.constant 0 : i32
      %233 = tpu.memref_slice %arg3[%232, %c0_i32_150] : memref<512x256xf32, #tpu.memory_space<any>> -> memref<1x256xf32, #tpu.memory_space<any>>
      %c0_i32_151 = arith.constant 0 : i32
      %234 = tpu.memref_slice %arg5[%104, %c1_i32_126, %c7_i32_149, %c0_i32_151] : memref<2x2x8x256xf32, #tpu.memory_space<vmem>> -> memref<1x1x1x256xf32, #tpu.memory_space<vmem>>
      %235 = tpu.memref_squeeze %234 : memref<1x1x1x256xf32, #tpu.memory_space<vmem>> -> memref<1x256xf32, #tpu.memory_space<vmem>>
      %236 = tpu.memref_slice %arg6[%104] : memref<2x!tpu.dma_semaphore, #tpu.memory_space<semaphore_mem>> -> memref<1x!tpu.dma_semaphore, #tpu.memory_space<semaphore_mem>>
      %237 = tpu.memref_squeeze %236 : memref<1x!tpu.dma_semaphore, #tpu.memory_space<semaphore_mem>> -> memref<!tpu.dma_semaphore, #tpu.memory_space<semaphore_mem>>
      tpu.enqueue_dma source(%233 : memref<1x256xf32, #tpu.memory_space<any>>) target(%235 : memref<1x256xf32, #tpu.memory_space<vmem>>) target_semaphore(%237 : memref<!tpu.dma_semaphore, #tpu.memory_space<semaphore_mem>>)
      %c8_i32_152 = arith.constant 8 : i32
      %c2_i32_153 = arith.constant 2 : i32
    } else {
    }
    %c0_i32_9 = arith.constant 0 : i32
    %c0_i32_10 = arith.constant 0 : i32
    %c0_i32_11 = arith.constant 0 : i32
    %c0_i32_12 = arith.constant 0 : i32
    %19 = tpu.memref_slice %arg3[%c0_i32_11, %c0_i32_12] : memref<512x256xf32, #tpu.memory_space<any>> -> memref<1x256xf32, #tpu.memory_space<any>>
    %c0_i32_13 = arith.constant 0 : i32
    %c0_i32_14 = arith.constant 0 : i32
    %20 = tpu.memref_slice %arg5[%11, %c0_i32_10, %c0_i32_13, %c0_i32_14] : memref<2x2x8x256xf32, #tpu.memory_space<vmem>> -> memref<1x1x1x256xf32, #tpu.memory_space<vmem>>
    %21 = tpu.memref_squeeze %20 : memref<1x1x1x256xf32, #tpu.memory_space<vmem>> -> memref<1x256xf32, #tpu.memory_space<vmem>>
    %22 = tpu.memref_slice %arg6[%11] : memref<2x!tpu.dma_semaphore, #tpu.memory_space<semaphore_mem>> -> memref<1x!tpu.dma_semaphore, #tpu.memory_space<semaphore_mem>>
    %23 = tpu.memref_squeeze %22 : memref<1x!tpu.dma_semaphore, #tpu.memory_space<semaphore_mem>> -> memref<!tpu.dma_semaphore, #tpu.memory_space<semaphore_mem>>
    tpu.wait_dma2 semaphore(%23 : memref<!tpu.dma_semaphore, #tpu.memory_space<semaphore_mem>>) src(%19 : memref<1x256xf32, #tpu.memory_space<any>>) dst(%21 : memref<1x256xf32, #tpu.memory_space<vmem>>)
    %c1_i32_15 = arith.constant 1 : i32
    %c0_i32_16 = arith.constant 0 : i32
    %c0_i32_17 = arith.constant 0 : i32
    %c0_i32_18 = arith.constant 0 : i32
    %24 = tpu.memref_slice %arg3[%c0_i32_17, %c0_i32_18] : memref<512x256xf32, #tpu.memory_space<any>> -> memref<1x256xf32, #tpu.memory_space<any>>
    %c0_i32_19 = arith.constant 0 : i32
    %c0_i32_20 = arith.constant 0 : i32
    %25 = tpu.memref_slice %arg5[%11, %c0_i32_16, %c0_i32_19, %c0_i32_20] : memref<2x2x8x256xf32, #tpu.memory_space<vmem>> -> memref<1x1x1x256xf32, #tpu.memory_space<vmem>>
    %26 = tpu.memref_squeeze %25 : memref<1x1x1x256xf32, #tpu.memory_space<vmem>> -> memref<1x256xf32, #tpu.memory_space<vmem>>
    %27 = tpu.memref_slice %arg6[%11] : memref<2x!tpu.dma_semaphore, #tpu.memory_space<semaphore_mem>> -> memref<1x!tpu.dma_semaphore, #tpu.memory_space<semaphore_mem>>
    %28 = tpu.memref_squeeze %27 : memref<1x!tpu.dma_semaphore, #tpu.memory_space<semaphore_mem>> -> memref<!tpu.dma_semaphore, #tpu.memory_space<semaphore_mem>>
    tpu.wait_dma2 semaphore(%28 : memref<!tpu.dma_semaphore, #tpu.memory_space<semaphore_mem>>) src(%24 : memref<1x256xf32, #tpu.memory_space<any>>) dst(%26 : memref<1x256xf32, #tpu.memory_space<vmem>>)
    %c2_i32_21 = arith.constant 2 : i32
    %c0_i32_22 = arith.constant 0 : i32
    %c0_i32_23 = arith.constant 0 : i32
    %c0_i32_24 = arith.constant 0 : i32
    %29 = tpu.memref_slice %arg3[%c0_i32_23, %c0_i32_24] : memref<512x256xf32, #tpu.memory_space<any>> -> memref<1x256xf32, #tpu.memory_space<any>>
    %c0_i32_25 = arith.constant 0 : i32
    %c0_i32_26 = arith.constant 0 : i32
    %30 = tpu.memref_slice %arg5[%11, %c0_i32_22, %c0_i32_25, %c0_i32_26] : memref<2x2x8x256xf32, #tpu.memory_space<vmem>> -> memref<1x1x1x256xf32, #tpu.memory_space<vmem>>
    %31 = tpu.memref_squeeze %30 : memref<1x1x1x256xf32, #tpu.memory_space<vmem>> -> memref<1x256xf32, #tpu.memory_space<vmem>>
    %32 = tpu.memref_slice %arg6[%11] : memref<2x!tpu.dma_semaphore, #tpu.memory_space<semaphore_mem>> -> memref<1x!tpu.dma_semaphore, #tpu.memory_space<semaphore_mem>>
    %33 = tpu.memref_squeeze %32 : memref<1x!tpu.dma_semaphore, #tpu.memory_space<semaphore_mem>> -> memref<!tpu.dma_semaphore, #tpu.memory_space<semaphore_mem>>
    tpu.wait_dma2 semaphore(%33 : memref<!tpu.dma_semaphore, #tpu.memory_space<semaphore_mem>>) src(%29 : memref<1x256xf32, #tpu.memory_space<any>>) dst(%31 : memref<1x256xf32, #tpu.memory_space<vmem>>)
    %c3_i32 = arith.constant 3 : i32
    %c0_i32_27 = arith.constant 0 : i32
    %c0_i32_28 = arith.constant 0 : i32
    %c0_i32_29 = arith.constant 0 : i32
    %34 = tpu.memref_slice %arg3[%c0_i32_28, %c0_i32_29] : memref<512x256xf32, #tpu.memory_space<any>> -> memref<1x256xf32, #tpu.memory_space<any>>
    %c0_i32_30 = arith.constant 0 : i32
    %c0_i32_31 = arith.constant 0 : i32
    %35 = tpu.memref_slice %arg5[%11, %c0_i32_27, %c0_i32_30, %c0_i32_31] : memref<2x2x8x256xf32, #tpu.memory_space<vmem>> -> memref<1x1x1x256xf32, #tpu.memory_space<vmem>>
    %36 = tpu.memref_squeeze %35 : memref<1x1x1x256xf32, #tpu.memory_space<vmem>> -> memref<1x256xf32, #tpu.memory_space<vmem>>
    %37 = tpu.memref_slice %arg6[%11] : memref<2x!tpu.dma_semaphore, #tpu.memory_space<semaphore_mem>> -> memref<1x!tpu.dma_semaphore, #tpu.memory_space<semaphore_mem>>
    %38 = tpu.memref_squeeze %37 : memref<1x!tpu.dma_semaphore, #tpu.memory_space<semaphore_mem>> -> memref<!tpu.dma_semaphore, #tpu.memory_space<semaphore_mem>>
    tpu.wait_dma2 semaphore(%38 : memref<!tpu.dma_semaphore, #tpu.memory_space<semaphore_mem>>) src(%34 : memref<1x256xf32, #tpu.memory_space<any>>) dst(%36 : memref<1x256xf32, #tpu.memory_space<vmem>>)
    %c4_i32 = arith.constant 4 : i32
    %c0_i32_32 = arith.constant 0 : i32
    %c0_i32_33 = arith.constant 0 : i32
    %c0_i32_34 = arith.constant 0 : i32
    %39 = tpu.memref_slice %arg3[%c0_i32_33, %c0_i32_34] : memref<512x256xf32, #tpu.memory_space<any>> -> memref<1x256xf32, #tpu.memory_space<any>>
    %c0_i32_35 = arith.constant 0 : i32
    %c0_i32_36 = arith.constant 0 : i32
    %40 = tpu.memref_slice %arg5[%11, %c0_i32_32, %c0_i32_35, %c0_i32_36] : memref<2x2x8x256xf32, #tpu.memory_space<vmem>> -> memref<1x1x1x256xf32, #tpu.memory_space<vmem>>
    %41 = tpu.memref_squeeze %40 : memref<1x1x1x256xf32, #tpu.memory_space<vmem>> -> memref<1x256xf32, #tpu.memory_space<vmem>>
    %42 = tpu.memref_slice %arg6[%11] : memref<2x!tpu.dma_semaphore, #tpu.memory_space<semaphore_mem>> -> memref<1x!tpu.dma_semaphore, #tpu.memory_space<semaphore_mem>>
    %43 = tpu.memref_squeeze %42 : memref<1x!tpu.dma_semaphore, #tpu.memory_space<semaphore_mem>> -> memref<!tpu.dma_semaphore, #tpu.memory_space<semaphore_mem>>
    tpu.wait_dma2 semaphore(%43 : memref<!tpu.dma_semaphore, #tpu.memory_space<semaphore_mem>>) src(%39 : memref<1x256xf32, #tpu.memory_space<any>>) dst(%41 : memref<1x256xf32, #tpu.memory_space<vmem>>)
    %c5_i32 = arith.constant 5 : i32
    %c0_i32_37 = arith.constant 0 : i32
    %c0_i32_38 = arith.constant 0 : i32
    %c0_i32_39 = arith.constant 0 : i32
    %44 = tpu.memref_slice %arg3[%c0_i32_38, %c0_i32_39] : memref<512x256xf32, #tpu.memory_space<any>> -> memref<1x256xf32, #tpu.memory_space<any>>
    %c0_i32_40 = arith.constant 0 : i32
    %c0_i32_41 = arith.constant 0 : i32
    %45 = tpu.memref_slice %arg5[%11, %c0_i32_37, %c0_i32_40, %c0_i32_41] : memref<2x2x8x256xf32, #tpu.memory_space<vmem>> -> memref<1x1x1x256xf32, #tpu.memory_space<vmem>>
    %46 = tpu.memref_squeeze %45 : memref<1x1x1x256xf32, #tpu.memory_space<vmem>> -> memref<1x256xf32, #tpu.memory_space<vmem>>
    %47 = tpu.memref_slice %arg6[%11] : memref<2x!tpu.dma_semaphore, #tpu.memory_space<semaphore_mem>> -> memref<1x!tpu.dma_semaphore, #tpu.memory_space<semaphore_mem>>
    %48 = tpu.memref_squeeze %47 : memref<1x!tpu.dma_semaphore, #tpu.memory_space<semaphore_mem>> -> memref<!tpu.dma_semaphore, #tpu.memory_space<semaphore_mem>>
    tpu.wait_dma2 semaphore(%48 : memref<!tpu.dma_semaphore, #tpu.memory_space<semaphore_mem>>) src(%44 : memref<1x256xf32, #tpu.memory_space<any>>) dst(%46 : memref<1x256xf32, #tpu.memory_space<vmem>>)
    %c6_i32 = arith.constant 6 : i32
    %c0_i32_42 = arith.constant 0 : i32
    %c0_i32_43 = arith.constant 0 : i32
    %c0_i32_44 = arith.constant 0 : i32
    %49 = tpu.memref_slice %arg3[%c0_i32_43, %c0_i32_44] : memref<512x256xf32, #tpu.memory_space<any>> -> memref<1x256xf32, #tpu.memory_space<any>>
    %c0_i32_45 = arith.constant 0 : i32
    %c0_i32_46 = arith.constant 0 : i32
    %50 = tpu.memref_slice %arg5[%11, %c0_i32_42, %c0_i32_45, %c0_i32_46] : memref<2x2x8x256xf32, #tpu.memory_space<vmem>> -> memref<1x1x1x256xf32, #tpu.memory_space<vmem>>
    %51 = tpu.memref_squeeze %50 : memref<1x1x1x256xf32, #tpu.memory_space<vmem>> -> memref<1x256xf32, #tpu.memory_space<vmem>>
    %52 = tpu.memref_slice %arg6[%11] : memref<2x!tpu.dma_semaphore, #tpu.memory_space<semaphore_mem>> -> memref<1x!tpu.dma_semaphore, #tpu.memory_space<semaphore_mem>>
    %53 = tpu.memref_squeeze %52 : memref<1x!tpu.dma_semaphore, #tpu.memory_space<semaphore_mem>> -> memref<!tpu.dma_semaphore, #tpu.memory_space<semaphore_mem>>
    tpu.wait_dma2 semaphore(%53 : memref<!tpu.dma_semaphore, #tpu.memory_space<semaphore_mem>>) src(%49 : memref<1x256xf32, #tpu.memory_space<any>>) dst(%51 : memref<1x256xf32, #tpu.memory_space<vmem>>)
    %c7_i32 = arith.constant 7 : i32
    %c0_i32_47 = arith.constant 0 : i32
    %c0_i32_48 = arith.constant 0 : i32
    %c0_i32_49 = arith.constant 0 : i32
    %54 = tpu.memref_slice %arg3[%c0_i32_48, %c0_i32_49] : memref<512x256xf32, #tpu.memory_space<any>> -> memref<1x256xf32, #tpu.memory_space<any>>
    %c0_i32_50 = arith.constant 0 : i32
    %c0_i32_51 = arith.constant 0 : i32
    %55 = tpu.memref_slice %arg5[%11, %c0_i32_47, %c0_i32_50, %c0_i32_51] : memref<2x2x8x256xf32, #tpu.memory_space<vmem>> -> memref<1x1x1x256xf32, #tpu.memory_space<vmem>>
    %56 = tpu.memref_squeeze %55 : memref<1x1x1x256xf32, #tpu.memory_space<vmem>> -> memref<1x256xf32, #tpu.memory_space<vmem>>
    %57 = tpu.memref_slice %arg6[%11] : memref<2x!tpu.dma_semaphore, #tpu.memory_space<semaphore_mem>> -> memref<1x!tpu.dma_semaphore, #tpu.memory_space<semaphore_mem>>
    %58 = tpu.memref_squeeze %57 : memref<1x!tpu.dma_semaphore, #tpu.memory_space<semaphore_mem>> -> memref<!tpu.dma_semaphore, #tpu.memory_space<semaphore_mem>>
    tpu.wait_dma2 semaphore(%58 : memref<!tpu.dma_semaphore, #tpu.memory_space<semaphore_mem>>) src(%54 : memref<1x256xf32, #tpu.memory_space<any>>) dst(%56 : memref<1x256xf32, #tpu.memory_space<vmem>>)
    %c8_i32 = arith.constant 8 : i32
    %c0_i32_52 = arith.constant 0 : i32
    %c0_i32_53 = arith.constant 0 : i32
    %c0_i32_54 = arith.constant 0 : i32
    %59 = tpu.memref_slice %arg3[%c0_i32_53, %c0_i32_54] : memref<512x256xf32, #tpu.memory_space<any>> -> memref<1x256xf32, #tpu.memory_space<any>>
    %c0_i32_55 = arith.constant 0 : i32
    %c0_i32_56 = arith.constant 0 : i32
    %60 = tpu.memref_slice %arg5[%11, %c0_i32_52, %c0_i32_55, %c0_i32_56] : memref<2x2x8x256xf32, #tpu.memory_space<vmem>> -> memref<1x1x1x256xf32, #tpu.memory_space<vmem>>
    %61 = tpu.memref_squeeze %60 : memref<1x1x1x256xf32, #tpu.memory_space<vmem>> -> memref<1x256xf32, #tpu.memory_space<vmem>>
    %62 = tpu.memref_slice %arg6[%11] : memref<2x!tpu.dma_semaphore, #tpu.memory_space<semaphore_mem>> -> memref<1x!tpu.dma_semaphore, #tpu.memory_space<semaphore_mem>>
    %63 = tpu.memref_squeeze %62 : memref<1x!tpu.dma_semaphore, #tpu.memory_space<semaphore_mem>> -> memref<!tpu.dma_semaphore, #tpu.memory_space<semaphore_mem>>
    tpu.wait_dma2 semaphore(%63 : memref<!tpu.dma_semaphore, #tpu.memory_space<semaphore_mem>>) src(%59 : memref<1x256xf32, #tpu.memory_space<any>>) dst(%61 : memref<1x256xf32, #tpu.memory_space<vmem>>)
    %c9_i32 = arith.constant 9 : i32
    %c0_i32_57 = arith.constant 0 : i32
    %c0_i32_58 = arith.constant 0 : i32
    %c0_i32_59 = arith.constant 0 : i32
    %64 = tpu.memref_slice %arg3[%c0_i32_58, %c0_i32_59] : memref<512x256xf32, #tpu.memory_space<any>> -> memref<1x256xf32, #tpu.memory_space<any>>
    %c0_i32_60 = arith.constant 0 : i32
    %c0_i32_61 = arith.constant 0 : i32
    %65 = tpu.memref_slice %arg5[%11, %c0_i32_57, %c0_i32_60, %c0_i32_61] : memref<2x2x8x256xf32, #tpu.memory_space<vmem>> -> memref<1x1x1x256xf32, #tpu.memory_space<vmem>>
    %66 = tpu.memref_squeeze %65 : memref<1x1x1x256xf32, #tpu.memory_space<vmem>> -> memref<1x256xf32, #tpu.memory_space<vmem>>
    %67 = tpu.memref_slice %arg6[%11] : memref<2x!tpu.dma_semaphore, #tpu.memory_space<semaphore_mem>> -> memref<1x!tpu.dma_semaphore, #tpu.memory_space<semaphore_mem>>
    %68 = tpu.memref_squeeze %67 : memref<1x!tpu.dma_semaphore, #tpu.memory_space<semaphore_mem>> -> memref<!tpu.dma_semaphore, #tpu.memory_space<semaphore_mem>>
    tpu.wait_dma2 semaphore(%68 : memref<!tpu.dma_semaphore, #tpu.memory_space<semaphore_mem>>) src(%64 : memref<1x256xf32, #tpu.memory_space<any>>) dst(%66 : memref<1x256xf32, #tpu.memory_space<vmem>>)
    %c10_i32 = arith.constant 10 : i32
    %c0_i32_62 = arith.constant 0 : i32
    %c0_i32_63 = arith.constant 0 : i32
    %c0_i32_64 = arith.constant 0 : i32
    %69 = tpu.memref_slice %arg3[%c0_i32_63, %c0_i32_64] : memref<512x256xf32, #tpu.memory_space<any>> -> memref<1x256xf32, #tpu.memory_space<any>>
    %c0_i32_65 = arith.constant 0 : i32
    %c0_i32_66 = arith.constant 0 : i32
    %70 = tpu.memref_slice %arg5[%11, %c0_i32_62, %c0_i32_65, %c0_i32_66] : memref<2x2x8x256xf32, #tpu.memory_space<vmem>> -> memref<1x1x1x256xf32, #tpu.memory_space<vmem>>
    %71 = tpu.memref_squeeze %70 : memref<1x1x1x256xf32, #tpu.memory_space<vmem>> -> memref<1x256xf32, #tpu.memory_space<vmem>>
    %72 = tpu.memref_slice %arg6[%11] : memref<2x!tpu.dma_semaphore, #tpu.memory_space<semaphore_mem>> -> memref<1x!tpu.dma_semaphore, #tpu.memory_space<semaphore_mem>>
    %73 = tpu.memref_squeeze %72 : memref<1x!tpu.dma_semaphore, #tpu.memory_space<semaphore_mem>> -> memref<!tpu.dma_semaphore, #tpu.memory_space<semaphore_mem>>
    tpu.wait_dma2 semaphore(%73 : memref<!tpu.dma_semaphore, #tpu.memory_space<semaphore_mem>>) src(%69 : memref<1x256xf32, #tpu.memory_space<any>>) dst(%71 : memref<1x256xf32, #tpu.memory_space<vmem>>)
    %c11_i32 = arith.constant 11 : i32
    %c0_i32_67 = arith.constant 0 : i32
    %c0_i32_68 = arith.constant 0 : i32
    %c0_i32_69 = arith.constant 0 : i32
    %74 = tpu.memref_slice %arg3[%c0_i32_68, %c0_i32_69] : memref<512x256xf32, #tpu.memory_space<any>> -> memref<1x256xf32, #tpu.memory_space<any>>
    %c0_i32_70 = arith.constant 0 : i32
    %c0_i32_71 = arith.constant 0 : i32
    %75 = tpu.memref_slice %arg5[%11, %c0_i32_67, %c0_i32_70, %c0_i32_71] : memref<2x2x8x256xf32, #tpu.memory_space<vmem>> -> memref<1x1x1x256xf32, #tpu.memory_space<vmem>>
    %76 = tpu.memref_squeeze %75 : memref<1x1x1x256xf32, #tpu.memory_space<vmem>> -> memref<1x256xf32, #tpu.memory_space<vmem>>
    %77 = tpu.memref_slice %arg6[%11] : memref<2x!tpu.dma_semaphore, #tpu.memory_space<semaphore_mem>> -> memref<1x!tpu.dma_semaphore, #tpu.memory_space<semaphore_mem>>
    %78 = tpu.memref_squeeze %77 : memref<1x!tpu.dma_semaphore, #tpu.memory_space<semaphore_mem>> -> memref<!tpu.dma_semaphore, #tpu.memory_space<semaphore_mem>>
    tpu.wait_dma2 semaphore(%78 : memref<!tpu.dma_semaphore, #tpu.memory_space<semaphore_mem>>) src(%74 : memref<1x256xf32, #tpu.memory_space<any>>) dst(%76 : memref<1x256xf32, #tpu.memory_space<vmem>>)
    %c12_i32 = arith.constant 12 : i32
    %c0_i32_72 = arith.constant 0 : i32
    %c0_i32_73 = arith.constant 0 : i32
    %c0_i32_74 = arith.constant 0 : i32
    %79 = tpu.memref_slice %arg3[%c0_i32_73, %c0_i32_74] : memref<512x256xf32, #tpu.memory_space<any>> -> memref<1x256xf32, #tpu.memory_space<any>>
    %c0_i32_75 = arith.constant 0 : i32
    %c0_i32_76 = arith.constant 0 : i32
    %80 = tpu.memref_slice %arg5[%11, %c0_i32_72, %c0_i32_75, %c0_i32_76] : memref<2x2x8x256xf32, #tpu.memory_space<vmem>> -> memref<1x1x1x256xf32, #tpu.memory_space<vmem>>
    %81 = tpu.memref_squeeze %80 : memref<1x1x1x256xf32, #tpu.memory_space<vmem>> -> memref<1x256xf32, #tpu.memory_space<vmem>>
    %82 = tpu.memref_slice %arg6[%11] : memref<2x!tpu.dma_semaphore, #tpu.memory_space<semaphore_mem>> -> memref<1x!tpu.dma_semaphore, #tpu.memory_space<semaphore_mem>>
    %83 = tpu.memref_squeeze %82 : memref<1x!tpu.dma_semaphore, #tpu.memory_space<semaphore_mem>> -> memref<!tpu.dma_semaphore, #tpu.memory_space<semaphore_mem>>
    tpu.wait_dma2 semaphore(%83 : memref<!tpu.dma_semaphore, #tpu.memory_space<semaphore_mem>>) src(%79 : memref<1x256xf32, #tpu.memory_space<any>>) dst(%81 : memref<1x256xf32, #tpu.memory_space<vmem>>)
    %c13_i32 = arith.constant 13 : i32
    %c0_i32_77 = arith.constant 0 : i32
    %c0_i32_78 = arith.constant 0 : i32
    %c0_i32_79 = arith.constant 0 : i32
    %84 = tpu.memref_slice %arg3[%c0_i32_78, %c0_i32_79] : memref<512x256xf32, #tpu.memory_space<any>> -> memref<1x256xf32, #tpu.memory_space<any>>
    %c0_i32_80 = arith.constant 0 : i32
    %c0_i32_81 = arith.constant 0 : i32
    %85 = tpu.memref_slice %arg5[%11, %c0_i32_77, %c0_i32_80, %c0_i32_81] : memref<2x2x8x256xf32, #tpu.memory_space<vmem>> -> memref<1x1x1x256xf32, #tpu.memory_space<vmem>>
    %86 = tpu.memref_squeeze %85 : memref<1x1x1x256xf32, #tpu.memory_space<vmem>> -> memref<1x256xf32, #tpu.memory_space<vmem>>
    %87 = tpu.memref_slice %arg6[%11] : memref<2x!tpu.dma_semaphore, #tpu.memory_space<semaphore_mem>> -> memref<1x!tpu.dma_semaphore, #tpu.memory_space<semaphore_mem>>
    %88 = tpu.memref_squeeze %87 : memref<1x!tpu.dma_semaphore, #tpu.memory_space<semaphore_mem>> -> memref<!tpu.dma_semaphore, #tpu.memory_space<semaphore_mem>>
    tpu.wait_dma2 semaphore(%88 : memref<!tpu.dma_semaphore, #tpu.memory_space<semaphore_mem>>) src(%84 : memref<1x256xf32, #tpu.memory_space<any>>) dst(%86 : memref<1x256xf32, #tpu.memory_space<vmem>>)
    %c14_i32 = arith.constant 14 : i32
    %c0_i32_82 = arith.constant 0 : i32
    %c0_i32_83 = arith.constant 0 : i32
    %c0_i32_84 = arith.constant 0 : i32
    %89 = tpu.memref_slice %arg3[%c0_i32_83, %c0_i32_84] : memref<512x256xf32, #tpu.memory_space<any>> -> memref<1x256xf32, #tpu.memory_space<any>>
    %c0_i32_85 = arith.constant 0 : i32
    %c0_i32_86 = arith.constant 0 : i32
    %90 = tpu.memref_slice %arg5[%11, %c0_i32_82, %c0_i32_85, %c0_i32_86] : memref<2x2x8x256xf32, #tpu.memory_space<vmem>> -> memref<1x1x1x256xf32, #tpu.memory_space<vmem>>
    %91 = tpu.memref_squeeze %90 : memref<1x1x1x256xf32, #tpu.memory_space<vmem>> -> memref<1x256xf32, #tpu.memory_space<vmem>>
    %92 = tpu.memref_slice %arg6[%11] : memref<2x!tpu.dma_semaphore, #tpu.memory_space<semaphore_mem>> -> memref<1x!tpu.dma_semaphore, #tpu.memory_space<semaphore_mem>>
    %93 = tpu.memref_squeeze %92 : memref<1x!tpu.dma_semaphore, #tpu.memory_space<semaphore_mem>> -> memref<!tpu.dma_semaphore, #tpu.memory_space<semaphore_mem>>
    tpu.wait_dma2 semaphore(%93 : memref<!tpu.dma_semaphore, #tpu.memory_space<semaphore_mem>>) src(%89 : memref<1x256xf32, #tpu.memory_space<any>>) dst(%91 : memref<1x256xf32, #tpu.memory_space<vmem>>)
    %c15_i32 = arith.constant 15 : i32
    %c0_i32_87 = arith.constant 0 : i32
    %c0_i32_88 = arith.constant 0 : i32
    %c0_i32_89 = arith.constant 0 : i32
    %94 = tpu.memref_slice %arg3[%c0_i32_88, %c0_i32_89] : memref<512x256xf32, #tpu.memory_space<any>> -> memref<1x256xf32, #tpu.memory_space<any>>
    %c0_i32_90 = arith.constant 0 : i32
    %c0_i32_91 = arith.constant 0 : i32
    %95 = tpu.memref_slice %arg5[%11, %c0_i32_87, %c0_i32_90, %c0_i32_91] : memref<2x2x8x256xf32, #tpu.memory_space<vmem>> -> memref<1x1x1x256xf32, #tpu.memory_space<vmem>>
    %96 = tpu.memref_squeeze %95 : memref<1x1x1x256xf32, #tpu.memory_space<vmem>> -> memref<1x256xf32, #tpu.memory_space<vmem>>
    %97 = tpu.memref_slice %arg6[%11] : memref<2x!tpu.dma_semaphore, #tpu.memory_space<semaphore_mem>> -> memref<1x!tpu.dma_semaphore, #tpu.memory_space<semaphore_mem>>
    %98 = tpu.memref_squeeze %97 : memref<1x!tpu.dma_semaphore, #tpu.memory_space<semaphore_mem>> -> memref<!tpu.dma_semaphore, #tpu.memory_space<semaphore_mem>>
    tpu.wait_dma2 semaphore(%98 : memref<!tpu.dma_semaphore, #tpu.memory_space<semaphore_mem>>) src(%94 : memref<1x256xf32, #tpu.memory_space<any>>) dst(%96 : memref<1x256xf32, #tpu.memory_space<vmem>>)
    %99 = arith.index_cast %11 : i32 to index
    %c0 = arith.constant 0 : index
    %c0_92 = arith.constant 0 : index
    %c0_93 = arith.constant 0 : index
    %100 = vector.load %arg5[%99, %c0, %c0_92, %c0_93] : memref<2x2x8x256xf32, #tpu.memory_space<vmem>>, vector<1x2x8x256xf32>
    %101 = vector.shape_cast %100 : vector<1x2x8x256xf32> to vector<2x8x256xf32>
    %c0_94 = arith.constant 0 : index
    %c0_95 = arith.constant 0 : index
    %c0_96 = arith.constant 0 : index
    %102 = vector.load %arg4[%c0_94, %c0_95, %c0_96] : memref<2x8x256xf32, #tpu.memory_space<vmem>>, vector<2x8x256xf32>
    tpu.vector_store %arg4[%c0_94, %c0_95, %c0_96], %101 {strides = array<i32>} : memref<2x8x256xf32, #tpu.memory_space<vmem>>, vector<2x8x256xf32>,
    return
  }
  func.func @transform_1(%arg0: i32, %arg1: i32, %arg2: memref<64xi32, #tpu.memory_space<smem>>) -> (i32, i32, i32) {
    %c2_i32 = arith.constant 2 : i32
    %0 = arith.muli %arg0, %c2_i32 : i32
    %1 = arith.addi %0, %arg1 : i32
    %c0_i32 = arith.constant 0 : i32
    %c0_i32_0 = arith.constant 0 : i32
    %c0_i32_1 = arith.constant 0 : i32
    return %1, %c0_i32, %c0_i32_0 : i32, i32, i32
  }
}

</mosaic_0001>

<bundles_post_ra>
// kernel: tpu_custom_call.1
= control target key start
LH: loop header
LB: loop body
LE: loop exit
PB: predicated region body
PF: predicated region fallthrough
CT: control target
= control target key end

     0   :  { %s2905_s0 = inlined_call_operand.hbm [shape: s32[64], index: 0, kind: input, shape index: {}]   ;;  %s2906_s1 = inlined_call_operand.hbm [shape: f32[512,256], index: 1, kind: input, shape index: {}]   ;;  %s2907_s2 = inlined_call_operand.hbm [shape: f32[8,8,256], index: 2, kind: output, shape index: {}]  }
   0x1   :  { %2921 = sst [smem:[#allocation53_spill]] %s2907_s2  ;;  %s1112_s11 = scalar_lea.hbm %s2905_s0, 16 }
   0x2   :  { %p1113_p0 = scmp.ne.s32.totalorder %s2905_s0, %s1112_s11  ;;  %p1116_p1 = scmp.lt.u32.totalorder %s1112_s11, %s2905_s0 }
   0x4   :  { %p1118_p2 = pnand %p1116_p1, %p1113_p0 }
   0x6   :  { %1121 = shalt.err (!%p1118_p2)  }
   0x7   :  { %s1966_s16 = smov [#allocation5]  }
   0x8   :  { %8 = dma.hbm_to_smem %s2905_s0, 16, %s1966_s16, [#allocation4] }
   0x9   :  { %1938 = dma.done.wait [#allocation4], 16 }
   0xa   :  { %1939 = vsyncadd [#allocation4], 4294967280 }
   0xb   :  { %10 = sfence }
   0xc   :  { %11 = vsyncpa [#allocation7], 0 }
   0xd   :  { %13 = vsyncpa [#allocation7 + $0x1], 0  ;;  %s2003_s19 = smov 0   ;;  %s2005_s20 = smov 0  }
   0xe   :  { %s2007_s21 = smov 0   ;;  %s2009_s22 = smov 0  }
   0xf   :  { %s2011_s23 = smov 0  }
  0x10 LB: > { %2922 = sst [smem:[#allocation43_spill]] %s1948_s19  ;;  %s25_s0 = sadd.s32 1, %s1956_s21  ;;  %s1964_s23 = sphi %s2011_s23, %s19_s23   ;;  %s1960_s22 = sphi %s2009_s22, %s2949_s22   ;;  %s1956_s21 = sphi %s2007_s21, %s2948_s21   ;;  %s1952_s20 = sphi %s2005_s20, %s2947_s20   ;;  %s1948_s19 = sphi %s2003_s19, %s2946_s19  }
  0x11   : > { %2923 = sst [smem:[#allocation44_spill]] %s1952_s20  ;;  %p2027_p3 = scmp.ge.s32.totalorder %s25_s0, 2 }
  0x12   : > { %2924 = sst [smem:[#allocation45_spill]] %s1964_s23  ;;  %s28_s25 = sadd.s32 1, %s1960_s22 }
  0x13   : > { %s932_s26 = sadd.s32 4294967295, %s1964_s23   ;;  %s933_s27 = sshll.u32 %s1960_s22, 1 }
  0x14   : > { %s2951_s25 = smov (!%p2027_p3, %s28_s25), %s1960_s22  ;;  %s2953_s0 = smov (%p2027_p3, %s25_s0), 0 }
  0x15   : > { %2926 = sst [smem:[#allocation46_spill]] %s2953_s0  ;;  %p30_p4 = scmp.ge.s32.totalorder %s2951_s25, 2 }
  0x16   : > { %p48_p5 = scmp.ne.s32.totalorder %s1952_s20, %s1948_s19  ;;  %p49_p6 = scmp.eq.s32.totalorder %s932_s26, 3 }
  0x17   : > { %s2955_s25 = smov (%p30_p4, %s2951_s25), 0  ;;  %s2043_s28 = sadd.s32 %s1956_s21, %s933_s27 }
  0x18   : > { %2927 = sst [smem:[#allocation47_spill]] %s2955_s25  ;;  %p2045_p7 = por %p49_p6, %p48_p5 }
  0x19   : > { %2928 = sst [smem:[#allocation48_spill]] %s2043_s28  ;;  %s934_s30 = sshll.u32 %s2955_s25, 1 }
  0x1a   : > { %s2929_s29 = scalar_select %p2045_p7, 1, 0 }
  0x1b   : > { %s35_s3 = sadd.s32 %s934_s30, %s2953_s0  ;;  %s39_s4 = sadd.s32 1, %s1952_s20 }
  0x1c   : > { %2930 = sst [smem:[#allocation49_spill]] %s2929_s29  ;;  %s36_s5 = ssub.s32 %s2043_s28, %s35_s3 }
  0x1d   : > { %p43_p8 = scmp.eq.s32.totalorder %s1964_s23, 3  ;;  %p37_p9 = scmp.eq.s32.totalorder %s36_s5, 0 }
  0x1e   : > { %p935_p10 = scmp.ne.s32.totalorder %s36_s5, 0  ;;  %p936_p12 = scmp.ge.s32.totalorder %s1964_s23, 4 }
  0x1f   : > { %s2055_s6 = scalar_select %p37_p9, %s1952_s20, %s39_s4  }
  0x20   : > { %p2057_p11 = por %p935_p10, %p43_p8  ;;  %58 = sbr.rel (%p936_p12) target bundleno = 881 (0x371), region = 12 }
  0x21   : > { %2931 = sst [smem:[#allocation50_spill]] %s2055_s6 }
  0x22   : > { %s2932_s7 = scalar_select %p2057_p11, 1, 0 }
  0x24   : > { %2933 = sst [smem:[#allocation51_spill]] %s2932_s7 }
  0x27   : > { %s2908_s8 = sand.u32 1, %s1952_s20   ;;  %s72_s10 = ssub.s32 0, %s1956_s21 }
  0x28   : > { %s937_s9 = sshll.u32 %s2908_s8, 5  ;;  %s939_s11 = smin.u32 %s1956_s21, %s72_s10 }
  0x29   : > { %s74_s12 = sand.u32 1, %s939_s11   ;;  %s2069_s14 = scalar_lea.vmem [#allocation6], %s937_s9 }
  0x2a   : > { %p941_p13 = scmp.lt.s32.totalorder %s74_s12, 0  ;;  %s81_s13 = sadd.s32 2, %s74_s12 }
  0x2b   : > { %2934 = sst [smem:[#allocation52_spill]] %s2069_s14  ;;  %p942_p0 = scmp.ne.s32.totalorder %s1956_s21, 0 }
  0x2c   : > { %s2957_s13 = smov (!%p941_p13, %s81_s13), %s74_s12  ;;  %s2073_s15 = sshll.u32 (!%p942_p0), %s2043_s28, 4 }
  0x2d   : > { %86 = sbr.rel (%p942_p0) target bundleno = 443 (0x1bb), region = 16  ;;  %s946_s16 = sshll.u32 (!%p942_p0), %s2957_s13, 5 }
  0x2e   : > { %s88_s17 = sld [smem:[#allocation5 + %s2073_s15]] (!%p942_p0)  ;;  %s2077_s18 = scalar_lea.vmem (!%p942_p0), [#allocation2], %s946_s16 }
  0x2f   : > { %s99_s22 = sshll.u32 (!%p942_p0), %s2077_s18, 4  ;;  %s103_s21 = sadd.s32 (!%p942_p0), 1, %s2073_s15  ;;  %s2080_s22 = int_to_ptr.vmem [resolvable:$true] %s99_s22 }
  0x30   : > { %s2083_s26 = sld [smem:[#allocation5 + %s103_s21]] (!%p942_p0)  ;;  %s691_s27 = scalar_lea.vmem (!%p942_p0), %s2077_s18, 1 [#allocation2] }
  0x31   : > { %s114_s30 = sshll.u32 (!%p942_p0), %s691_s27, 4  ;;  %s118_s3 = sadd.s32 (!%p942_p0), 2, %s2073_s15  ;;  %s2087_s30 = int_to_ptr.vmem [resolvable:$true] %s114_s30 }
  0x32   : > { %s2089_s11 = sld [smem:[#allocation5 + %s118_s3]] (!%p942_p0)  ;;  %s698_s16 = scalar_lea.vmem (!%p942_p0), %s2077_s18, 2 [#allocation2] }
  0x33   : > { %s2099_s27 = scalar_lea.sflag (!%p942_p0), [#allocation3], %s2957_s13  ;;  %s2106_s3 = scalar_lea.hbm (!%p942_p0), %s2906_s1, 16384 }
  0x34   : > { %s89_s4 = sshrl.u32 %s88_s17, 3  ;;  %s90_s5 = sand.u32 7, %s88_s17  }
  0x35   : > { %s944_s9 = sshll.u32 %s89_s4, 4 }
  0x36   : > { %s92_s10 = sadd.s32 %s944_s9, %s90_s5  ;;  %s105_s21 = sshrl.u32 %s2083_s26, 3 }
  0x37   : > { %s945_s12 = sshll.u32 %s92_s10, 4 }
  0x38   : > { %s2095_s0 = scalar_lea.hbm %s2906_s1, %s945_s12 }
  0x39   : > { %s1122_s17 = scalar_lea.hbm %s2095_s0, 32  ;;  %p1125_p2 = scmp.lt.u32.totalorder %s2095_s0, %s2906_s1 }
  0x3a   : > { %p1123_p1 = scmp.ne.s32.totalorder %s2095_s0, %s1122_s17  ;;  %p1126_p4 = scmp.lt.u32.totalorder %s2106_s3, %s1122_s17 }
  0x3b   : > { %p1128_p6 = scmp.lt.u32.totalorder %s1122_s17, %s2095_s0 }
  0x3c   : > { %p1127_p5 = por %p1126_p4, %p1125_p2 }
  0x3e   : > { %p1129_p8 = por %p1128_p6, %p1127_p5 }
  0x40   : > { %p1130_p9 = pnand %p1129_p8, %p1123_p1 }
  0x42   : > { %1133 = shalt.err (!%p1130_p9)  }
  0x43   : > { %s1134_s25 = scalar_lea.vmem %s2080_s22, 32  ;;  %s1967_s8 = smov [#allocation2]  }
  0x44   : > { %p1135_p10 = scmp.ne.s32.totalorder %s2080_s22, %s1134_s25  ;;  %s1136_s12 = sshll.u32 %s1967_s8, 4  ;;  %s2116_s12 = int_to_ptr.vmem [resolvable:$false] %s1136_s12 }
  0x45   : > { %s2119_s4 = scalar_lea.vmem %s2116_s12, 1024  ;;  %p1139_p12 = scmp.lt.s32.totalorder %s2080_s22, %s2116_s12 }
  0x46   : > { %p1140_p13 = scmp.lt.s32.totalorder %s2119_s4, %s1134_s25 }
  0x48   : > { %p1141_p0 = por %p1140_p13, %p1139_p12 }
  0x4a   : > { %p1142_p2 = pnand %p1141_p0, %p1135_p10 }
  0x4c   : > { %1145 = shalt.err (!%p1142_p2)  }
  0x4d   : > { %s1968_s17 = smov 128   ;;  %s1969_s5 = smov 1  }
  0x4e   : > { %102 = dma.hbm_to_vmem [thread:$0]  %s2095_s0, 32, %s2080_s22, %s2099_s27, %s1968_s17, %s1968_s17, %s1969_s5 }
  0x4f   : > { %s106_s9 = sand.u32 7, %s2083_s26   ;;  %s947_s10 = sshll.u32 %s105_s21, 4 }
  0x50   : > { %s108_s25 = sadd.s32 %s947_s10, %s106_s9  ;;  %s129_s8 = sshll.u32 %s698_s16, 4  ;;  %s130_s8 = int_to_ptr.vmem [resolvable:$true] %s129_s8 }
  0x51   : > { %s948_s6 = sshll.u32 %s108_s25, 4  ;;  %s120_s29 = sshrl.u32 %s2089_s11, 3 }
  0x52   : > { %s110_s2 = scalar_lea.hbm %s2906_s1, %s948_s6  ;;  %s121_s7 = sand.u32 7, %s2089_s11  }
  0x53   : > { %s1146_s20 = scalar_lea.hbm %s110_s2, 32  ;;  %p1149_p4 = scmp.lt.u32.totalorder %s110_s2, %s2906_s1 }
  0x54   : > { %p1147_p1 = scmp.ne.s32.totalorder %s110_s2, %s1146_s20  ;;  %p1150_p5 = scmp.lt.u32.totalorder %s2106_s3, %s1146_s20 }
  0x55   : > { %p1152_p8 = scmp.lt.u32.totalorder %s1146_s20, %s110_s2 }
  0x56   : > { %p1151_p6 = por %p1150_p5, %p1149_p4 }
  0x58   : > { %p1153_p9 = por %p1152_p8, %p1151_p6 }
  0x5a   : > { %p1154_p10 = pnand %p1153_p9, %p1147_p1 }
  0x5c   : > { %1157 = shalt.err (!%p1154_p10)  }
  0x5d   : > { %s1158_s19 = scalar_lea.vmem %s2087_s30, 32  ;;  %p1163_p13 = scmp.lt.s32.totalorder %s2087_s30, %s2116_s12 }
  0x5e   : > { %p1159_p12 = scmp.ne.s32.totalorder %s2087_s30, %s1158_s19  ;;  %p1164_p0 = scmp.lt.s32.totalorder %s2119_s4, %s1158_s19 }
  0x60   : > { %p1165_p2 = por %p1164_p0, %p1163_p13 }
  0x62   : > { %p1166_p7 = pnand %p1165_p2, %p1159_p12 }
  0x64   : > { %1169 = shalt.err (!%p1166_p7)  }
  0x65   : > { %117 = dma.hbm_to_vmem [thread:$0]  %s110_s2, 32, %s2087_s30, %s2099_s27, %s1968_s17, %s1968_s17, %s1969_s5 }
  0x66   : > { %s950_s20 = sshll.u32 %s120_s29, 4  ;;  %s133_s0 = sadd.s32 3, %s2073_s15 }
  0x67   : > { %s123_s23 = sadd.s32 %s950_s20, %s121_s7  ;;  %s2155_s6 = sld [smem:[#allocation5 + %s133_s0]] }
  0x68   : > { %s951_s28 = sshll.u32 %s123_s23, 4  ;;  %s705_s11 = scalar_lea.vmem %s2077_s18, 3 [#allocation2] }
  0x69   : > { %s125_s26 = scalar_lea.hbm %s2906_s1, %s951_s28 }
  0x6a   : > { %s1170_s16 = scalar_lea.hbm %s125_s26, 32  ;;  %p1173_p1 = scmp.lt.u32.totalorder %s125_s26, %s2906_s1 }
  0x6b   : > { %p1171_p7 = scmp.ne.s32.totalorder %s125_s26, %s1170_s16  ;;  %p1174_p4 = scmp.lt.u32.totalorder %s2106_s3, %s1170_s16 }
  0x6c   : > { %p1176_p6 = scmp.lt.u32.totalorder %s1170_s16, %s125_s26 }
  0x6d   : > { %p1175_p5 = por %p1174_p4, %p1173_p1 }
  0x6f   : > { %p1177_p8 = por %p1176_p6, %p1175_p5 }
  0x71   : > { %p1178_p9 = pnand %p1177_p8, %p1171_p7 }
  0x73   : > { %1181 = shalt.err (!%p1178_p9)  }
  0x74   : > { %s1182_s2 = scalar_lea.vmem %s130_s8, 32  ;;  %p1187_p12 = scmp.lt.s32.totalorder %s130_s8, %s2116_s12 }
  0x75   : > { %p1183_p10 = scmp.ne.s32.totalorder %s130_s8, %s1182_s2  ;;  %p1188_p13 = scmp.lt.s32.totalorder %s2119_s4, %s1182_s2 }
  0x77   : > { %p1189_p0 = por %p1188_p13, %p1187_p12 }
  0x79   : > { %p1190_p2 = pnand %p1189_p0, %p1183_p10 }
  0x7b   : > { %1193 = shalt.err (!%p1190_p2)  }
  0x7c   : > { %132 = dma.hbm_to_vmem [thread:$0]  %s125_s26, 32, %s130_s8, %s2099_s27, %s1968_s17, %s1968_s17, %s1969_s5 }
  0x7d   : > { %s144_s29 = sshll.u32 %s705_s11, 4  ;;  %s148_s7 = sadd.s32 4, %s2073_s15  ;;  %s2172_s29 = int_to_ptr.vmem [resolvable:$true] %s144_s29 }
  0x7e   : > { %s2174_s30 = sld [smem:[#allocation5 + %s148_s7]]  ;;  %s712_s10 = scalar_lea.vmem %s2077_s18, 4 [#allocation2] }
  0x7f   : > { %s163_s25 = sadd.s32 5, %s2073_s15  ;;  %s135_s19 = sshrl.u32 %s2155_s6, 3 }
  0x80   : > { %s136_s20 = sand.u32 7, %s2155_s6   ;;  %s953_s23 = sshll.u32 %s135_s19, 4 }
  0x81   : > { %s159_s0 = sshll.u32 %s712_s10, 4  ;;  %s138_s28 = sadd.s32 %s953_s23, %s136_s20  ;;  %s2180_s0 = int_to_ptr.vmem [resolvable:$true] %s159_s0 }
  0x82   : > { %s954_s14 = sshll.u32 %s138_s28, 4  ;;  %s2182_s22 = sld [smem:[#allocation5 + %s163_s25]] }
  0x83   : > { %s140_s11 = scalar_lea.hbm %s2906_s1, %s954_s14 }
  0x84   : > { %s150_s16 = sshrl.u32 %s2174_s30, 3  ;;  %s1194_s21 = scalar_lea.hbm %s140_s11, 32 }
  0x85   : > { %p1195_p7 = scmp.ne.s32.totalorder %s140_s11, %s1194_s21  ;;  %p1197_p1 = scmp.lt.u32.totalorder %s140_s11, %s2906_s1 }
  0x86   : > { %p1198_p4 = scmp.lt.u32.totalorder %s2106_s3, %s1194_s21  ;;  %p1200_p6 = scmp.lt.u32.totalorder %s1194_s21, %s140_s11 }
  0x88   : > { %p1199_p5 = por %p1198_p4, %p1197_p1 }
  0x8a   : > { %p1201_p8 = por %p1200_p6, %p1199_p5 }
  0x8c   : > { %p1202_p9 = pnand %p1201_p8, %p1195_p7 }
  0x8e   : > { %1205 = shalt.err (!%p1202_p9)  }
  0x8f   : > { %s1206_s6 = scalar_lea.vmem %s2172_s29, 32  ;;  %p1211_p12 = scmp.lt.s32.totalorder %s2172_s29, %s2116_s12 }
  0x90   : > { %p1207_p10 = scmp.ne.s32.totalorder %s2172_s29, %s1206_s6  ;;  %p1212_p13 = scmp.lt.s32.totalorder %s2119_s4, %s1206_s6 }
  0x92   : > { %p1213_p0 = por %p1212_p13, %p1211_p12 }
  0x94   : > { %p1214_p2 = pnand %p1213_p0, %p1207_p10 }
  0x96   : > { %1217 = shalt.err (!%p1214_p2)  }
  0x97   : > { %147 = dma.hbm_to_vmem [thread:$0]  %s140_s11, 32, %s2172_s29, %s2099_s27, %s1968_s17, %s1968_s17, %s1969_s5 }
  0x98   : > { %s151_s7 = sand.u32 7, %s2174_s30   ;;  %s956_s10 = sshll.u32 %s150_s16, 4 }
  0x99   : > { %s153_s25 = sadd.s32 %s956_s10, %s151_s7  ;;  %s719_s19 = scalar_lea.vmem %s2077_s18, 5 [#allocation2] }
  0x9a   : > { %s957_s20 = sshll.u32 %s153_s25, 4  ;;  %s174_s23 = sshll.u32 %s719_s19, 4  ;;  %s175_s23 = int_to_ptr.vmem [resolvable:$true] %s174_s23 }
  0x9b   : > { %s155_s8 = scalar_lea.hbm %s2906_s1, %s957_s20  ;;  %s165_s26 = sshrl.u32 %s2182_s22, 3 }
  0x9c   : > { %s1218_s21 = scalar_lea.hbm %s155_s8, 32  ;;  %p1221_p1 = scmp.lt.u32.totalorder %s155_s8, %s2906_s1 }
  0x9d   : > { %p1219_p7 = scmp.ne.s32.totalorder %s155_s8, %s1218_s21  ;;  %p1222_p4 = scmp.lt.u32.totalorder %s2106_s3, %s1218_s21 }
  0x9e   : > { %p1224_p6 = scmp.lt.u32.totalorder %s1218_s21, %s155_s8 }
  0x9f   : > { %p1223_p5 = por %p1222_p4, %p1221_p1 }
  0xa1   : > { %p1225_p8 = por %p1224_p6, %p1223_p5 }
  0xa3   : > { %p1226_p9 = pnand %p1225_p8, %p1219_p7 }
  0xa5   : > { %1229 = shalt.err (!%p1226_p9)  }
  0xa6   : > { %s1230_s29 = scalar_lea.vmem %s2180_s0, 32  ;;  %p1235_p12 = scmp.lt.s32.totalorder %s2180_s0, %s2116_s12 }
  0xa7   : > { %p1231_p10 = scmp.ne.s32.totalorder %s2180_s0, %s1230_s29  ;;  %p1236_p13 = scmp.lt.s32.totalorder %s2119_s4, %s1230_s29 }
  0xa9   : > { %p1237_p0 = por %p1236_p13, %p1235_p12 }
  0xab   : > { %p1238_p2 = pnand %p1237_p0, %p1231_p10 }
  0xad   : > { %1241 = shalt.err (!%p1238_p2)  }
  0xae   : > { %162 = dma.hbm_to_vmem [thread:$0]  %s155_s8, 32, %s2180_s0, %s2099_s27, %s1968_s17, %s1968_s17, %s1969_s5 }
  0xaf   : > { %s166_s30 = sand.u32 7, %s2182_s22   ;;  %s959_s11 = sshll.u32 %s165_s26, 4 }
  0xb0   : > { %s168_s16 = sadd.s32 %s959_s11, %s166_s30  ;;  %s178_s7 = sadd.s32 6, %s2073_s15 }
  0xb1   : > { %s960_s6 = sshll.u32 %s168_s16, 4  ;;  %s2227_s20 = sld [smem:[#allocation5 + %s178_s7]] }
  0xb2   : > { %s170_s19 = scalar_lea.hbm %s2906_s1, %s960_s6 }
  0xb3   : > { %s1242_s28 = scalar_lea.hbm %s170_s19, 32  ;;  %p1245_p1 = scmp.lt.u32.totalorder %s170_s19, %s2906_s1 }
  0xb4   : > { %p1243_p7 = scmp.ne.s32.totalorder %s170_s19, %s1242_s28  ;;  %p1246_p4 = scmp.lt.u32.totalorder %s2106_s3, %s1242_s28 }
  0xb5   : > { %p1248_p6 = scmp.lt.u32.totalorder %s1242_s28, %s170_s19 }
  0xb6   : > { %p1247_p5 = por %p1246_p4, %p1245_p1 }
  0xb8   : > { %p1249_p8 = por %p1248_p6, %p1247_p5 }
  0xba   : > { %p1250_p9 = pnand %p1249_p8, %p1243_p7 }
  0xbc   : > { %1253 = shalt.err (!%p1250_p9)  }
  0xbd   : > { %s1254_s0 = scalar_lea.vmem %s175_s23, 32  ;;  %p1259_p12 = scmp.lt.s32.totalorder %s175_s23, %s2116_s12 }
  0xbe   : > { %p1255_p10 = scmp.ne.s32.totalorder %s175_s23, %s1254_s0  ;;  %p1260_p13 = scmp.lt.s32.totalorder %s2119_s4, %s1254_s0 }
  0xc0   : > { %p1261_p0 = por %p1260_p13, %p1259_p12 }
  0xc2   : > { %p1262_p2 = pnand %p1261_p0, %p1255_p10 }
  0xc4   : > { %1265 = shalt.err (!%p1262_p2)  }
  0xc5   : > { %177 = dma.hbm_to_vmem [thread:$0]  %s170_s19, 32, %s175_s23, %s2099_s27, %s1968_s17, %s1968_s17, %s1969_s5 }
  0xc6   : > { %s726_s22 = scalar_lea.vmem %s2077_s18, 6 [#allocation2]  ;;  %s193_s8 = sadd.s32 7, %s2073_s15 }
  0xc7   : > { %s189_s26 = sshll.u32 %s726_s22, 4  ;;  %s2241_s9 = sld [smem:[#allocation5 + %s193_s8]]  ;;  %s2243_s26 = int_to_ptr.vmem [resolvable:$true] %s189_s26 }
  0xc8   : > { %s733_s2 = scalar_lea.vmem %s2077_s18, 7 [#allocation2]  ;;  %s208_s30 = sadd.s32 8, %s2073_s15 }
  0xc9   : > { %s204_s29 = sshll.u32 %s733_s2, 4  ;;  %s180_s11 = sshrl.u32 %s2227_s20, 3  ;;  %s2249_s29 = int_to_ptr.vmem [resolvable:$true] %s204_s29 }
  0xca   : > { %s181_s16 = sand.u32 7, %s2227_s20   ;;  %s962_s6 = sshll.u32 %s180_s11, 4 }
  0xcb   : > { %s183_s7 = sadd.s32 %s962_s6, %s181_s16  ;;  %s2251_s23 = sld [smem:[#allocation5 + %s208_s30]] }
  0xcc   : > { %s963_s10 = sshll.u32 %s183_s7, 4 }
  0xcd   : > { %s195_s25 = sshrl.u32 %s2241_s9, 3  ;;  %s185_s14 = scalar_lea.hbm %s2906_s1, %s963_s10 }
  0xce   : > { %s196_s21 = sand.u32 7, %s2241_s9   ;;  %s1266_s0 = scalar_lea.hbm %s185_s14, 32 }
  0xcf   : > { %p1267_p7 = scmp.ne.s32.totalorder %s185_s14, %s1266_s0  ;;  %p1269_p1 = scmp.lt.u32.totalorder %s185_s14, %s2906_s1 }
  0xd0   : > { %p1270_p4 = scmp.lt.u32.totalorder %s2106_s3, %s1266_s0  ;;  %p1272_p6 = scmp.lt.u32.totalorder %s1266_s0, %s185_s14 }
  0xd2   : > { %p1271_p5 = por %p1270_p4, %p1269_p1 }
  0xd4   : > { %p1273_p8 = por %p1272_p6, %p1271_p5 }
  0xd6   : > { %p1274_p9 = pnand %p1273_p8, %p1267_p7 }
  0xd8   : > { %1277 = shalt.err (!%p1274_p9)  }
  0xd9   : > { %s1278_s20 = scalar_lea.vmem %s2243_s26, 32  ;;  %p1283_p12 = scmp.lt.s32.totalorder %s2243_s26, %s2116_s12 }
  0xda   : > { %p1279_p10 = scmp.ne.s32.totalorder %s2243_s26, %s1278_s20  ;;  %p1284_p13 = scmp.lt.s32.totalorder %s2119_s4, %s1278_s20 }
  0xdc   : > { %p1285_p0 = por %p1284_p13, %p1283_p12 }
  0xde   : > { %p1286_p2 = pnand %p1285_p0, %p1279_p10 }
  0xe0   : > { %1289 = shalt.err (!%p1286_p2)  }
  0xe1   : > { %192 = dma.hbm_to_vmem [thread:$0]  %s185_s14, 32, %s2243_s26, %s2099_s27, %s1968_s17, %s1968_s17, %s1969_s5 }
  0xe2   : > { %s965_s9 = sshll.u32 %s195_s25, 4  ;;  %s740_s2 = scalar_lea.vmem %s2077_s18, 16 [#allocation2] }
  0xe3   : > { %s198_s30 = sadd.s32 %s965_s9, %s196_s21  ;;  %s219_s11 = sshll.u32 %s740_s2, 4  ;;  %s220_s11 = int_to_ptr.vmem [resolvable:$true] %s219_s11 }
  0xe4   : > { %s966_s16 = sshll.u32 %s198_s30, 4  ;;  %s210_s6 = sshrl.u32 %s2251_s23, 3 }
  0xe5   : > { %s200_s19 = scalar_lea.hbm %s2906_s1, %s966_s16  ;;  %s211_s28 = sand.u32 7, %s2251_s23  }
  0xe6   : > { %s1290_s0 = scalar_lea.hbm %s200_s19, 32  ;;  %p1293_p1 = scmp.lt.u32.totalorder %s200_s19, %s2906_s1 }
  0xe7   : > { %p1291_p7 = scmp.ne.s32.totalorder %s200_s19, %s1290_s0  ;;  %p1294_p4 = scmp.lt.u32.totalorder %s2106_s3, %s1290_s0 }
  0xe8   : > { %p1296_p6 = scmp.lt.u32.totalorder %s1290_s0, %s200_s19 }
  0xe9   : > { %p1295_p5 = por %p1294_p4, %p1293_p1 }
  0xeb   : > { %p1297_p8 = por %p1296_p6, %p1295_p5 }
  0xed   : > { %p1298_p9 = pnand %p1297_p8, %p1291_p7 }
  0xef   : > { %1301 = shalt.err (!%p1298_p9)  }
  0xf0   : > { %s1302_s26 = scalar_lea.vmem %s2249_s29, 32  ;;  %p1307_p12 = scmp.lt.s32.totalorder %s2249_s29, %s2116_s12 }
  0xf1   : > { %p1303_p10 = scmp.ne.s32.totalorder %s2249_s29, %s1302_s26  ;;  %p1308_p13 = scmp.lt.s32.totalorder %s2119_s4, %s1302_s26 }
  0xf3   : > { %p1309_p0 = por %p1308_p13, %p1307_p12 }
  0xf5   : > { %p1310_p2 = pnand %p1309_p0, %p1303_p10 }
  0xf7   : > { %1313 = shalt.err (!%p1310_p2)  }
  0xf8   : > { %207 = dma.hbm_to_vmem [thread:$0]  %s200_s19, 32, %s2249_s29, %s2099_s27, %s1968_s17, %s1968_s17, %s1969_s5 }
  0xf9   : > { %s968_s23 = sshll.u32 %s210_s6, 4  ;;  %s223_s14 = sadd.s32 9, %s2073_s15 }
  0xfa   : > { %s213_s25 = sadd.s32 %s968_s23, %s211_s28  ;;  %s2293_s20 = sld [smem:[#allocation5 + %s223_s14]] }
  0xfb   : > { %s969_s21 = sshll.u32 %s213_s25, 4  ;;  %s747_s16 = scalar_lea.vmem %s2077_s18, 17 [#allocation2] }
  0xfc   : > { %s215_s30 = scalar_lea.hbm %s2906_s1, %s969_s21 }
  0xfd   : > { %s1314_s7 = scalar_lea.hbm %s215_s30, 32  ;;  %p1317_p1 = scmp.lt.u32.totalorder %s215_s30, %s2906_s1 }
  0xfe   : > { %p1315_p7 = scmp.ne.s32.totalorder %s215_s30, %s1314_s7  ;;  %p1318_p4 = scmp.lt.u32.totalorder %s2106_s3, %s1314_s7 }
  0xff   : > { %p1320_p6 = scmp.lt.u32.totalorder %s1314_s7, %s215_s30 }
 0x100   : > { %p1319_p5 = por %p1318_p4, %p1317_p1 }
 0x102   : > { %p1321_p8 = por %p1320_p6, %p1319_p5 }
 0x104   : > { %p1322_p9 = pnand %p1321_p8, %p1315_p7 }
 0x106   : > { %1325 = shalt.err (!%p1322_p9)  }
 0x107   : > { %s1326_s29 = scalar_lea.vmem %s220_s11, 32  ;;  %p1331_p12 = scmp.lt.s32.totalorder %s220_s11, %s2116_s12 }
 0x108   : > { %p1327_p10 = scmp.ne.s32.totalorder %s220_s11, %s1326_s29  ;;  %p1332_p13 = scmp.lt.s32.totalorder %s2119_s4, %s1326_s29 }
 0x10a   : > { %p1333_p0 = por %p1332_p13, %p1331_p12 }
 0x10c   : > { %p1334_p2 = pnand %p1333_p0, %p1327_p10 }
 0x10e   : > { %1337 = shalt.err (!%p1334_p2)  }
 0x10f   : > { %222 = dma.hbm_to_vmem [thread:$0]  %s215_s30, 32, %s220_s11, %s2099_s27, %s1968_s17, %s1968_s17, %s1969_s5 }
 0x110   : > { %s234_s6 = sshll.u32 %s747_s16, 4  ;;  %s238_s19 = sadd.s32 10, %s2073_s15  ;;  %s2310_s6 = int_to_ptr.vmem [resolvable:$true] %s234_s6 }
 0x111   : > { %s2312_s28 = sld [smem:[#allocation5 + %s238_s19]]  ;;  %s754_s22 = scalar_lea.vmem %s2077_s18, 18 [#allocation2] }
 0x112   : > { %s253_s8 = sadd.s32 11, %s2073_s15  ;;  %s225_s26 = sshrl.u32 %s2293_s20, 3 }
 0x113   : > { %s226_s23 = sand.u32 7, %s2293_s20   ;;  %s971_s25 = sshll.u32 %s225_s26, 4 }
 0x114   : > { %s249_s14 = sshll.u32 %s754_s22, 4  ;;  %s228_s21 = sadd.s32 %s971_s25, %s226_s23  ;;  %s2318_s14 = int_to_ptr.vmem [resolvable:$true] %s249_s14 }
 0x115   : > { %s972_s9 = sshll.u32 %s228_s21, 4  ;;  %s2320_s2 = sld [smem:[#allocation5 + %s253_s8]] }
 0x116   : > { %s230_s16 = scalar_lea.hbm %s2906_s1, %s972_s9 }
 0x117   : > { %s240_s7 = sshrl.u32 %s2312_s28, 3  ;;  %s1338_s10 = scalar_lea.hbm %s230_s16, 32 }
 0x118   : > { %p1339_p7 = scmp.ne.s32.totalorder %s230_s16, %s1338_s10  ;;  %p1341_p1 = scmp.lt.u32.totalorder %s230_s16, %s2906_s1 }
 0x119   : > { %p1342_p4 = scmp.lt.u32.totalorder %s2106_s3, %s1338_s10  ;;  %p1344_p6 = scmp.lt.u32.totalorder %s1338_s10, %s230_s16 }
 0x11b   : > { %p1343_p5 = por %p1342_p4, %p1341_p1 }
 0x11d   : > { %p1345_p8 = por %p1344_p6, %p1343_p5 }
 0x11f   : > { %p1346_p9 = pnand %p1345_p8, %p1339_p7 }
 0x121   : > { %1349 = shalt.err (!%p1346_p9)  }
 0x122   : > { %s1350_s20 = scalar_lea.vmem %s2310_s6, 32  ;;  %p1355_p12 = scmp.lt.s32.totalorder %s2310_s6, %s2116_s12 }
 0x123   : > { %p1351_p10 = scmp.ne.s32.totalorder %s2310_s6, %s1350_s20  ;;  %p1356_p13 = scmp.lt.s32.totalorder %s2119_s4, %s1350_s20 }
 0x125   : > { %p1357_p0 = por %p1356_p13, %p1355_p12 }
 0x127   : > { %p1358_p2 = pnand %p1357_p0, %p1351_p10 }
 0x129   : > { %1361 = shalt.err (!%p1358_p2)  }
 0x12a   : > { %237 = dma.hbm_to_vmem [thread:$0]  %s230_s16, 32, %s2310_s6, %s2099_s27, %s1968_s17, %s1968_s17, %s1969_s5 }
 0x12b   : > { %s241_s19 = sand.u32 7, %s2312_s28   ;;  %s974_s22 = sshll.u32 %s240_s7, 4 }
 0x12c   : > { %s243_s8 = sadd.s32 %s974_s22, %s241_s19  ;;  %s761_s26 = scalar_lea.vmem %s2077_s18, 19 [#allocation2] }
 0x12d   : > { %s975_s23 = sshll.u32 %s243_s8, 4  ;;  %s264_s25 = sshll.u32 %s761_s26, 4  ;;  %s265_s25 = int_to_ptr.vmem [resolvable:$true] %s264_s25 }
 0x12e   : > { %s245_s11 = scalar_lea.hbm %s2906_s1, %s975_s23  ;;  %s255_s30 = sshrl.u32 %s2320_s2, 3 }
 0x12f   : > { %s1362_s10 = scalar_lea.hbm %s245_s11, 32  ;;  %p1365_p1 = scmp.lt.u32.totalorder %s245_s11, %s2906_s1 }
 0x130   : > { %p1363_p7 = scmp.ne.s32.totalorder %s245_s11, %s1362_s10  ;;  %p1366_p4 = scmp.lt.u32.totalorder %s2106_s3, %s1362_s10 }
 0x131   : > { %p1368_p6 = scmp.lt.u32.totalorder %s1362_s10, %s245_s11 }
 0x132   : > { %p1367_p5 = por %p1366_p4, %p1365_p1 }
 0x134   : > { %p1369_p8 = por %p1368_p6, %p1367_p5 }
 0x136   : > { %p1370_p9 = pnand %p1369_p8, %p1363_p7 }
 0x138   : > { %1373 = shalt.err (!%p1370_p9)  }
 0x139   : > { %s1374_s6 = scalar_lea.vmem %s2318_s14, 32  ;;  %p1379_p12 = scmp.lt.s32.totalorder %s2318_s14, %s2116_s12 }
 0x13a   : > { %p1375_p10 = scmp.ne.s32.totalorder %s2318_s14, %s1374_s6  ;;  %p1380_p13 = scmp.lt.s32.totalorder %s2119_s4, %s1374_s6 }
 0x13c   : > { %p1381_p0 = por %p1380_p13, %p1379_p12 }
 0x13e   : > { %p1382_p2 = pnand %p1381_p0, %p1375_p10 }
 0x140   : > { %1385 = shalt.err (!%p1382_p2)  }
 0x141   : > { %252 = dma.hbm_to_vmem [thread:$0]  %s245_s11, 32, %s2318_s14, %s2099_s27, %s1968_s17, %s1968_s17, %s1969_s5 }
 0x142   : > { %s256_s28 = sand.u32 7, %s2320_s2   ;;  %s977_s16 = sshll.u32 %s255_s30, 4 }
 0x143   : > { %s258_s7 = sadd.s32 %s977_s16, %s256_s28  ;;  %s268_s19 = sadd.s32 12, %s2073_s15 }
 0x144   : > { %s978_s20 = sshll.u32 %s258_s7, 4  ;;  %s2365_s23 = sld [smem:[#allocation5 + %s268_s19]] }
 0x145   : > { %s260_s26 = scalar_lea.hbm %s2906_s1, %s978_s20 }
 0x146   : > { %s1386_s21 = scalar_lea.hbm %s260_s26, 32  ;;  %p1389_p1 = scmp.lt.u32.totalorder %s260_s26, %s2906_s1 }
 0x147   : > { %p1387_p7 = scmp.ne.s32.totalorder %s260_s26, %s1386_s21  ;;  %p1390_p4 = scmp.lt.u32.totalorder %s2106_s3, %s1386_s21 }
 0x148   : > { %p1392_p6 = scmp.lt.u32.totalorder %s1386_s21, %s260_s26 }
 0x149   : > { %p1391_p5 = por %p1390_p4, %p1389_p1 }
 0x14b   : > { %p1393_p8 = por %p1392_p6, %p1391_p5 }
 0x14d   : > { %p1394_p9 = pnand %p1393_p8, %p1387_p7 }
 0x14f   : > { %1397 = shalt.err (!%p1394_p9)  }
 0x150   : > { %s1398_s14 = scalar_lea.vmem %s265_s25, 32  ;;  %p1403_p12 = scmp.lt.s32.totalorder %s265_s25, %s2116_s12 }
 0x151   : > { %p1399_p10 = scmp.ne.s32.totalorder %s265_s25, %s1398_s14  ;;  %p1404_p13 = scmp.lt.s32.totalorder %s2119_s4, %s1398_s14 }
 0x153   : > { %p1405_p0 = por %p1404_p13, %p1403_p12 }
 0x155   : > { %p1406_p2 = pnand %p1405_p0, %p1399_p10 }
 0x157   : > { %1409 = shalt.err (!%p1406_p2)  }
 0x158   : > { %267 = dma.hbm_to_vmem [thread:$0]  %s260_s26, 32, %s265_s25, %s2099_s27, %s1968_s17, %s1968_s17, %s1969_s5 }
 0x159   : > { %s768_s2 = scalar_lea.vmem %s2077_s18, 20 [#allocation2]  ;;  %s283_s11 = sadd.s32 13, %s2073_s15 }
 0x15a   : > { %s279_s30 = sshll.u32 %s768_s2, 4  ;;  %s2379_s0 = sld [smem:[#allocation5 + %s283_s11]]  ;;  %s2381_s30 = int_to_ptr.vmem [resolvable:$true] %s279_s30 }
 0x15b   : > { %s775_s29 = scalar_lea.vmem %s2077_s18, 21 [#allocation2]  ;;  %s298_s28 = sadd.s32 14, %s2073_s15 }
 0x15c   : > { %s294_s6 = sshll.u32 %s775_s29, 4  ;;  %s270_s16 = sshrl.u32 %s2365_s23, 3  ;;  %s2387_s6 = int_to_ptr.vmem [resolvable:$true] %s294_s6 }
 0x15d   : > { %s271_s7 = sand.u32 7, %s2365_s23   ;;  %s980_s20 = sshll.u32 %s270_s16, 4 }
 0x15e   : > { %s273_s19 = sadd.s32 %s980_s20, %s271_s7  ;;  %s2389_s25 = sld [smem:[#allocation5 + %s298_s28]] }
 0x15f   : > { %s981_s22 = sshll.u32 %s273_s19, 4 }
 0x160   : > { %s285_s8 = sshrl.u32 %s2379_s0, 3  ;;  %s275_s9 = scalar_lea.hbm %s2906_s1, %s981_s22 }
 0x161   : > { %s286_s10 = sand.u32 7, %s2379_s0   ;;  %s1410_s14 = scalar_lea.hbm %s275_s9, 32 }
 0x162   : > { %p1411_p7 = scmp.ne.s32.totalorder %s275_s9, %s1410_s14  ;;  %p1413_p1 = scmp.lt.u32.totalorder %s275_s9, %s2906_s1 }
 0x163   : > { %p1414_p4 = scmp.lt.u32.totalorder %s2106_s3, %s1410_s14  ;;  %p1416_p6 = scmp.lt.u32.totalorder %s1410_s14, %s275_s9 }
 0x165   : > { %p1415_p5 = por %p1414_p4, %p1413_p1 }
 0x167   : > { %p1417_p8 = por %p1416_p6, %p1415_p5 }
 0x169   : > { %p1418_p9 = pnand %p1417_p8, %p1411_p7 }
 0x16b   : > { %1421 = shalt.err (!%p1418_p9)  }
 0x16c   : > { %s1422_s23 = scalar_lea.vmem %s2381_s30, 32  ;;  %p1427_p12 = scmp.lt.s32.totalorder %s2381_s30, %s2116_s12 }
 0x16d   : > { %p1423_p10 = scmp.ne.s32.totalorder %s2381_s30, %s1422_s23  ;;  %p1428_p13 = scmp.lt.s32.totalorder %s2119_s4, %s1422_s23 }
 0x16f   : > { %p1429_p0 = por %p1428_p13, %p1427_p12 }
 0x171   : > { %p1430_p2 = pnand %p1429_p0, %p1423_p10 }
 0x173   : > { %1433 = shalt.err (!%p1430_p2)  }
 0x174   : > { %282 = dma.hbm_to_vmem [thread:$0]  %s275_s9, 32, %s2381_s30, %s2099_s27, %s1968_s17, %s1968_s17, %s1969_s5 }
 0x175   : > { %s983_s0 = sshll.u32 %s285_s8, 4  ;;  %s782_s29 = scalar_lea.vmem %s2077_s18, 22 [#allocation2] }
 0x176   : > { %s288_s28 = sadd.s32 %s983_s0, %s286_s10  ;;  %s309_s16 = sshll.u32 %s782_s29, 4  ;;  %s310_s16 = int_to_ptr.vmem [resolvable:$true] %s309_s16 }
 0x177   : > { %s984_s7 = sshll.u32 %s288_s28, 4  ;;  %s300_s20 = sshrl.u32 %s2389_s25, 3 }
 0x178   : > { %s290_s26 = scalar_lea.hbm %s2906_s1, %s984_s7  ;;  %s301_s21 = sand.u32 7, %s2389_s25  }
 0x179   : > { %s1434_s14 = scalar_lea.hbm %s290_s26, 32  ;;  %p1437_p1 = scmp.lt.u32.totalorder %s290_s26, %s2906_s1 }
 0x17a   : > { %p1435_p7 = scmp.ne.s32.totalorder %s290_s26, %s1434_s14  ;;  %p1438_p4 = scmp.lt.u32.totalorder %s2106_s3, %s1434_s14 }
 0x17b   : > { %p1440_p6 = scmp.lt.u32.totalorder %s1434_s14, %s290_s26 }
 0x17c   : > { %p1439_p5 = por %p1438_p4, %p1437_p1 }
 0x17e   : > { %p1441_p8 = por %p1440_p6, %p1439_p5 }
 0x180   : > { %p1442_p9 = pnand %p1441_p8, %p1435_p7 }
 0x182   : > { %1445 = shalt.err (!%p1442_p9)  }
 0x183   : > { %s1446_s30 = scalar_lea.vmem %s2387_s6, 32  ;;  %p1451_p12 = scmp.lt.s32.totalorder %s2387_s6, %s2116_s12 }
 0x184   : > { %p1447_p10 = scmp.ne.s32.totalorder %s2387_s6, %s1446_s30  ;;  %p1452_p13 = scmp.lt.s32.totalorder %s2119_s4, %s1446_s30 }
 0x186   : > { %p1453_p0 = por %p1452_p13, %p1451_p12 }
 0x188   : > { %p1454_p2 = pnand %p1453_p0, %p1447_p10 }
 0x18a   : > { %1457 = shalt.err (!%p1454_p2)  }
 0x18b   : > { %297 = dma.hbm_to_vmem [thread:$0]  %s290_s26, 32, %s2387_s6, %s2099_s27, %s1968_s17, %s1968_s17, %s1969_s5 }
 0x18c   : > { %s986_s25 = sshll.u32 %s300_s20, 4  ;;  %s313_s9 = sadd.s32 15, %s2073_s15 }
 0x18d   : > { %s303_s8 = sadd.s32 %s986_s25, %s301_s21  ;;  %s314_s23 = sld [smem:[#allocation5 + %s313_s9]] }
 0x18e   : > { %s987_s10 = sshll.u32 %s303_s8, 4  ;;  %s789_s7 = scalar_lea.vmem %s2077_s18, 23 [#allocation2] }
 0x18f   : > { %s305_s28 = scalar_lea.hbm %s2906_s1, %s987_s10 }
 0x190   : > { %s1458_s19 = scalar_lea.hbm %s305_s28, 32  ;;  %p1461_p1 = scmp.lt.u32.totalorder %s305_s28, %s2906_s1 }
 0x191   : > { %p1459_p7 = scmp.ne.s32.totalorder %s305_s28, %s1458_s19  ;;  %p1462_p4 = scmp.lt.u32.totalorder %s2106_s3, %s1458_s19 }
 0x192   : > { %p1464_p6 = scmp.lt.u32.totalorder %s1458_s19, %s305_s28 }
 0x193   : > { %p1463_p5 = por %p1462_p4, %p1461_p1 }
 0x195   : > { %p1465_p8 = por %p1464_p6, %p1463_p5 }
 0x197   : > { %p1466_p9 = pnand %p1465_p8, %p1459_p7 }
 0x199   : > { %1469 = shalt.err (!%p1466_p9)  }
 0x19a   : > { %s1470_s15 = scalar_lea.vmem %s310_s16, 32  ;;  %p1475_p12 = scmp.lt.s32.totalorder %s310_s16, %s2116_s12 }
 0x19b   : > { %p1471_p10 = scmp.ne.s32.totalorder %s310_s16, %s1470_s15  ;;  %p1476_p13 = scmp.lt.s32.totalorder %s2119_s4, %s1470_s15 }
 0x19d   : > { %p1477_p0 = por %p1476_p13, %p1475_p12 }
 0x19f   : > { %p1478_p2 = pnand %p1477_p0, %p1471_p10 }
 0x1a1   : > { %1481 = shalt.err (!%p1478_p2)  }
 0x1a2   : > { %312 = dma.hbm_to_vmem [thread:$0]  %s305_s28, 32, %s310_s16, %s2099_s27, %s1968_s17, %s1968_s17, %s1969_s5 }
 0x1a3   : > { %s324_s18 = sshll.u32 %s789_s7, 4  ;;  %s315_s6 = sshrl.u32 %s314_s23, 3  ;;  %s325_s18 = int_to_ptr.vmem [resolvable:$true] %s324_s18 }
 0x1a4   : > { %s316_s20 = sand.u32 7, %s314_s23   ;;  %s989_s26 = sshll.u32 %s315_s6, 4 }
 0x1a5   : > { %s318_s21 = sadd.s32 %s989_s26, %s316_s20 }
 0x1a6   : > { %s990_s2 = sshll.u32 %s318_s21, 4 }
 0x1a7   : > { %s320_s25 = scalar_lea.hbm %s2906_s1, %s990_s2 }
 0x1a8   : > { %s1482_s8 = scalar_lea.hbm %s320_s25, 32  ;;  %p1485_p1 = scmp.lt.u32.totalorder %s320_s25, %s2906_s1 }
 0x1a9   : > { %p1483_p7 = scmp.ne.s32.totalorder %s320_s25, %s1482_s8  ;;  %p1486_p4 = scmp.lt.u32.totalorder %s2106_s3, %s1482_s8 }
 0x1aa   : > { %p1488_p6 = scmp.lt.u32.totalorder %s1482_s8, %s320_s25 }
 0x1ab   : > { %p1487_p5 = por %p1486_p4, %p1485_p1 }
 0x1ad   : > { %p1489_p8 = por %p1488_p6, %p1487_p5 }
 0x1af   : > { %p1490_p9 = pnand %p1489_p8, %p1483_p7 }
 0x1b1   : > { %1493 = shalt.err (!%p1490_p9)  }
 0x1b2   : > { %s1494_s16 = scalar_lea.vmem %s325_s18, 32  ;;  %p1499_p12 = scmp.lt.s32.totalorder %s325_s18, %s2116_s12 }
 0x1b3   : > { %p1495_p10 = scmp.ne.s32.totalorder %s325_s18, %s1494_s16  ;;  %p1500_p13 = scmp.lt.s32.totalorder %s2119_s4, %s1494_s16 }
 0x1b5   : > { %p1501_p0 = por %p1500_p13, %p1499_p12 }
 0x1b7   : > { %p1502_p2 = pnand %p1501_p0, %p1495_p10 }
 0x1b9   : > { %1505 = shalt.err (!%p1502_p2)  }
 0x1ba   : > { %327 = dma.hbm_to_vmem [thread:$0]  %s320_s25, 32, %s325_s18, %s2099_s27, %s1968_s17, %s1968_s17, %s1969_s5 }
 0x1bb PF: > { %332 = sbr.rel (%p2027_p3) target bundleno = 848 (0x350), region = 20  ;;  %s2935_s3 = sld [smem:[#allocation48_spill]] (!%p2027_p3) }
 0x1bc   : > { %s334_s23 = ssub.s32 (!%p2027_p3), 1, %s2957_s13  ;;  %s2493_s16 = scalar_lea.hbm (!%p2027_p3), %s2906_s1, 16384 }
 0x1bd   : > { %s996_s12 = sshll.u32 (!%p2027_p3), %s334_s23, 5  ;;  %s2486_s25 = scalar_lea.sflag (!%p2027_p3), [#allocation3], %s334_s23 }
 0x1be   : > { %s2465_s28 = scalar_lea.vmem (!%p2027_p3), [#allocation2], %s996_s12 }
 0x1bf   : > { %s347_s27 = sshll.u32 (!%p2027_p3), %s2465_s28, 4  ;;  %s803_s5 = scalar_lea.vmem (!%p2027_p3), %s2465_s28, 1 [#allocation2]  ;;  %s2468_s27 = int_to_ptr.vmem [resolvable:$true] %s347_s27 }
 0x1c0   : > { %s362_s7 = sshll.u32 (!%p2027_p3), %s803_s5, 4  ;;  %s810_s26 = scalar_lea.vmem (!%p2027_p3), %s2465_s28, 2 [#allocation2]  ;;  %s2475_s7 = int_to_ptr.vmem [resolvable:$true] %s362_s7 }
 0x1c1   : > { %s1053_s0 = sshll.u32 (!%p2027_p3), %s2935_s3, 4 }
 0x1c2   : > { %s2462_s29 = sadd.s32 16, %s1053_s0 }
 0x1c3   : > { %s336_s4 = sld [smem:[#allocation5 + %s2462_s29]]  ;;  %s351_s24 = sadd.s32 1, %s2462_s29 }
 0x1c4   : > { %s2471_s17 = sld [smem:[#allocation5 + %s351_s24]]  ;;  %s366_s19 = sadd.s32 2, %s2462_s29 }
 0x1c5   : > { %s2477_s6 = sld [smem:[#allocation5 + %s366_s19]] }
 0x1c9   : > { %s337_s22 = sshrl.u32 %s336_s4, 3  ;;  %s338_s14 = sand.u32 7, %s336_s4  }
 0x1ca   : > { %s994_s15 = sshll.u32 %s337_s22, 4  ;;  %s353_s30 = sshrl.u32 %s2471_s17, 3 }
 0x1cb   : > { %s340_s18 = sadd.s32 %s994_s15, %s338_s14 }
 0x1cc   : > { %s995_s20 = sshll.u32 %s340_s18, 4 }
 0x1cd   : > { %s2483_s11 = scalar_lea.hbm %s2906_s1, %s995_s20 }
 0x1ce   : > { %s1506_s8 = scalar_lea.hbm %s2483_s11, 32  ;;  %p1509_p7 = scmp.lt.u32.totalorder %s2483_s11, %s2906_s1 }
 0x1cf   : > { %p1507_p3 = scmp.ne.s32.totalorder %s2483_s11, %s1506_s8  ;;  %p1510_p1 = scmp.lt.u32.totalorder %s2493_s16, %s1506_s8 }
 0x1d0   : > { %p1512_p5 = scmp.lt.u32.totalorder %s1506_s8, %s2483_s11 }
 0x1d1   : > { %p1511_p4 = por %p1510_p1, %p1509_p7 }
 0x1d3   : > { %p1513_p6 = por %p1512_p5, %p1511_p4 }
 0x1d5   : > { %p1514_p8 = pnand %p1513_p6, %p1507_p3 }
 0x1d7   : > { %1517 = shalt.err (!%p1514_p8)  }
 0x1d8   : > { %s1518_s23 = scalar_lea.vmem %s2468_s27, 32  ;;  %s1970_s12 = smov [#allocation2]  }
 0x1d9   : > { %p1519_p9 = scmp.ne.s32.totalorder %s2468_s27, %s1518_s23  ;;  %s1520_s4 = sshll.u32 %s1970_s12, 4  ;;  %s2503_s4 = int_to_ptr.vmem [resolvable:$false] %s1520_s4 }
 0x1da   : > { %s2506_s24 = scalar_lea.vmem %s2503_s4, 1024  ;;  %p1523_p10 = scmp.lt.s32.totalorder %s2468_s27, %s2503_s4 }
 0x1db   : > { %p1524_p12 = scmp.lt.s32.totalorder %s2506_s24, %s1518_s23 }
 0x1dd   : > { %p1525_p13 = por %p1524_p12, %p1523_p10 }
 0x1df   : > { %p1526_p0 = pnand %p1525_p13, %p1519_p9 }
 0x1e1   : > { %1529 = shalt.err (!%p1526_p0)  }
 0x1e2   : > { %s1971_s5 = smov 128   ;;  %s1972_s19 = smov 1  }
 0x1e3   : > { %350 = dma.hbm_to_vmem [thread:$0]  %s2483_s11, 32, %s2468_s27, %s2486_s25, %s1971_s5, %s1971_s5, %s1972_s19 }
 0x1e4   : > { %s354_s22 = sand.u32 7, %s2471_s17   ;;  %s997_s14 = sshll.u32 %s353_s30, 4 }
 0x1e5   : > { %s356_s15 = sadd.s32 %s997_s14, %s354_s22  ;;  %s377_s18 = sshll.u32 %s810_s26, 4  ;;  %s378_s18 = int_to_ptr.vmem [resolvable:$true] %s377_s18 }
 0x1e6   : > { %s998_s20 = sshll.u32 %s356_s15, 4  ;;  %s368_s21 = sshrl.u32 %s2477_s6, 3 }
 0x1e7   : > { %s358_s9 = scalar_lea.hbm %s2906_s1, %s998_s20  ;;  %s369_s10 = sand.u32 7, %s2477_s6  }
 0x1e8   : > { %s1530_s3 = scalar_lea.hbm %s358_s9, 32  ;;  %p1533_p3 = scmp.lt.u32.totalorder %s358_s9, %s2906_s1 }
 0x1e9   : > { %p1531_p2 = scmp.ne.s32.totalorder %s358_s9, %s1530_s3  ;;  %p1534_p7 = scmp.lt.u32.totalorder %s2493_s16, %s1530_s3 }
 0x1ea   : > { %p1536_p4 = scmp.lt.u32.totalorder %s1530_s3, %s358_s9 }
 0x1eb   : > { %p1535_p1 = por %p1534_p7, %p1533_p3 }
 0x1ed   : > { %p1537_p5 = por %p1536_p4, %p1535_p1 }
 0x1ef   : > { %p1538_p6 = pnand %p1537_p5, %p1531_p2 }
 0x1f1   : > { %1541 = shalt.err (!%p1538_p6)  }
 0x1f2   : > { %s1542_s27 = scalar_lea.vmem %s2475_s7, 32  ;;  %p1547_p9 = scmp.lt.s32.totalorder %s2475_s7, %s2503_s4 }
 0x1f3   : > { %p1543_p8 = scmp.ne.s32.totalorder %s2475_s7, %s1542_s27  ;;  %p1548_p10 = scmp.lt.s32.totalorder %s2506_s24, %s1542_s27 }
 0x1f5   : > { %p1549_p12 = por %p1548_p10, %p1547_p9 }
 0x1f7   : > { %p1550_p13 = pnand %p1549_p12, %p1543_p8 }
 0x1f9   : > { %1553 = shalt.err (!%p1550_p13)  }
 0x1fa   : > { %365 = dma.hbm_to_vmem [thread:$0]  %s358_s9, 32, %s2475_s7, %s2486_s25, %s1971_s5, %s1971_s5, %s1972_s19 }
 0x1fb   : > { %s1000_s17 = sshll.u32 %s368_s21, 4  ;;  %s381_s26 = sadd.s32 3, %s2462_s29 }
 0x1fc   : > { %s371_s6 = sadd.s32 %s1000_s17, %s369_s10  ;;  %s2542_s30 = sld [smem:[#allocation5 + %s381_s26]] }
 0x1fd   : > { %s1001_s11 = sshll.u32 %s371_s6, 4  ;;  %s817_s15 = scalar_lea.vmem %s2465_s28, 3 [#allocation2] }
 0x1fe   : > { %s373_s14 = scalar_lea.hbm %s2906_s1, %s1001_s11 }
 0x1ff   : > { %s1554_s20 = scalar_lea.hbm %s373_s14, 32  ;;  %p1557_p2 = scmp.lt.u32.totalorder %s373_s14, %s2906_s1 }
 0x200   : > { %p1555_p0 = scmp.ne.s32.totalorder %s373_s14, %s1554_s20  ;;  %p1558_p3 = scmp.lt.u32.totalorder %s2493_s16, %s1554_s20 }
 0x201   : > { %p1560_p1 = scmp.lt.u32.totalorder %s1554_s20, %s373_s14 }
 0x202   : > { %p1559_p7 = por %p1558_p3, %p1557_p2 }
 0x204   : > { %p1561_p4 = por %p1560_p1, %p1559_p7 }
 0x206   : > { %p1562_p5 = pnand %p1561_p4, %p1555_p0 }
 0x208   : > { %1565 = shalt.err (!%p1562_p5)  }
 0x209   : > { %s1566_s7 = scalar_lea.vmem %s378_s18, 32  ;;  %p1571_p8 = scmp.lt.s32.totalorder %s378_s18, %s2503_s4 }
 0x20a   : > { %p1567_p6 = scmp.ne.s32.totalorder %s378_s18, %s1566_s7  ;;  %p1572_p9 = scmp.lt.s32.totalorder %s2506_s24, %s1566_s7 }
 0x20c   : > { %p1573_p10 = por %p1572_p9, %p1571_p8 }
 0x20e   : > { %p1574_p12 = pnand %p1573_p10, %p1567_p6 }
 0x210   : > { %1577 = shalt.err (!%p1574_p12)  }
 0x211   : > { %380 = dma.hbm_to_vmem [thread:$0]  %s373_s14, 32, %s378_s18, %s2486_s25, %s1971_s5, %s1971_s5, %s1972_s19 }
 0x212   : > { %s392_s21 = sshll.u32 %s817_s15, 4  ;;  %s396_s9 = sadd.s32 4, %s2462_s29  ;;  %s2559_s21 = int_to_ptr.vmem [resolvable:$true] %s392_s21 }
 0x213   : > { %s2561_s10 = sld [smem:[#allocation5 + %s396_s9]]  ;;  %s824_s3 = scalar_lea.vmem %s2465_s28, 4 [#allocation2] }
 0x214   : > { %s411_s0 = sadd.s32 5, %s2462_s29  ;;  %s383_s23 = sshrl.u32 %s2542_s30, 3 }
 0x215   : > { %s384_s27 = sand.u32 7, %s2542_s30   ;;  %s1003_s17 = sshll.u32 %s383_s23, 4 }
 0x216   : > { %s407_s6 = sshll.u32 %s824_s3, 4  ;;  %s386_s26 = sadd.s32 %s1003_s17, %s384_s27  ;;  %s2567_s6 = int_to_ptr.vmem [resolvable:$true] %s407_s6 }
 0x217   : > { %s1004_s11 = sshll.u32 %s386_s26, 4  ;;  %s2569_s12 = sld [smem:[#allocation5 + %s411_s0]] }
 0x218   : > { %s388_s14 = scalar_lea.hbm %s2906_s1, %s1004_s11 }
 0x219   : > { %s398_s15 = sshrl.u32 %s2561_s10, 3  ;;  %s1578_s20 = scalar_lea.hbm %s388_s14, 32 }
 0x21a   : > { %p1579_p13 = scmp.ne.s32.totalorder %s388_s14, %s1578_s20  ;;  %p1581_p0 = scmp.lt.u32.totalorder %s388_s14, %s2906_s1 }
 0x21b   : > { %p1582_p2 = scmp.lt.u32.totalorder %s2493_s16, %s1578_s20  ;;  %p1584_p7 = scmp.lt.u32.totalorder %s1578_s20, %s388_s14 }
 0x21d   : > { %p1583_p3 = por %p1582_p2, %p1581_p0 }
 0x21f   : > { %p1585_p1 = por %p1584_p7, %p1583_p3 }
 0x221   : > { %p1586_p4 = pnand %p1585_p1, %p1579_p13 }
 0x223   : > { %1589 = shalt.err (!%p1586_p4)  }
 0x224   : > { %s1590_s30 = scalar_lea.vmem %s2559_s21, 32  ;;  %p1595_p6 = scmp.lt.s32.totalorder %s2559_s21, %s2503_s4 }
 0x225   : > { %p1591_p5 = scmp.ne.s32.totalorder %s2559_s21, %s1590_s30  ;;  %p1596_p8 = scmp.lt.s32.totalorder %s2506_s24, %s1590_s30 }
 0x227   : > { %p1597_p9 = por %p1596_p8, %p1595_p6 }
 0x229   : > { %p1598_p10 = pnand %p1597_p9, %p1591_p5 }
 0x22b   : > { %1601 = shalt.err (!%p1598_p10)  }
 0x22c   : > { %395 = dma.hbm_to_vmem [thread:$0]  %s388_s14, 32, %s2559_s21, %s2486_s25, %s1971_s5, %s1971_s5, %s1972_s19 }
 0x22d   : > { %s399_s7 = sand.u32 7, %s2561_s10   ;;  %s1006_s9 = sshll.u32 %s398_s15, 4 }
 0x22e   : > { %s401_s3 = sadd.s32 %s1006_s9, %s399_s7  ;;  %s831_s0 = scalar_lea.vmem %s2465_s28, 5 [#allocation2] }
 0x22f   : > { %s1007_s23 = sshll.u32 %s401_s3, 4  ;;  %s422_s27 = sshll.u32 %s831_s0, 4  ;;  %s423_s27 = int_to_ptr.vmem [resolvable:$true] %s422_s27 }
 0x230   : > { %s403_s11 = scalar_lea.hbm %s2906_s1, %s1007_s23  ;;  %s413_s18 = sshrl.u32 %s2569_s12, 3 }
 0x231   : > { %s1602_s22 = scalar_lea.hbm %s403_s11, 32  ;;  %p1605_p13 = scmp.lt.u32.totalorder %s403_s11, %s2906_s1 }
 0x232   : > { %p1603_p12 = scmp.ne.s32.totalorder %s403_s11, %s1602_s22  ;;  %p1606_p0 = scmp.lt.u32.totalorder %s2493_s16, %s1602_s22 }
 0x233   : > { %p1608_p3 = scmp.lt.u32.totalorder %s1602_s22, %s403_s11 }
 0x234   : > { %p1607_p2 = por %p1606_p0, %p1605_p13 }
 0x236   : > { %p1609_p7 = por %p1608_p3, %p1607_p2 }
 0x238   : > { %p1610_p1 = pnand %p1609_p7, %p1603_p12 }
 0x23a   : > { %1613 = shalt.err (!%p1610_p1)  }
 0x23b   : > { %s1614_s21 = scalar_lea.vmem %s2567_s6, 32  ;;  %p1619_p5 = scmp.lt.s32.totalorder %s2567_s6, %s2503_s4 }
 0x23c   : > { %p1615_p4 = scmp.ne.s32.totalorder %s2567_s6, %s1614_s21  ;;  %p1620_p6 = scmp.lt.s32.totalorder %s2506_s24, %s1614_s21 }
 0x23e   : > { %p1621_p8 = por %p1620_p6, %p1619_p5 }
 0x240   : > { %p1622_p9 = pnand %p1621_p8, %p1615_p4 }
 0x242   : > { %1625 = shalt.err (!%p1622_p9)  }
 0x243   : > { %410 = dma.hbm_to_vmem [thread:$0]  %s403_s11, 32, %s2567_s6, %s2486_s25, %s1971_s5, %s1971_s5, %s1972_s19 }
 0x244   : > { %s414_s10 = sand.u32 7, %s2569_s12   ;;  %s1009_s14 = sshll.u32 %s413_s18, 4 }
 0x245   : > { %s416_s15 = sadd.s32 %s1009_s14, %s414_s10  ;;  %s426_s30 = sadd.s32 6, %s2462_s29 }
 0x246   : > { %s1010_s8 = sshll.u32 %s416_s15, 4  ;;  %s2614_s0 = sld [smem:[#allocation5 + %s426_s30]] }
 0x247   : > { %s418_s3 = scalar_lea.hbm %s2906_s1, %s1010_s8 }
 0x248   : > { %s1626_s23 = scalar_lea.hbm %s418_s3, 32  ;;  %p1629_p12 = scmp.lt.u32.totalorder %s418_s3, %s2906_s1 }
 0x249   : > { %p1627_p10 = scmp.ne.s32.totalorder %s418_s3, %s1626_s23  ;;  %p1630_p13 = scmp.lt.u32.totalorder %s2493_s16, %s1626_s23 }
 0x24a   : > { %p1632_p2 = scmp.lt.u32.totalorder %s1626_s23, %s418_s3 }
 0x24b   : > { %p1631_p0 = por %p1630_p13, %p1629_p12 }
 0x24d   : > { %p1633_p3 = por %p1632_p2, %p1631_p0 }
 0x24f   : > { %p1634_p7 = pnand %p1633_p3, %p1627_p10 }
 0x251   : > { %1637 = shalt.err (!%p1634_p7)  }
 0x252   : > { %s1638_s6 = scalar_lea.vmem %s423_s27, 32  ;;  %p1643_p4 = scmp.lt.s32.totalorder %s423_s27, %s2503_s4 }
 0x253   : > { %p1639_p1 = scmp.ne.s32.totalorder %s423_s27, %s1638_s6  ;;  %p1644_p5 = scmp.lt.s32.totalorder %s2506_s24, %s1638_s6 }
 0x255   : > { %p1645_p6 = por %p1644_p5, %p1643_p4 }
 0x257   : > { %p1646_p8 = pnand %p1645_p6, %p1639_p1 }
 0x259   : > { %1649 = shalt.err (!%p1646_p8)  }
 0x25a   : > { %425 = dma.hbm_to_vmem [thread:$0]  %s418_s3, 32, %s423_s27, %s2486_s25, %s1971_s5, %s1971_s5, %s1972_s19 }
 0x25b   : > { %s838_s12 = scalar_lea.vmem %s2465_s28, 6 [#allocation2]  ;;  %s441_s11 = sadd.s32 7, %s2462_s29 }
 0x25c   : > { %s437_s18 = sshll.u32 %s838_s12, 4  ;;  %s2628_s22 = sld [smem:[#allocation5 + %s441_s11]]  ;;  %s2630_s18 = int_to_ptr.vmem [resolvable:$true] %s437_s18 }
 0x25d   : > { %s845_s20 = scalar_lea.vmem %s2465_s28, 7 [#allocation2]  ;;  %s456_s21 = sadd.s32 8, %s2462_s29 }
 0x25e   : > { %s452_s2 = sshll.u32 %s845_s20, 4  ;;  %s428_s10 = sshrl.u32 %s2614_s0, 3  ;;  %s2636_s2 = int_to_ptr.vmem [resolvable:$true] %s452_s2 }
 0x25f   : > { %s429_s14 = sand.u32 7, %s2614_s0   ;;  %s1012_s15 = sshll.u32 %s428_s10, 4 }
 0x260   : > { %s431_s8 = sadd.s32 %s1012_s15, %s429_s14  ;;  %s2638_s27 = sld [smem:[#allocation5 + %s456_s21]] }
 0x261   : > { %s1013_s30 = sshll.u32 %s431_s8, 4 }
 0x262   : > { %s443_s7 = sshrl.u32 %s2628_s22, 3  ;;  %s433_s23 = scalar_lea.hbm %s2906_s1, %s1013_s30 }
 0x263   : > { %s444_s17 = sand.u32 7, %s2628_s22   ;;  %s1650_s26 = scalar_lea.hbm %s433_s23, 32 }
 0x264   : > { %p1651_p9 = scmp.ne.s32.totalorder %s433_s23, %s1650_s26  ;;  %p1653_p10 = scmp.lt.u32.totalorder %s433_s23, %s2906_s1 }
 0x265   : > { %p1654_p12 = scmp.lt.u32.totalorder %s2493_s16, %s1650_s26  ;;  %p1656_p0 = scmp.lt.u32.totalorder %s1650_s26, %s433_s23 }
 0x267   : > { %p1655_p13 = por %p1654_p12, %p1653_p10 }
 0x269   : > { %p1657_p2 = por %p1656_p0, %p1655_p13 }
 0x26b   : > { %p1658_p3 = pnand %p1657_p2, %p1651_p9 }
 0x26d   : > { %1661 = shalt.err (!%p1658_p3)  }
 0x26e   : > { %s1662_s0 = scalar_lea.vmem %s2630_s18, 32  ;;  %p1667_p1 = scmp.lt.s32.totalorder %s2630_s18, %s2503_s4 }
 0x26f   : > { %p1663_p7 = scmp.ne.s32.totalorder %s2630_s18, %s1662_s0  ;;  %p1668_p4 = scmp.lt.s32.totalorder %s2506_s24, %s1662_s0 }
 0x271   : > { %p1669_p5 = por %p1668_p4, %p1667_p1 }
 0x273   : > { %p1670_p6 = pnand %p1669_p5, %p1663_p7 }
 0x275   : > { %1673 = shalt.err (!%p1670_p6)  }
 0x276   : > { %440 = dma.hbm_to_vmem [thread:$0]  %s433_s23, 32, %s2630_s18, %s2486_s25, %s1971_s5, %s1971_s5, %s1972_s19 }
 0x277   : > { %s1015_s11 = sshll.u32 %s443_s7, 4  ;;  %s852_s22 = scalar_lea.vmem %s2465_s28, 16 [#allocation2] }
 0x278   : > { %s446_s20 = sadd.s32 %s1015_s11, %s444_s17  ;;  %s467_s21 = sshll.u32 %s852_s22, 4  ;;  %s468_s21 = int_to_ptr.vmem [resolvable:$true] %s467_s21 }
 0x279   : > { %s1016_s10 = sshll.u32 %s446_s20, 4  ;;  %s458_s14 = sshrl.u32 %s2638_s27, 3 }
 0x27a   : > { %s448_s30 = scalar_lea.hbm %s2906_s1, %s1016_s10  ;;  %s459_s9 = sand.u32 7, %s2638_s27  }
 0x27b   : > { %s1674_s3 = scalar_lea.hbm %s448_s30, 32  ;;  %p1677_p9 = scmp.lt.u32.totalorder %s448_s30, %s2906_s1 }
 0x27c   : > { %p1675_p8 = scmp.ne.s32.totalorder %s448_s30, %s1674_s3  ;;  %p1678_p10 = scmp.lt.u32.totalorder %s2493_s16, %s1674_s3 }
 0x27d   : > { %p1680_p13 = scmp.lt.u32.totalorder %s1674_s3, %s448_s30 }
 0x27e   : > { %p1679_p12 = por %p1678_p10, %p1677_p9 }
 0x280   : > { %p1681_p0 = por %p1680_p13, %p1679_p12 }
 0x282   : > { %p1682_p2 = pnand %p1681_p0, %p1675_p8 }
 0x284   : > { %1685 = shalt.err (!%p1682_p2)  }
 0x285   : > { %s1686_s18 = scalar_lea.vmem %s2636_s2, 32  ;;  %p1691_p7 = scmp.lt.s32.totalorder %s2636_s2, %s2503_s4 }
 0x286   : > { %p1687_p3 = scmp.ne.s32.totalorder %s2636_s2, %s1686_s18  ;;  %p1692_p1 = scmp.lt.s32.totalorder %s2506_s24, %s1686_s18 }
 0x288   : > { %p1693_p4 = por %p1692_p1, %p1691_p7 }
 0x28a   : > { %p1694_p5 = pnand %p1693_p4, %p1687_p3 }
 0x28c   : > { %1697 = shalt.err (!%p1694_p5)  }
 0x28d   : > { %455 = dma.hbm_to_vmem [thread:$0]  %s448_s30, 32, %s2636_s2, %s2486_s25, %s1971_s5, %s1971_s5, %s1972_s19 }
 0x28e   : > { %s1018_s27 = sshll.u32 %s458_s14, 4  ;;  %s471_s23 = sadd.s32 9, %s2462_s29 }
 0x28f   : > { %s461_s7 = sadd.s32 %s1018_s27, %s459_s9  ;;  %s2680_s12 = sld [smem:[#allocation5 + %s471_s23]] }
 0x290   : > { %s1019_s17 = sshll.u32 %s461_s7, 4  ;;  %s859_s20 = scalar_lea.vmem %s2465_s28, 17 [#allocation2] }
 0x291   : > { %s463_s22 = scalar_lea.hbm %s2906_s1, %s1019_s17 }
 0x292   : > { %s1698_s10 = scalar_lea.hbm %s463_s22, 32  ;;  %p1701_p8 = scmp.lt.u32.totalorder %s463_s22, %s2906_s1 }
 0x293   : > { %p1699_p6 = scmp.ne.s32.totalorder %s463_s22, %s1698_s10  ;;  %p1702_p9 = scmp.lt.u32.totalorder %s2493_s16, %s1698_s10 }
 0x294   : > { %p1704_p12 = scmp.lt.u32.totalorder %s1698_s10, %s463_s22 }
 0x295   : > { %p1703_p10 = por %p1702_p9, %p1701_p8 }
 0x297   : > { %p1705_p13 = por %p1704_p12, %p1703_p10 }
 0x299   : > { %p1706_p0 = pnand %p1705_p13, %p1699_p6 }
 0x29b   : > { %1709 = shalt.err (!%p1706_p0)  }
 0x29c   : > { %s1710_s2 = scalar_lea.vmem %s468_s21, 32  ;;  %p1715_p3 = scmp.lt.s32.totalorder %s468_s21, %s2503_s4 }
 0x29d   : > { %p1711_p2 = scmp.ne.s32.totalorder %s468_s21, %s1710_s2  ;;  %p1716_p7 = scmp.lt.s32.totalorder %s2506_s24, %s1710_s2 }
 0x29f   : > { %p1717_p1 = por %p1716_p7, %p1715_p3 }
 0x2a1   : > { %p1718_p4 = pnand %p1717_p1, %p1711_p2 }
 0x2a3   : > { %1721 = shalt.err (!%p1718_p4)  }
 0x2a4   : > { %470 = dma.hbm_to_vmem [thread:$0]  %s463_s22, 32, %s468_s21, %s2486_s25, %s1971_s5, %s1971_s5, %s1972_s19 }
 0x2a5   : > { %s482_s14 = sshll.u32 %s859_s20, 4  ;;  %s486_s30 = sadd.s32 10, %s2462_s29  ;;  %s2697_s14 = int_to_ptr.vmem [resolvable:$true] %s482_s14 }
 0x2a6   : > { %s2699_s9 = sld [smem:[#allocation5 + %s486_s30]]  ;;  %s866_s3 = scalar_lea.vmem %s2465_s28, 18 [#allocation2] }
 0x2a7   : > { %s501_s26 = sadd.s32 11, %s2462_s29  ;;  %s473_s6 = sshrl.u32 %s2680_s12, 3 }
 0x2a8   : > { %s474_s18 = sand.u32 7, %s2680_s12   ;;  %s1021_s27 = sshll.u32 %s473_s6, 4 }
 0x2a9   : > { %s497_s7 = sshll.u32 %s866_s3, 4  ;;  %s476_s23 = sadd.s32 %s1021_s27, %s474_s18  ;;  %s2705_s7 = int_to_ptr.vmem [resolvable:$true] %s497_s7 }
 0x2aa   : > { %s1022_s17 = sshll.u32 %s476_s23, 4  ;;  %s2707_s0 = sld [smem:[#allocation5 + %s501_s26]] }
 0x2ab   : > { %s478_s22 = scalar_lea.hbm %s2906_s1, %s1022_s17 }
 0x2ac   : > { %s488_s20 = sshrl.u32 %s2699_s9, 3  ;;  %s1722_s10 = scalar_lea.hbm %s478_s22, 32 }
 0x2ad   : > { %p1723_p5 = scmp.ne.s32.totalorder %s478_s22, %s1722_s10  ;;  %p1725_p6 = scmp.lt.u32.totalorder %s478_s22, %s2906_s1 }
 0x2ae   : > { %p1726_p8 = scmp.lt.u32.totalorder %s2493_s16, %s1722_s10  ;;  %p1728_p10 = scmp.lt.u32.totalorder %s1722_s10, %s478_s22 }
 0x2b0   : > { %p1727_p9 = por %p1726_p8, %p1725_p6 }
 0x2b2   : > { %p1729_p12 = por %p1728_p10, %p1727_p9 }
 0x2b4   : > { %p1730_p13 = pnand %p1729_p12, %p1723_p5 }
 0x2b6   : > { %1733 = shalt.err (!%p1730_p13)  }
 0x2b7   : > { %s1734_s12 = scalar_lea.vmem %s2697_s14, 32  ;;  %p1739_p2 = scmp.lt.s32.totalorder %s2697_s14, %s2503_s4 }
 0x2b8   : > { %p1735_p0 = scmp.ne.s32.totalorder %s2697_s14, %s1734_s12  ;;  %p1740_p3 = scmp.lt.s32.totalorder %s2506_s24, %s1734_s12 }
 0x2ba   : > { %p1741_p7 = por %p1740_p3, %p1739_p2 }
 0x2bc   : > { %p1742_p1 = pnand %p1741_p7, %p1735_p0 }
 0x2be   : > { %1745 = shalt.err (!%p1742_p1)  }
 0x2bf   : > { %485 = dma.hbm_to_vmem [thread:$0]  %s478_s22, 32, %s2697_s14, %s2486_s25, %s1971_s5, %s1971_s5, %s1972_s19 }
 0x2c0   : > { %s489_s2 = sand.u32 7, %s2699_s9   ;;  %s1024_s30 = sshll.u32 %s488_s20, 4 }
 0x2c1   : > { %s491_s3 = sadd.s32 %s1024_s30, %s489_s2  ;;  %s873_s26 = scalar_lea.vmem %s2465_s28, 19 [#allocation2] }
 0x2c2   : > { %s1025_s6 = sshll.u32 %s491_s3, 4  ;;  %s512_s18 = sshll.u32 %s873_s26, 4  ;;  %s513_s18 = int_to_ptr.vmem [resolvable:$true] %s512_s18 }
 0x2c3   : > { %s493_s17 = scalar_lea.hbm %s2906_s1, %s1025_s6  ;;  %s503_s21 = sshrl.u32 %s2707_s0, 3 }
 0x2c4   : > { %s1746_s11 = scalar_lea.hbm %s493_s17, 32  ;;  %p1749_p5 = scmp.lt.u32.totalorder %s493_s17, %s2906_s1 }
 0x2c5   : > { %p1747_p4 = scmp.ne.s32.totalorder %s493_s17, %s1746_s11  ;;  %p1750_p6 = scmp.lt.u32.totalorder %s2493_s16, %s1746_s11 }
 0x2c6   : > { %p1752_p9 = scmp.lt.u32.totalorder %s1746_s11, %s493_s17 }
 0x2c7   : > { %p1751_p8 = por %p1750_p6, %p1749_p5 }
 0x2c9   : > { %p1753_p10 = por %p1752_p9, %p1751_p8 }
 0x2cb   : > { %p1754_p12 = pnand %p1753_p10, %p1747_p4 }
 0x2cd   : > { %1757 = shalt.err (!%p1754_p12)  }
 0x2ce   : > { %s1758_s14 = scalar_lea.vmem %s2705_s7, 32  ;;  %p1763_p0 = scmp.lt.s32.totalorder %s2705_s7, %s2503_s4 }
 0x2cf   : > { %p1759_p13 = scmp.ne.s32.totalorder %s2705_s7, %s1758_s14  ;;  %p1764_p2 = scmp.lt.s32.totalorder %s2506_s24, %s1758_s14 }
 0x2d1   : > { %p1765_p3 = por %p1764_p2, %p1763_p0 }
 0x2d3   : > { %p1766_p7 = pnand %p1765_p3, %p1759_p13 }
 0x2d5   : > { %1769 = shalt.err (!%p1766_p7)  }
 0x2d6   : > { %500 = dma.hbm_to_vmem [thread:$0]  %s493_s17, 32, %s2705_s7, %s2486_s25, %s1971_s5, %s1971_s5, %s1972_s19 }
 0x2d7   : > { %s504_s9 = sand.u32 7, %s2707_s0   ;;  %s1027_s22 = sshll.u32 %s503_s21, 4 }
 0x2d8   : > { %s506_s20 = sadd.s32 %s1027_s22, %s504_s9  ;;  %s516_s12 = sadd.s32 12, %s2462_s29 }
 0x2d9   : > { %s1028_s8 = sshll.u32 %s506_s20, 4  ;;  %s2752_s26 = sld [smem:[#allocation5 + %s516_s12]] }
 0x2da   : > { %s508_s3 = scalar_lea.hbm %s2906_s1, %s1028_s8 }
 0x2db   : > { %s1770_s6 = scalar_lea.hbm %s508_s3, 32  ;;  %p1773_p4 = scmp.lt.u32.totalorder %s508_s3, %s2906_s1 }
 0x2dc   : > { %p1771_p1 = scmp.ne.s32.totalorder %s508_s3, %s1770_s6  ;;  %p1774_p5 = scmp.lt.u32.totalorder %s2493_s16, %s1770_s6 }
 0x2dd   : > { %p1776_p8 = scmp.lt.u32.totalorder %s1770_s6, %s508_s3 }
 0x2de   : > { %p1775_p6 = por %p1774_p5, %p1773_p4 }
 0x2e0   : > { %p1777_p9 = por %p1776_p8, %p1775_p6 }
 0x2e2   : > { %p1778_p10 = pnand %p1777_p9, %p1771_p1 }
 0x2e4   : > { %1781 = shalt.err (!%p1778_p10)  }
 0x2e5   : > { %s1782_s7 = scalar_lea.vmem %s513_s18, 32  ;;  %p1787_p13 = scmp.lt.s32.totalorder %s513_s18, %s2503_s4 }
 0x2e6   : > { %p1783_p12 = scmp.ne.s32.totalorder %s513_s18, %s1782_s7  ;;  %p1788_p0 = scmp.lt.s32.totalorder %s2506_s24, %s1782_s7 }
 0x2e8   : > { %p1789_p2 = por %p1788_p0, %p1787_p13 }
 0x2ea   : > { %p1790_p3 = pnand %p1789_p2, %p1783_p12 }
 0x2ec   : > { %1793 = shalt.err (!%p1790_p3)  }
 0x2ed   : > { %515 = dma.hbm_to_vmem [thread:$0]  %s508_s3, 32, %s513_s18, %s2486_s25, %s1971_s5, %s1971_s5, %s1972_s19 }
 0x2ee   : > { %s880_s0 = scalar_lea.vmem %s2465_s28, 20 [#allocation2]  ;;  %s531_s17 = sadd.s32 13, %s2462_s29 }
 0x2ef   : > { %s527_s21 = sshll.u32 %s880_s0, 4  ;;  %s2766_s11 = sld [smem:[#allocation5 + %s531_s17]]  ;;  %s2768_s21 = int_to_ptr.vmem [resolvable:$true] %s527_s21 }
 0x2f0   : > { %s887_s10 = scalar_lea.vmem %s2465_s28, 21 [#allocation2]  ;;  %s546_s14 = sadd.s32 14, %s2462_s29 }
 0x2f1   : > { %s542_s15 = sshll.u32 %s887_s10, 4  ;;  %s518_s9 = sshrl.u32 %s2752_s26, 3  ;;  %s2774_s15 = int_to_ptr.vmem [resolvable:$true] %s542_s15 }
 0x2f2   : > { %s519_s22 = sand.u32 7, %s2752_s26   ;;  %s1030_s20 = sshll.u32 %s518_s9, 4 }
 0x2f3   : > { %s521_s8 = sadd.s32 %s1030_s20, %s519_s22  ;;  %s2776_s18 = sld [smem:[#allocation5 + %s546_s14]] }
 0x2f4   : > { %s1031_s12 = sshll.u32 %s521_s8, 4 }
 0x2f5   : > { %s533_s2 = sshrl.u32 %s2766_s11, 3  ;;  %s523_s6 = scalar_lea.hbm %s2906_s1, %s1031_s12 }
 0x2f6   : > { %s534_s27 = sand.u32 7, %s2766_s11   ;;  %s1794_s23 = scalar_lea.hbm %s523_s6, 32 }
 0x2f7   : > { %p1795_p7 = scmp.ne.s32.totalorder %s523_s6, %s1794_s23  ;;  %p1797_p1 = scmp.lt.u32.totalorder %s523_s6, %s2906_s1 }
 0x2f8   : > { %p1798_p4 = scmp.lt.u32.totalorder %s2493_s16, %s1794_s23  ;;  %p1800_p6 = scmp.lt.u32.totalorder %s1794_s23, %s523_s6 }
 0x2fa   : > { %p1799_p5 = por %p1798_p4, %p1797_p1 }
 0x2fc   : > { %p1801_p8 = por %p1800_p6, %p1799_p5 }
 0x2fe   : > { %p1802_p9 = pnand %p1801_p8, %p1795_p7 }
 0x300   : > { %1805 = shalt.err (!%p1802_p9)  }
 0x301   : > { %s1806_s26 = scalar_lea.vmem %s2768_s21, 32  ;;  %p1811_p12 = scmp.lt.s32.totalorder %s2768_s21, %s2503_s4 }
 0x302   : > { %p1807_p10 = scmp.ne.s32.totalorder %s2768_s21, %s1806_s26  ;;  %p1812_p13 = scmp.lt.s32.totalorder %s2506_s24, %s1806_s26 }
 0x304   : > { %p1813_p0 = por %p1812_p13, %p1811_p12 }
 0x306   : > { %p1814_p2 = pnand %p1813_p0, %p1807_p10 }
 0x308   : > { %1817 = shalt.err (!%p1814_p2)  }
 0x309   : > { %530 = dma.hbm_to_vmem [thread:$0]  %s523_s6, 32, %s2768_s21, %s2486_s25, %s1971_s5, %s1971_s5, %s1972_s19 }
 0x30a   : > { %s1033_s17 = sshll.u32 %s533_s2, 4  ;;  %s894_s11 = scalar_lea.vmem %s2465_s28, 22 [#allocation2] }
 0x30b   : > { %s536_s10 = sadd.s32 %s1033_s17, %s534_s27  ;;  %s557_s14 = sshll.u32 %s894_s11, 4  ;;  %s558_s14 = int_to_ptr.vmem [resolvable:$true] %s557_s14 }
 0x30c   : > { %s1034_s9 = sshll.u32 %s536_s10, 4  ;;  %s548_s22 = sshrl.u32 %s2776_s18, 3 }
 0x30d   : > { %s538_s12 = scalar_lea.hbm %s2906_s1, %s1034_s9  ;;  %s549_s30 = sand.u32 7, %s2776_s18  }
 0x30e   : > { %s1818_s3 = scalar_lea.hbm %s538_s12, 32  ;;  %p1821_p7 = scmp.lt.u32.totalorder %s538_s12, %s2906_s1 }
 0x30f   : > { %p1819_p3 = scmp.ne.s32.totalorder %s538_s12, %s1818_s3  ;;  %p1822_p1 = scmp.lt.u32.totalorder %s2493_s16, %s1818_s3 }
 0x310   : > { %p1824_p5 = scmp.lt.u32.totalorder %s1818_s3, %s538_s12 }
 0x311   : > { %p1823_p4 = por %p1822_p1, %p1821_p7 }
 0x313   : > { %p1825_p6 = por %p1824_p5, %p1823_p4 }
 0x315   : > { %p1826_p8 = pnand %p1825_p6, %p1819_p3 }
 0x317   : > { %1829 = shalt.err (!%p1826_p8)  }
 0x318   : > { %s1830_s21 = scalar_lea.vmem %s2774_s15, 32  ;;  %p1835_p10 = scmp.lt.s32.totalorder %s2774_s15, %s2503_s4 }
 0x319   : > { %p1831_p9 = scmp.ne.s32.totalorder %s2774_s15, %s1830_s21  ;;  %p1836_p12 = scmp.lt.s32.totalorder %s2506_s24, %s1830_s21 }
 0x31b   : > { %p1837_p13 = por %p1836_p12, %p1835_p10 }
 0x31d   : > { %p1838_p0 = pnand %p1837_p13, %p1831_p9 }
 0x31f   : > { %1841 = shalt.err (!%p1838_p0)  }
 0x320   : > { %545 = dma.hbm_to_vmem [thread:$0]  %s538_s12, 32, %s2774_s15, %s2486_s25, %s1971_s5, %s1971_s5, %s1972_s19 }
 0x321   : > { %s1036_s18 = sshll.u32 %s548_s22, 4  ;;  %s561_s6 = sadd.s32 15, %s2462_s29 }
 0x322   : > { %s551_s2 = sadd.s32 %s1036_s18, %s549_s30  ;;  %s562_s0 = sld [smem:[#allocation5 + %s561_s6]] }
 0x323   : > { %s1037_s27 = sshll.u32 %s551_s2, 4  ;;  %s901_s10 = scalar_lea.vmem %s2465_s28, 23 [#allocation2] }
 0x324   : > { %s553_s11 = scalar_lea.hbm %s2906_s1, %s1037_s27 }
 0x325   : > { %s1842_s9 = scalar_lea.hbm %s553_s11, 32  ;;  %p1845_p3 = scmp.lt.u32.totalorder %s553_s11, %s2906_s1 }
 0x326   : > { %p1843_p2 = scmp.ne.s32.totalorder %s553_s11, %s1842_s9  ;;  %p1846_p7 = scmp.lt.u32.totalorder %s2493_s16, %s1842_s9 }
 0x327   : > { %p1848_p4 = scmp.lt.u32.totalorder %s1842_s9, %s553_s11 }
 0x328   : > { %p1847_p1 = por %p1846_p7, %p1845_p3 }
 0x32a   : > { %p1849_p5 = por %p1848_p4, %p1847_p1 }
 0x32c   : > { %p1850_p6 = pnand %p1849_p5, %p1843_p2 }
 0x32e   : > { %1853 = shalt.err (!%p1850_p6)  }
 0x32f   : > { %s1854_s29 = scalar_lea.vmem %s558_s14, 32  ;;  %p1859_p9 = scmp.lt.s32.totalorder %s558_s14, %s2503_s4 }
 0x330   : > { %p1855_p8 = scmp.ne.s32.totalorder %s558_s14, %s1854_s29  ;;  %p1860_p10 = scmp.lt.s32.totalorder %s2506_s24, %s1854_s29 }
 0x332   : > { %p1861_p12 = por %p1860_p10, %p1859_p9 }
 0x334   : > { %p1862_p13 = pnand %p1861_p12, %p1855_p8 }
 0x336   : > { %1865 = shalt.err (!%p1862_p13)  }
 0x337   : > { %560 = dma.hbm_to_vmem [thread:$0]  %s553_s11, 32, %s558_s14, %s2486_s25, %s1971_s5, %s1971_s5, %s1972_s19 }
 0x338   : > { %s572_s28 = sshll.u32 %s901_s10, 4  ;;  %s563_s15 = sshrl.u32 %s562_s0, 3  ;;  %s573_s28 = int_to_ptr.vmem [resolvable:$true] %s572_s28 }
 0x339   : > { %s564_s22 = sand.u32 7, %s562_s0   ;;  %s1039_s12 = sshll.u32 %s563_s15, 4 }
 0x33a   : > { %s566_s30 = sadd.s32 %s1039_s12, %s564_s22 }
 0x33b   : > { %s1040_s3 = sshll.u32 %s566_s30, 4 }
 0x33c   : > { %s568_s21 = scalar_lea.hbm %s2906_s1, %s1040_s3 }
 0x33d   : > { %s1866_s18 = scalar_lea.hbm %s568_s21, 32  ;;  %p1869_p2 = scmp.lt.u32.totalorder %s568_s21, %s2906_s1 }
 0x33e   : > { %p1867_p0 = scmp.ne.s32.totalorder %s568_s21, %s1866_s18  ;;  %p1870_p3 = scmp.lt.u32.totalorder %s2493_s16, %s1866_s18 }
 0x33f   : > { %p1872_p1 = scmp.lt.u32.totalorder %s1866_s18, %s568_s21 }
 0x340   : > { %p1871_p7 = por %p1870_p3, %p1869_p2 }
 0x342   : > { %p1873_p4 = por %p1872_p1, %p1871_p7 }
 0x344   : > { %p1874_p5 = pnand %p1873_p4, %p1867_p0 }
 0x346   : > { %1877 = shalt.err (!%p1874_p5)  }
 0x347   : > { %s1878_s14 = scalar_lea.vmem %s573_s28, 32  ;;  %p1883_p8 = scmp.lt.s32.totalorder %s573_s28, %s2503_s4 }
 0x348   : > { %p1879_p6 = scmp.ne.s32.totalorder %s573_s28, %s1878_s14  ;;  %p1884_p9 = scmp.lt.s32.totalorder %s2506_s24, %s1878_s14 }
 0x34a   : > { %p1885_p10 = por %p1884_p9, %p1883_p8 }
 0x34c   : > { %p1886_p12 = pnand %p1885_p10, %p1879_p6 }
 0x34e   : > { %1889 = shalt.err (!%p1886_p12)  }
 0x34f   : > { %575 = dma.hbm_to_vmem [thread:$0]  %s568_s21, 32, %s573_s28, %s2486_s25, %s1971_s5, %s1971_s5, %s1972_s19 }
 0x350 PF: > { %s576_s16 = scalar_lea.sflag [#allocation3], %s2957_s13 }
 0x351   : > { %1940 = dma.done.wait %s576_s16, 512 }
 0x352   : > { %1941 = vsyncadd %s576_s16, 4294966784  ;;  %s2936_s27 = sld [smem:[#allocation48_spill]]  ;;  %s2937_s0 = sld [smem:[#allocation52_spill]] }
 0x353   : > { %s2938_s4 = sld [smem:[#allocation44_spill]]  ;;  %s1055_s24 = sshll.u32 %s2957_s13, 5 }
 0x354   : > { %s2940_s25 = sld [smem:[#allocation53_spill]]  ;;  %s612_s19 = scalar_lea.vmem [#allocation2], %s1055_s24 }
 0x355   : > { %v613_v0 = vld [vmem:[%s612_s19] sm:$0xff]  ;;  %v614_v1 = vld [vmem:[%s612_s19 + $0x8] sm:$0xff]  ;;  %v615_v2 = vld [vmem:[%s612_s19 + $0x10] sm:$0xff]  ;;  %s1973_s29 = smov [#allocation6]  }
 0x356   : > { %v616_v3 = vld [vmem:[%s612_s19 + $0x18] sm:$0xff]  ;;  %s1894_s28 = sshll.u32 %s1973_s29, 4  ;;  %s1895_s28 = int_to_ptr.vmem [resolvable:$false] %s1894_s28 }
 0x357   : > { %s1896_s15 = scalar_lea.vmem %s1895_s28, 1024 }
 0x358   : > { %s1057_s26 = sshll.u32 %s2936_s27, 9  ;;  %s638_s11 = sshll.u32 %s2937_s0, 4  ;;  %617 = vst [vmem:[%s2937_s0] sm:$0xff] %v613_v0  ;;  %618 = vst [vmem:[%s2937_s0 + $0x8] sm:$0xff] %v614_v1  ;;  %s2854_s11 = int_to_ptr.vmem [resolvable:$true] %s638_s11 }
 0x359   : > { %619 = vst [vmem:[%s2937_s0 + $0x10] sm:$0xff] %v615_v2  ;;  %620 = vst [vmem:[%s2937_s0 + $0x18] sm:$0xff] %v616_v3  ;;  %s2941_s13 = sand.u32 1, %s2938_s4   ;;  %s1890_s8 = scalar_lea.vmem %s2854_s11, 512 }
 0x35a   : > { %s2852_s5 = scalar_lea.hbm %s2940_s25, %s1057_s26  ;;  %s2862_s20 = scalar_lea.sflag [#allocation7], %s2941_s13 }
 0x35b   : > { %p1891_p13 = scmp.ne.s32.totalorder %s2854_s11, %s1890_s8  ;;  %p1897_p3 = scmp.lt.s32.totalorder %s2854_s11, %s1895_s28 }
 0x35c   : > { %p1898_p7 = scmp.lt.s32.totalorder %s1896_s15, %s1890_s8 }
 0x35d   : > { %p1892_p0 = pnand %p1891_p13, %p2057_p11 }
 0x35e   : > { %p1899_p1 = por %p1898_p7, %p1897_p3 }
 0x35f   : > { %p1893_p2 = pneg %p1892_p0 }
 0x361   : > { %p1900_p4 = pnand %p1899_p1, %p1893_p2 }
 0x363   : > { %1903 = shalt.err (!%p1900_p4)
}
 0x364   : > { %s1904_s22 = scalar_lea.hbm %s2852_s5, 512  ;;  %s1908_s3 = scalar_lea.hbm %s2940_s25, 2048 }
 0x365   : > { %p1905_p5 = scmp.ne.s32.totalorder %s2852_s5, %s1904_s22  ;;  %p1909_p9 = scmp.lt.u32.totalorder %s2852_s5, %s2940_s25 }
 0x366   : > { %p1910_p10 = scmp.lt.u32.totalorder %s1908_s3, %s1904_s22  ;;  %p1912_p13 = scmp.lt.u32.totalorder %s1904_s22, %s2852_s5 }
 0x367   : > { %p1906_p6 = pnand %p1905_p5, %p2057_p11 }
 0x368   : > { %p1911_p12 = por %p1910_p10, %p1909_p9 }
 0x369   : > { %p1907_p8 = pneg %p1906_p6 }
 0x36a   : > { %p1913_p0 = por %p1912_p13, %p1911_p12 }
 0x36c   : > { %p1914_p2 = pnand %p1913_p0, %p1907_p8 }
 0x36e   : > { %1917 = shalt.err (!%p1914_p2)
}
 0x36f   : > { %s1974_s21 = smov 256   ;;  %s1975_s18 = smov 16  }
 0x370   : > { %1058 = dma.vmem_to_hbm [thread:$0]  (%p2057_p11), %s2854_s11, 512, %s2852_s5, %s2862_s20, %s1974_s21, %s1974_s21, %s1975_s18  }
 0x371 PF: > { %s2942_s2 = sld [smem:[#allocation45_spill]]  ;;  %s2943_s6 = sld [smem:[#allocation43_spill]] }
 0x372   : > { %s2944_s14 = sld [smem:[#allocation49_spill]] }
 0x377   : > { %p1064_p3 = scmp.ge.s32.totalorder %s2942_s2, 1  ;;  %s653_s16 = sand.u32 1, %s2943_s6  }
 0x378   : > { %p2945_p7 = scmp.ne.s32.totalorder %s2944_s14, 0  ;;  %s654_s27 = scalar_lea.sflag [#allocation7], %s653_s16 }
 0x37a   : > { %p1061_p1 = pnand %p1064_p3, %p2945_p7 }
 0x37c   : > { %1943 = dma.done.wait (!%p1061_p1), %s654_s27, 512  }
 0x37d   : > { %1945 = vsyncadd (!%p1061_p1), %s654_s27, 4294966784  ;;  %s19_s23 = sadd.s32 1, %s2942_s2   ;;  %s2946_s19 = sld [smem:[#allocation44_spill]] }
 0x37e   : > { %p16_p4 = scmp.ge.s32.totalorder %s19_s23, 5   ;;  %s2947_s20 = sld [smem:[#allocation50_spill]] }
 0x37f   : > { %s2948_s21 = sld [smem:[#allocation46_spill]]  ;;  %s2949_s22 = sld [smem:[#allocation47_spill]] }
 0x380   :  { %18 = sbr.rel (!%p16_p4) target bundleno = 16 (0x10), region = 121 }
 0x387   :  { %659 = vsyncpa [#allocation7], 1 }
 0x388   :  { %661 = vsyncpa [#allocation7 + $0x1], 1 }
 0x389   :  { %662 = vsyncmov [#allocation3] }
 0x38c   :  { %s663_s0 = vpop.sfrf %662 }
 0x38d   :  { %p1051_p11 = scmp.ne.s32.totalorder %s663_s0, 0 }
 0x38f   :  { %667 = shalt.err (%p1051_p11)  }
 0x390   :  { %669 = vsyncmov [#allocation3 + $0x1] }
 0x393   :  { %s670_s4 = vpop.sfrf %669 }
 0x394   :  { %p1052_p5 = scmp.ne.s32.totalorder %s670_s4, 0 }
 0x396   :  { %674 = shalt.err (%p1052_p5)  }

</bundles_post_ra>
